<compile_context>
chip_gen: v7x
topology: tpu7x:2x2x1
jax: 0.10.0
libtpu: 0.0.40
codegen_flags: <defaults>
</compile_context>

<pallas_src>
import jax
import jax.numpy as jnp
import numpy as np
from jax.experimental import pallas as pl
from jax.experimental.pallas import tpu as pltpu


def clam_kernel(n_ref,                                    # scalar prefetch: true N
                h_ref, wfc_ref, bfc_ref, wab_ref, bab_ref,
                wc_ref, bc_ref, wcls_ref, bcls_ref,
                logits_ref,
                m_sc, l_sc, acc_sc):
    i = pl.program_id(0)
    tile_n = h_ref.shape[0]
    d_att = wc_ref.shape[1]                               # 256

    @pl.when(i == 0)
    def _init():
        m_sc[...] = jnp.full_like(m_sc, -jnp.inf)
        l_sc[...] = jnp.zeros_like(l_sc)
        acc_sc[...] = jnp.zeros_like(acc_sc)

    # attention_net[0:2]: Linear(1024, 512) + ReLU
    h1 = jnp.maximum(
        jnp.dot(h_ref[...], wfc_ref[...], preferred_element_type=jnp.float32)
        + bfc_ref[...], 0.0)                              # (T, 512)

    # Attn_Net_Gated: fused a|b projection -> one MXU-friendly 512-wide matmul
    ab = jnp.dot(h1, wab_ref[...], preferred_element_type=jnp.float32) + bab_ref[...]
    g = jnp.tanh(ab[:, :d_att]) * jax.nn.sigmoid(ab[:, d_att:])   # (T, 256)

    # attention_c: Linear(256, 1) as a lane reduction against the wc row vector
    s = jnp.sum(g * wc_ref[...], axis=1, keepdims=True) + bc_ref[...]  # (T, 1)

    # mask rows beyond the true bag size (zero-padded tail tile)
    row = i * tile_n + jax.lax.broadcasted_iota(jnp.int32, (tile_n, 1), 0)
    s = jnp.where(row < n_ref[0], s, -jnp.inf)

    # online softmax over instances + weighted pooling accumulator
    m_prev = m_sc[...]                                    # (1, 1)
    m_new = jnp.maximum(m_prev, jnp.max(s, axis=0, keepdims=True))
    corr = jnp.exp(m_prev - m_new)                        # (1, 1)
    p = jnp.exp(s - m_new)                                # (T, 1); masked rows -> 0
    l_sc[...] = corr * l_sc[...] + jnp.sum(p, axis=0, keepdims=True)
    acc_sc[...] = corr * acc_sc[...] + jnp.sum(p * h1, axis=0, keepdims=True)
    m_sc[...] = m_new

    # classifier tail only on the final grid step
    @pl.when(i == pl.num_programs(0) - 1)
    def _finalize():
        m_vec = acc_sc[...] / l_sc[...]                   # (1, 512) == softmax(A) @ h1
        # classifiers(concat([M, M])) with the weight already folded in the wrapper
        logits_ref[...] = (
            jnp.dot(m_vec, wcls_ref[...], preferred_element_type=jnp.float32)
            + bcls_ref[...])                              # (1, C_pad)


def _round_up(x, m):
    return ((x + m - 1) // m) * m


def make_params(key, l0=1024, l1=512, l2=256, n_classes=1):
    """Deterministic synthetic parameters (shapes match CLAM_SB_TIME_NN_Pool('small'))."""
    ks = jax.random.split(key, 10)

    def lin(kw, kb, fin, fout):
        s = 1.0 / np.sqrt(fin)
        w = jax.random.uniform(kw, (fin, fout), jnp.float32, -s, s)
        b = jax.random.uniform(kb, (1, fout), jnp.float32, -s, s)
        return w, b

    wfc, bfc = lin(ks[0], ks[1], l0, l1)                  # Linear(1024, 512)
    wa, ba = lin(ks[2], ks[3], l1, l2)                    # attention_a Linear(512, 256)
    wb, bb = lin(ks[4], ks[5], l1, l2)                    # attention_b Linear(512, 256)
    wc, bc = lin(ks[6], ks[7], l2, 1)                     # attention_c Linear(256, 1)
    wcls, bcls = lin(ks[8], ks[9], 2 * l1, n_classes)     # classifiers Linear(1024, C)
    return dict(wfc=wfc, bfc=bfc, wa=wa, ba=ba, wb=wb, bb=bb,
                wc=wc, bc=bc, wcls=wcls, bcls=bcls)


def clam_forward(h, params, *, n_pool=100, tile_n=512,
                 vmem_limit_bytes=48 * 1024 * 1024):
    """h: (N, 1024) float32 bag of instances. Returns logits (1, n_classes)."""
    N, L0 = h.shape
    if N > 2 * n_pool:
        # TODO(synk): argsort-based top/bottom-N pooling branch (h.shape[0] > 2*self.N)
        #             needs a data-dependent sort + gather; not implemented in-kernel.
        raise NotImplementedError("only the attention-matmul pooling branch is implemented")

    wfc, bfc = params["wfc"], params["bfc"]
    wa, ba, wb, bb = params["wa"], params["ba"], params["wb"], params["bb"]
    wc, bc = params["wc"], params["bc"]
    wcls, bcls = params["wcls"], params["bcls"]

    L1 = wfc.shape[1]                                     # 512
    D = wa.shape[1]                                       # 256
    C = wcls.shape[1]                                     # n_classes
    C_pad = _round_up(max(C, 1), 128)                     # lane-dense classifier output

    # Fuse the gated-attention a|b projections into one matmul.
    wab = jnp.concatenate([wa, wb], axis=1)               # (512, 512)
    bab = jnp.concatenate([ba, bb], axis=1)               # (1, 512)
    wc_row = wc.reshape(1, D)                             # (1, 256)
    # classifiers(concat([M, M])) == M @ (Wcls[:512] + Wcls[512:]) + b  (exact linear identity)
    wcls_folded = wcls[:L1] + wcls[L1:]                   # (512, C)
    wcls_p = jnp.pad(wcls_folded, ((0, 0), (0, C_pad - C)))
    bcls_p = jnp.pad(bcls, ((0, 0), (0, C_pad - C)))

    # Pick an instance tile (multiple of 128; cap by bag size) and zero-pad the bag.
    # Default 512 keeps the per-step footprint well under v7x's 64 MiB VMEM; v5e/v6e
    # (128 MiB) tolerate larger tiles via the tile_n argument.
    tile_n = max(128, (min(tile_n, _round_up(N, 128)) // 128) * 128)
    n_pad = _round_up(N, tile_n)
    h_p = jnp.pad(h, ((0, n_pad - N), (0, 0)))
    grid = (n_pad // tile_n,)

    n_true = jnp.array([N], dtype=jnp.int32)

    logits_p = pl.pallas_call(
        clam_kernel,
        out_shape=jax.ShapeDtypeStruct((1, C_pad), jnp.float32),
        grid_spec=pltpu.PrefetchScalarGridSpec(
            num_scalar_prefetch=1,
            grid=grid,
            in_specs=[
                pl.BlockSpec((tile_n, L0), lambda i, n: (i, 0)),   # h tile (pipelined)
                pl.BlockSpec((L0, L1), lambda i, n: (0, 0)),       # wfc (resident)
                pl.BlockSpec((1, L1), lambda i, n: (0, 0)),        # bfc
                pl.BlockSpec((L1, 2 * D), lambda i, n: (0, 0)),    # fused wa|wb
                pl.BlockSpec((1, 2 * D), lambda i, n: (0, 0)),     # fused ba|bb
                pl.BlockSpec((1, D), lambda i, n: (0, 0)),         # wc as row
                pl.BlockSpec((1, 1), lambda i, n: (0, 0)),         # bc
                pl.BlockSpec((L1, C_pad), lambda i, n: (0, 0)),    # folded/padded wcls
                pl.BlockSpec((1, C_pad), lambda i, n: (0, 0)),     # padded bcls
            ],
            out_specs=pl.BlockSpec((1, C_pad), lambda i, n: (0, 0)),
            scratch_shapes=[
                pltpu.VMEM((1, 1), jnp.float32),    # running max
                pltpu.VMEM((1, 1), jnp.float32),    # running softmax denominator
                pltpu.VMEM((1, L1), jnp.float32),   # running pooled vector
            ]),
        compiler_params=pltpu.CompilerParams(
            dimension_semantics=("arbitrary",),
            vmem_limit_bytes=vmem_limit_bytes),
    )(n_true, h_p, wfc, bfc, wab, bab, wc_row, bc, wcls_p, bcls_p)

    return logits_p[:, :C]


def clam_reference(h, p):
    """Pure-JAX reference mirroring the PyTorch forward (mm pooling branch)."""
    h1 = jax.nn.relu(h @ p["wfc"] + p["bfc"])             # (N, 512)
    a = jnp.tanh(h1 @ p["wa"] + p["ba"])
    b = jax.nn.sigmoid(h1 @ p["wb"] + p["bb"])
    A = (a * b) @ p["wc"] + p["bc"]                       # (N, 1)
    A_sm = jax.nn.softmax(A.T, axis=1)                    # (1, N) over instances
    M = A_sm @ h1                                         # (1, 512)
    M_cat = jnp.concatenate([M[0], M[0]])[None, :]        # (1, 1024)
    return M_cat @ p["wcls"] + p["bcls"]                  # (1, n_classes)


if __name__ == "__main__":
    key = jax.random.PRNGKey(0)
    kp, kh = jax.random.split(key)

    N_INSTANCES = 200          # <= 2 * N_pool(=100) -> attention-matmul pooling branch
    L0, N_CLASSES = 1024, 1    # fixed by size_dict['small'] / default n_classes

    params = make_params(kp, l0=L0, n_classes=N_CLASSES)
    h = jax.random.normal(kh, (N_INSTANCES, L0), jnp.float32)

    # tile_n=128 -> 2 grid steps, exercises the online-softmax carry and tail masking.
    logits = clam_forward(h, params, n_pool=100, tile_n=128)
    jax.block_until_ready(logits)

    ref_logits = clam_reference(h, params)
    np.testing.assert_allclose(np.asarray(logits), np.asarray(ref_logits),
                               rtol=5e-4, atol=5e-4)

    print("KERNEL_OK")
</pallas_src>

<mosaic_0001>
module attributes {stable_mosaic.version = 11 : i64} {
  func.func @clam_kernel(%arg0: i32, %arg1: memref<1xi32, #tpu.memory_space<smem>>, %arg2: memref<128x1024xf32, #tpu.memory_space<vmem>>, %arg3: memref<1024x512xf32, #tpu.memory_space<vmem>>, %arg4: memref<1x512xf32, #tpu.memory_space<vmem>>, %arg5: memref<512x512xf32, #tpu.memory_space<vmem>>, %arg6: memref<1x512xf32, #tpu.memory_space<vmem>>, %arg7: memref<1x256xf32, #tpu.memory_space<vmem>>, %arg8: memref<1x1xf32, #tpu.memory_space<vmem>>, %arg9: memref<512x128xf32, #tpu.memory_space<vmem>>, %arg10: memref<1x128xf32, #tpu.memory_space<vmem>>, %arg11: memref<1x128xf32, #tpu.memory_space<vmem>>, %arg12: memref<1x1xf32, #tpu.memory_space<vmem>>, %arg13: memref<1x1xf32, #tpu.memory_space<vmem>>, %arg14: memref<1x512xf32, #tpu.memory_space<vmem>>) attributes {dimension_semantics = [#tpu.dimension_semantics<arbitrary>], iteration_bounds = array<i64: 2>, scalar_prefetch = 1 : i64, scratch_operands = 3 : i64, tpu.core_type = #tpu.core_type<tc>, window_params = [{transform_indices = @transform_0, window_bounds = array<i64: 128, 1024>}, {pipeline_mode = #tpu.pipeline_mode<synchronous>, transform_indices = @transform_1, window_bounds = array<i64: 1024, 512>}, {pipeline_mode = #tpu.pipeline_mode<synchronous>, transform_indices = @transform_2, window_bounds = array<i64: 1, 512>}, {pipeline_mode = #tpu.pipeline_mode<synchronous>, transform_indices = @transform_3, window_bounds = array<i64: 512, 512>}, {pipeline_mode = #tpu.pipeline_mode<synchronous>, transform_indices = @transform_4, window_bounds = array<i64: 1, 512>}, {pipeline_mode = #tpu.pipeline_mode<synchronous>, transform_indices = @transform_5, window_bounds = array<i64: 1, 256>}, {pipeline_mode = #tpu.pipeline_mode<synchronous>, transform_indices = @transform_6, window_bounds = array<i64: 1, 1>}, {pipeline_mode = #tpu.pipeline_mode<synchronous>, transform_indices = @transform_7, window_bounds = array<i64: 512, 128>}, {pipeline_mode = #tpu.pipeline_mode<synchronous>, transform_indices = @transform_8, window_bounds = array<i64: 1, 128>}, {pipeline_mode = #tpu.pipeline_mode<synchronous>, transform_indices = @transform_9, window_bounds = array<i64: 1, 128>}]} {
    %c0_i32 = arith.constant 0 : i32
    %0 = arith.cmpi eq, %arg0, %c0_i32 : i32
    %1 = arith.extui %0 : i1 to i32
    %c0_i32_0 = arith.constant 0 : i32
    %2 = arith.cmpi ne, %1, %c0_i32_0 : i32
    scf.if %2 {
      %cst_36 = arith.constant 0xFF800000 : f32
      %70 = vector.broadcast %cst_36 : f32 to vector<1x1xf32>
      %c0_37 = arith.constant 0 : index
      %c0_38 = arith.constant 0 : index
      %71 = vector.load %arg12[%c0_37, %c0_38] : memref<1x1xf32, #tpu.memory_space<vmem>>, vector<1x1xf32>
      tpu.vector_store %arg12[%c0_37, %c0_38], %70 {strides = array<i32>} : memref<1x1xf32, #tpu.memory_space<vmem>>, vector<1x1xf32>,
      %cst_39 = arith.constant 0.000000e+00 : f32
      %72 = vector.broadcast %cst_39 : f32 to vector<1x1xf32>
      %c0_40 = arith.constant 0 : index
      %c0_41 = arith.constant 0 : index
      %73 = vector.load %arg13[%c0_40, %c0_41] : memref<1x1xf32, #tpu.memory_space<vmem>>, vector<1x1xf32>
      tpu.vector_store %arg13[%c0_40, %c0_41], %72 {strides = array<i32>} : memref<1x1xf32, #tpu.memory_space<vmem>>, vector<1x1xf32>,
      %cst_42 = arith.constant 0.000000e+00 : f32
      %74 = vector.broadcast %cst_42 : f32 to vector<1x512xf32>
      %c0_43 = arith.constant 0 : index
      %c0_44 = arith.constant 0 : index
      %75 = vector.load %arg14[%c0_43, %c0_44] : memref<1x512xf32, #tpu.memory_space<vmem>>, vector<1x512xf32>
      tpu.vector_store %arg14[%c0_43, %c0_44], %74 {strides = array<i32>} : memref<1x512xf32, #tpu.memory_space<vmem>>, vector<1x512xf32>,
    } else {
    }
    %c0 = arith.constant 0 : index
    %c0_1 = arith.constant 0 : index
    %3 = vector.load %arg2[%c0, %c0_1] : memref<128x1024xf32, #tpu.memory_space<vmem>>, vector<128x1024xf32>
    %c0_2 = arith.constant 0 : index
    %c0_3 = arith.constant 0 : index
    %4 = vector.load %arg3[%c0_2, %c0_3] : memref<1024x512xf32, #tpu.memory_space<vmem>>, vector<1024x512xf32>
    %cst = arith.constant dense<0.000000e+00> : vector<128x512xf32>
    %5 = tpu.matmul %3, %4, %cst {dimension_numbers = #tpu.dot_dimension_numbers<[1], [0], [0], [1], [0, 0, 1, 1], [], []>} : vector<128x1024xf32>, vector<1024x512xf32>, vector<128x512xf32> -> vector<128x512xf32>
    %c0_4 = arith.constant 0 : index
    %c0_5 = arith.constant 0 : index
    %6 = vector.load %arg4[%c0_4, %c0_5] : memref<1x512xf32, #tpu.memory_space<vmem>>, vector<1x512xf32>
    %7 = vector.broadcast %6 : vector<1x512xf32> to vector<128x512xf32>
    %8 = arith.addf %5, %7 : vector<128x512xf32>
    %cst_6 = arith.constant 0.000000e+00 : f32
    %9 = vector.broadcast %cst_6 : f32 to vector<128x512xf32>
    %10 = arith.maximumf %8, %9 : vector<128x512xf32>
    %c0_7 = arith.constant 0 : index
    %c0_8 = arith.constant 0 : index
    %11 = vector.load %arg5[%c0_7, %c0_8] : memref<512x512xf32, #tpu.memory_space<vmem>>, vector<512x512xf32>
    %cst_9 = arith.constant dense<0.000000e+00> : vector<128x512xf32>
    %12 = tpu.matmul %10, %11, %cst_9 {dimension_numbers = #tpu.dot_dimension_numbers<[1], [0], [0], [1], [0, 0, 1, 1], [], []>} : vector<128x512xf32>, vector<512x512xf32>, vector<128x512xf32> -> vector<128x512xf32>
    %c0_10 = arith.constant 0 : index
    %c0_11 = arith.constant 0 : index
    %13 = vector.load %arg6[%c0_10, %c0_11] : memref<1x512xf32, #tpu.memory_space<vmem>>, vector<1x512xf32>
    %14 = vector.broadcast %13 : vector<1x512xf32> to vector<128x512xf32>
    %15 = arith.addf %12, %14 : vector<128x512xf32>
    %16 = vector.extract_strided_slice %15 {offsets = [0, 0], sizes = [128, 256], strides = [1, 1]} : vector<128x512xf32> to vector<128x256xf32>
    %17 = math.tanh %16 : vector<128x256xf32>
    %18 = vector.extract_strided_slice %15 {offsets = [0, 256], sizes = [128, 256], strides = [1, 1]} : vector<128x512xf32> to vector<128x256xf32>
    %19 = arith.negf %18 : vector<128x256xf32>
    %20 = math.exp %19 : vector<128x256xf32>
    %cst_12 = arith.constant 1.000000e+00 : f32
    %21 = vector.broadcast %cst_12 : f32 to vector<128x256xf32>
    %22 = arith.addf %21, %20 : vector<128x256xf32>
    %23 = arith.divf %21, %22 : vector<128x256xf32>
    %24 = arith.mulf %17, %23 : vector<128x256xf32>
    %c0_13 = arith.constant 0 : index
    %c0_14 = arith.constant 0 : index
    %25 = vector.load %arg7[%c0_13, %c0_14] : memref<1x256xf32, #tpu.memory_space<vmem>>, vector<1x256xf32>
    %26 = vector.broadcast %25 : vector<1x256xf32> to vector<128x256xf32>
    %27 = arith.mulf %24, %26 : vector<128x256xf32>
    %cst_15 = arith.constant dense<0.000000e+00> : vector<128xf32>
    %28 = vector.multi_reduction <add>, %27, %cst_15 [1] : vector<128x256xf32> to vector<128xf32>
    %29 = vector.shape_cast %28 : vector<128xf32> to vector<128x1xf32>
    %c0_16 = arith.constant 0 : index
    %c0_17 = arith.constant 0 : index
    %30 = vector.load %arg8[%c0_16, %c0_17] : memref<1x1xf32, #tpu.memory_space<vmem>>, vector<1x1xf32>
    %31 = vector.broadcast %30 : vector<1x1xf32> to vector<128x1xf32>
    %32 = arith.addf %29, %31 : vector<128x1xf32>
    %c128_i32 = arith.constant 128 : i32
    %33 = arith.muli %arg0, %c128_i32 : i32
    %34 = tpu.iota {dimensions = array<i32: 0>} : vector<128x1xi32>
    %35 = vector.broadcast %33 : i32 to vector<128x1xi32>
    %36 = arith.addi %35, %34 : vector<128x1xi32>
    %c0_18 = arith.constant 0 : index
    %37 = memref.load %arg1[%c0_18] : memref<1xi32, #tpu.memory_space<smem>>
    %38 = vector.broadcast %37 : i32 to vector<128x1xi32>
    %39 = arith.cmpi slt, %36, %38 : vector<128x1xi32>
    %cst_19 = arith.constant 0xFF800000 : f32
    %40 = vector.broadcast %cst_19 : f32 to vector<128x1xf32>
    %41 = arith.select %39, %32, %40 : vector<128x1xi1>, vector<128x1xf32>
    %c0_20 = arith.constant 0 : index
    %c0_21 = arith.constant 0 : index
    %42 = vector.load %arg12[%c0_20, %c0_21] : memref<1x1xf32, #tpu.memory_space<vmem>>, vector<1x1xf32>
    %cst_22 = arith.constant dense<0xFF800000> : vector<1xf32>
    %43 = vector.multi_reduction <maximumf>, %41, %cst_22 [0] : vector<128x1xf32> to vector<1xf32>
    %44 = vector.shape_cast %43 : vector<1xf32> to vector<1x1xf32>
    %45 = arith.maximumf %42, %44 : vector<1x1xf32>
    %46 = arith.subf %42, %45 : vector<1x1xf32>
    %47 = math.exp %46 : vector<1x1xf32>
    %48 = vector.broadcast %45 : vector<1x1xf32> to vector<128x1xf32>
    %49 = arith.subf %41, %48 : vector<128x1xf32>
    %50 = math.exp %49 : vector<128x1xf32>
    %c0_23 = arith.constant 0 : index
    %c0_24 = arith.constant 0 : index
    %51 = vector.load %arg13[%c0_23, %c0_24] : memref<1x1xf32, #tpu.memory_space<vmem>>, vector<1x1xf32>
    %52 = arith.mulf %47, %51 : vector<1x1xf32>
    %cst_25 = arith.constant dense<0.000000e+00> : vector<1xf32>
    %53 = vector.multi_reduction <add>, %50, %cst_25 [0] : vector<128x1xf32> to vector<1xf32>
    %54 = vector.shape_cast %53 : vector<1xf32> to vector<1x1xf32>
    %55 = arith.addf %52, %54 : vector<1x1xf32>
    %c0_26 = arith.constant 0 : index
    %c0_27 = arith.constant 0 : index
    %56 = vector.load %arg13[%c0_26, %c0_27] : memref<1x1xf32, #tpu.memory_space<vmem>>, vector<1x1xf32>
    tpu.vector_store %arg13[%c0_26, %c0_27], %55 {strides = array<i32>} : memref<1x1xf32, #tpu.memory_space<vmem>>, vector<1x1xf32>,
    %c0_28 = arith.constant 0 : index
    %c0_29 = arith.constant 0 : index
    %57 = vector.load %arg14[%c0_28, %c0_29] : memref<1x512xf32, #tpu.memory_space<vmem>>, vector<1x512xf32>
    %58 = vector.broadcast %47 : vector<1x1xf32> to vector<1x512xf32>
    %59 = arith.mulf %58, %57 : vector<1x512xf32>
    %60 = vector.broadcast %50 : vector<128x1xf32> to vector<128x512xf32>
    %61 = arith.mulf %60, %10 : vector<128x512xf32>
    %cst_30 = arith.constant dense<0.000000e+00> : vector<512xf32>
    %62 = vector.multi_reduction <add>, %61, %cst_30 [0] : vector<128x512xf32> to vector<512xf32>
    %63 = vector.shape_cast %62 : vector<512xf32> to vector<1x512xf32>
    %64 = arith.addf %59, %63 : vector<1x512xf32>
    %c0_31 = arith.constant 0 : index
    %c0_32 = arith.constant 0 : index
    %65 = vector.load %arg14[%c0_31, %c0_32] : memref<1x512xf32, #tpu.memory_space<vmem>>, vector<1x512xf32>
    tpu.vector_store %arg14[%c0_31, %c0_32], %64 {strides = array<i32>} : memref<1x512xf32, #tpu.memory_space<vmem>>, vector<1x512xf32>,
    %c0_33 = arith.constant 0 : index
    %c0_34 = arith.constant 0 : index
    %66 = vector.load %arg12[%c0_33, %c0_34] : memref<1x1xf32, #tpu.memory_space<vmem>>, vector<1x1xf32>
    tpu.vector_store %arg12[%c0_33, %c0_34], %45 {strides = array<i32>} : memref<1x1xf32, #tpu.memory_space<vmem>>, vector<1x1xf32>,
    %c1_i32 = arith.constant 1 : i32
    %67 = arith.cmpi eq, %arg0, %c1_i32 : i32
    %68 = arith.extui %67 : i1 to i32
    %c0_i32_35 = arith.constant 0 : i32
    %69 = arith.cmpi ne, %68, %c0_i32_35 : i32
    scf.if %69 {
      %c0_36 = arith.constant 0 : index
      %c0_37 = arith.constant 0 : index
      %70 = vector.load %arg14[%c0_36, %c0_37] : memref<1x512xf32, #tpu.memory_space<vmem>>, vector<1x512xf32>
      %c0_38 = arith.constant 0 : index
      %c0_39 = arith.constant 0 : index
      %71 = vector.load %arg13[%c0_38, %c0_39] : memref<1x1xf32, #tpu.memory_space<vmem>>, vector<1x1xf32>
      %72 = vector.broadcast %71 : vector<1x1xf32> to vector<1x512xf32>
      %73 = arith.divf %70, %72 : vector<1x512xf32>
      %c0_40 = arith.constant 0 : index
      %c0_41 = arith.constant 0 : index
      %74 = vector.load %arg9[%c0_40, %c0_41] : memref<512x128xf32, #tpu.memory_space<vmem>>, vector<512x128xf32>
      %cst_42 = arith.constant dense<0.000000e+00> : vector<1x128xf32>
      %75 = tpu.matmul %73, %74, %cst_42 {dimension_numbers = #tpu.dot_dimension_numbers<[1], [0], [0], [1], [0, 0, 1, 1], [], []>} : vector<1x512xf32>, vector<512x128xf32>, vector<1x128xf32> -> vector<1x128xf32>
      %c0_43 = arith.constant 0 : index
      %c0_44 = arith.constant 0 : index
      %76 = vector.load %arg10[%c0_43, %c0_44] : memref<1x128xf32, #tpu.memory_space<vmem>>, vector<1x128xf32>
      %77 = arith.addf %75, %76 : vector<1x128xf32>
      %c0_45 = arith.constant 0 : index
      %c0_46 = arith.constant 0 : index
      %78 = vector.load %arg11[%c0_45, %c0_46] : memref<1x128xf32, #tpu.memory_space<vmem>>, vector<1x128xf32>
      tpu.vector_store %arg11[%c0_45, %c0_46], %77 {strides = array<i32>} : memref<1x128xf32, #tpu.memory_space<vmem>>, vector<1x128xf32>,
    } else {
    }
    return
  }
  func.func @transform_0(%arg0: i32, %arg1: memref<1xi32, #tpu.memory_space<smem>>) -> (i32, i32) {
    %c0_i32 = arith.constant 0 : i32
    %c0_i32_0 = arith.constant 0 : i32
    return %arg0, %c0_i32 : i32, i32
  }
  func.func @transform_1(%arg0: i32, %arg1: memref<1xi32, #tpu.memory_space<smem>>) -> (i32, i32) {
    %c0_i32 = arith.constant 0 : i32
    %c0_i32_0 = arith.constant 0 : i32
    %c0_i32_1 = arith.constant 0 : i32
    return %c0_i32, %c0_i32_0 : i32, i32
  }
  func.func @transform_2(%arg0: i32, %arg1: memref<1xi32, #tpu.memory_space<smem>>) -> (i32, i32) {
    %c0_i32 = arith.constant 0 : i32
    %c0_i32_0 = arith.constant 0 : i32
    %c0_i32_1 = arith.constant 0 : i32
    return %c0_i32, %c0_i32_0 : i32, i32
  }
  func.func @transform_3(%arg0: i32, %arg1: memref<1xi32, #tpu.memory_space<smem>>) -> (i32, i32) {
    %c0_i32 = arith.constant 0 : i32
    %c0_i32_0 = arith.constant 0 : i32
    %c0_i32_1 = arith.constant 0 : i32
    return %c0_i32, %c0_i32_0 : i32, i32
  }
  func.func @transform_4(%arg0: i32, %arg1: memref<1xi32, #tpu.memory_space<smem>>) -> (i32, i32) {
    %c0_i32 = arith.constant 0 : i32
    %c0_i32_0 = arith.constant 0 : i32
    %c0_i32_1 = arith.constant 0 : i32
    return %c0_i32, %c0_i32_0 : i32, i32
  }
  func.func @transform_5(%arg0: i32, %arg1: memref<1xi32, #tpu.memory_space<smem>>) -> (i32, i32) {
    %c0_i32 = arith.constant 0 : i32
    %c0_i32_0 = arith.constant 0 : i32
    %c0_i32_1 = arith.constant 0 : i32
    return %c0_i32, %c0_i32_0 : i32, i32
  }
  func.func @transform_6(%arg0: i32, %arg1: memref<1xi32, #tpu.memory_space<smem>>) -> (i32, i32) {
    %c0_i32 = arith.constant 0 : i32
    %c0_i32_0 = arith.constant 0 : i32
    %c0_i32_1 = arith.constant 0 : i32
    return %c0_i32, %c0_i32_0 : i32, i32
  }
  func.func @transform_7(%arg0: i32, %arg1: memref<1xi32, #tpu.memory_space<smem>>) -> (i32, i32) {
    %c0_i32 = arith.constant 0 : i32
    %c0_i32_0 = arith.constant 0 : i32
    %c0_i32_1 = arith.constant 0 : i32
    return %c0_i32, %c0_i32_0 : i32, i32
  }
  func.func @transform_8(%arg0: i32, %arg1: memref<1xi32, #tpu.memory_space<smem>>) -> (i32, i32) {
    %c0_i32 = arith.constant 0 : i32
    %c0_i32_0 = arith.constant 0 : i32
    %c0_i32_1 = arith.constant 0 : i32
    return %c0_i32, %c0_i32_0 : i32, i32
  }
  func.func @transform_9(%arg0: i32, %arg1: memref<1xi32, #tpu.memory_space<smem>>) -> (i32, i32) {
    %c0_i32 = arith.constant 0 : i32
    %c0_i32_0 = arith.constant 0 : i32
    %c0_i32_1 = arith.constant 0 : i32
    return %c0_i32, %c0_i32_0 : i32, i32
  }
}

</mosaic_0001>

<bundles_post_ra>
// kernel: tpu_custom_call.1
= control target key start
LH: loop header
LB: loop body
LE: loop exit
PB: predicated region body
PF: predicated region fallthrough
CT: control target
= control target key end

     0   :  { %s8115_s0 = inlined_call_operand.<no memory space> [shape: s32[1], index: 0, kind: input, shape index: {}]   ;;  %s8116_s1 = inlined_call_operand.hbm [shape: f32[256,1024], index: 1, kind: input, shape index: {}]   ;;  %s8117_s2 = inlined_call_operand.hbm [shape: f32[1024,512], index: 2, kind: input, shape index: {}]   ;;  %s8118_s3 = inlined_call_operand.hbm [shape: f32[1,512], index: 3, kind: input, shape index: {}]   ;;  %s8119_s4 = inlined_call_operand.hbm [shape: f32[512,512], index: 4, kind: input, shape index: {}]   ;;  %s8120_s5 = inlined_call_operand.hbm [shape: f32[1,512], index: 5, kind: input, shape index: {}]   ;;  %s8121_s6 = inlined_call_operand.hbm [shape: f32[1,256], index: 6, kind: input, shape index: {}]   ;;  %s8122_s7 = inlined_call_operand.<no memory space> [shape: f32[1,1], index: 7, kind: input, shape index: {}]   ;;  %s8123_s8 = inlined_call_operand.hbm [shape: f32[512,128], index: 8, kind: input, shape index: {}]   ;;  %s8124_s9 = inlined_call_operand.hbm [shape: f32[1,128], index: 9, kind: input, shape index: {}]   ;;  %s8125_s10 = inlined_call_operand.hbm [shape: f32[1,128], index: 10, kind: output, shape index: {}]  }
   0x1   :  { %15 = sst [smem:[#allocation6]] %s8115_s0  ;;  %v16_v0 = vstv %s8122_s7 }
   0x2   :  { %17 = vst [vmem:[#allocation7] sm:$0x1] %v16_v0 }
   0x3   :  { %18 = vsyncpa [#allocation9], 0 }
   0x4   :  { %20 = vsyncpa [#allocation9 + $0x1], 0 }
   0x5   :  { %21 = vsyncpa [#allocation12], 0 }
   0x6   :  { %22 = vsyncpa [#allocation15], 0 }
   0x7   :  { %23 = vsyncpa [#allocation18], 0 }
   0x8   :  { %24 = vsyncpa [#allocation21], 0 }
   0x9   :  { %25 = vsyncpa [#allocation10], 0  ;;  %s6708_s17 = smov 0   ;;  %s6710_s18 = smov 0  }
   0xa   :  { %s6712_s19 = smov 0   ;;  %s6714_s20 = smov 0  }
   0xb LB: > { %s6627_s0 = smov [#allocation11]   ;;  %s6729_s21 = sadd.s32 4294967295, %s6625_s20   ;;  %s6625_s20 = sphi %s6714_s20, %s8312_s20   ;;  %s6621_s19 = sphi %s6712_s19, %s8311_s19   ;;  %s6617_s18 = sphi %s6710_s18, %s8310_s18   ;;  %s6613_s17 = sphi %s6708_s17, %s8309_s17  }
   0xc   : > { %s263_s7 = sshll.u32 %s6627_s0, 4  ;;  %p4610_p0 = scmp.ge.s32.totalorder %s6625_s20, 1  ;;  %s6735_s7 = int_to_ptr.vmem [resolvable:$true] %s263_s7 }
   0xd   : > { %p8126_p1 = scmp.eq.s32.totalorder %s6729_s21, 0  ;;  %p251_p2 = scmp.lt.s32.totalorder %s6625_s20, 3 }
   0xe   : > { %s6628_s23 = smov [#allocation14]   ;;  %s6629_s26 = smov [#allocation17]  }
   0xf   : > { %p6737_p4 = pnand %p4610_p0, %p251_p2  ;;  %s287_s24 = sshll.u32 %s6628_s23, 4  ;;  %s6749_s24 = int_to_ptr.vmem [resolvable:$true] %s287_s24 }
  0x10   : > { %s312_s27 = sshll.u32 %s6629_s26, 4  ;;  %s6319_s30 = scalar_lea.hbm %s8117_s2, 65536  ;;  %s6751_s27 = int_to_ptr.vmem [resolvable:$true] %s312_s27 }
  0x11   : > { %s8184_s22 = scalar_select %p6737_p4, 1, 0 }
  0x12   : > { %p5994_p5 = pneg %p6737_p4  ;;  %p6320_p7 = scmp.ne.s32.totalorder %s8117_s2, %s6319_s30 }
  0x13   : > { %p6326_p11 = scmp.lt.u32.totalorder %s6319_s30, %s8117_s2 }
  0x14   : > { %p6745_p6 = pnand %p5994_p5, %p8126_p1 }
  0x16   : > { %p6761_p8 = pneg %p6745_p6 }
  0x18   : > { %p6322_p9 = pnand %p6761_p8, %p6320_p7 }
  0x1a   : > { %p6323_p10 = pneg %p6322_p9 }
  0x1c   : > { %p6328_p12 = pnand %p6326_p11, %p6323_p10 }
  0x1e   : > { %6331 = shalt.err (!%p6328_p12)
}
  0x1f   : > { %s6332_s16 = scalar_lea.vmem %s6735_s7, 65536  ;;  %p6340_p5 = scmp.lt.s32.totalorder %s6735_s7, %s6735_s7 }
  0x20   : > { %p6333_p13 = scmp.ne.s32.totalorder %s6735_s7, %s6332_s16  ;;  %p6341_p3 = scmp.lt.s32.totalorder %s6332_s16, %s6332_s16 }
  0x22   : > { %p6335_p0 = pnand %p6333_p13, %p6761_p8  ;;  %p6342_p7 = por %p6341_p3, %p6340_p5 }
  0x24   : > { %p6336_p2 = pneg %p6335_p0 }
  0x26   : > { %p6343_p9 = pnand %p6342_p7, %p6336_p2 }
  0x28   : > { %6346 = shalt.err (!%p6343_p9)
}
  0x29   : > { %s6630_s0 = smov 512   ;;  %s6631_s23 = smov 32  }
  0x2a   : > { %5997 = dma.hbm_to_vmem [thread:$0]  (!%p6745_p6), %s8117_s2, 65536, %s6735_s7, [#allocation12], %s6630_s0, %s6630_s0, %s6631_s23  }
  0x2b   : > { %s6347_s11 = scalar_lea.hbm %s8119_s4, 32768 }
  0x2c   : > { %p6348_p3 = scmp.ne.s32.totalorder %s8119_s4, %s6347_s11  ;;  %p6354_p12 = scmp.lt.u32.totalorder %s6347_s11, %s8119_s4 }
  0x2e   : > { %p6350_p10 = pnand %p6348_p3, %p6761_p8 }
  0x30   : > { %p6351_p11 = pneg %p6350_p10 }
  0x32   : > { %p6356_p13 = pnand %p6354_p12, %p6351_p11 }
  0x34   : > { %6359 = shalt.err (!%p6356_p13)
}
  0x35   : > { %s6360_s7 = scalar_lea.vmem %s6749_s24, 32768  ;;  %p6368_p7 = scmp.lt.s32.totalorder %s6749_s24, %s6749_s24 }
  0x36   : > { %p6361_p0 = scmp.ne.s32.totalorder %s6749_s24, %s6360_s7  ;;  %p6369_p9 = scmp.lt.s32.totalorder %s6360_s7, %s6360_s7 }
  0x38   : > { %p6363_p2 = pnand %p6361_p0, %p6761_p8  ;;  %p6370_p3 = por %p6369_p9, %p6368_p7 }
  0x3a   : > { %p6364_p5 = pneg %p6363_p2 }
  0x3c   : > { %p6371_p10 = pnand %p6370_p3, %p6364_p5 }
  0x3e   : > { %6374 = shalt.err (!%p6371_p10)
}
  0x3f   : > { %6003 = dma.hbm_to_vmem [thread:$0]  (!%p6745_p6), %s8119_s4, 32768, %s6749_s24, [#allocation15], %s6630_s0, %s6630_s0, %s6631_s23  }
  0x40   : > { %s6375_s11 = scalar_lea.hbm %s8121_s6, 32 }
  0x41   : > { %p6376_p11 = scmp.ne.s32.totalorder %s8121_s6, %s6375_s11  ;;  %p6382_p0 = scmp.lt.u32.totalorder %s6375_s11, %s8121_s6 }
  0x43   : > { %p6378_p12 = pnand %p6376_p11, %p6761_p8 }
  0x45   : > { %p6379_p13 = pneg %p6378_p12 }
  0x47   : > { %p6384_p2 = pnand %p6382_p0, %p6379_p13 }
  0x49   : > { %6387 = shalt.err (!%p6384_p2)
}
  0x4a   : > { %s6388_s24 = scalar_lea.vmem %s6751_s27, 32  ;;  %p6396_p3 = scmp.lt.s32.totalorder %s6751_s27, %s6751_s27 }
  0x4b   : > { %p6389_p5 = scmp.ne.s32.totalorder %s6751_s27, %s6388_s24  ;;  %p6397_p10 = scmp.lt.s32.totalorder %s6388_s24, %s6388_s24 }
  0x4d   : > { %p6391_p7 = pnand %p6389_p5, %p6761_p8  ;;  %p6398_p11 = por %p6397_p10, %p6396_p3 }
  0x4f   : > { %p6392_p9 = pneg %p6391_p7 }
  0x51   : > { %p6399_p12 = pnand %p6398_p11, %p6392_p9 }
  0x53   : > { %6402 = shalt.err (!%p6399_p12)
}
  0x54   : > { %6009 = dma.hbm_to_vmem [thread:$0]  (!%p6745_p6), %s8121_s6, 32, %s6751_s27, [#allocation18]  }
  0x55   : > { %s6632_s7 = smov [#allocation13]   ;;  %s6633_s28 = smov [#allocation16]  }
  0x56   : > { %s277_s26 = sshll.u32 %s6632_s7, 4  ;;  %s301_s29 = sshll.u32 %s6633_s28, 4  ;;  %s278_s26 = int_to_ptr.vmem [resolvable:$true] %s277_s26  ;;  %s302_s29 = int_to_ptr.vmem [resolvable:$true] %s301_s29 }
  0x57   : > { %s6403_s12 = scalar_lea.hbm %s8118_s3, 64 }
  0x58   : > { %p6404_p13 = scmp.ne.s32.totalorder %s8118_s3, %s6403_s12  ;;  %p6410_p5 = scmp.lt.u32.totalorder %s6403_s12, %s8118_s3 }
  0x5a   : > { %p6406_p0 = pnand %p6404_p13, %p6761_p8 }
  0x5c   : > { %p6407_p2 = pneg %p6406_p0 }
  0x5e   : > { %p6412_p7 = pnand %p6410_p5, %p6407_p2 }
  0x60   : > { %6415 = shalt.err (!%p6412_p7)
}
  0x61   : > { %s6416_s27 = scalar_lea.vmem %s278_s26, 64  ;;  %p6424_p11 = scmp.lt.s32.totalorder %s278_s26, %s278_s26 }
  0x62   : > { %p6417_p9 = scmp.ne.s32.totalorder %s278_s26, %s6416_s27  ;;  %p6425_p12 = scmp.lt.s32.totalorder %s6416_s27, %s6416_s27 }
  0x64   : > { %p6419_p3 = pnand %p6417_p9, %p6761_p8  ;;  %p6426_p1 = por %p6425_p12, %p6424_p11 }
  0x66   : > { %p6420_p10 = pneg %p6419_p3 }
  0x68   : > { %p6427_p4 = pnand %p6426_p1, %p6420_p10 }
  0x6a   : > { %6430 = shalt.err (!%p6427_p4)
}
  0x6b   : > { %6000 = dma.hbm_to_vmem [thread:$0]  (!%p6745_p6), %s8118_s3, 64, %s278_s26, [#allocation12]  }
  0x6c   : > { %s6431_s30 = scalar_lea.hbm %s8120_s5, 64 }
  0x6d   : > { %p6432_p13 = scmp.ne.s32.totalorder %s8120_s5, %s6431_s30  ;;  %p6438_p4 = scmp.lt.u32.totalorder %s6431_s30, %s8120_s5 }
  0x6f   : > { %p6434_p0 = pnand %p6432_p13, %p6761_p8 }
  0x71   : > { %p6435_p1 = pneg %p6434_p0 }
  0x73   : > { %p6440_p2 = pnand %p6438_p4, %p6435_p1 }
  0x75   : > { %6443 = shalt.err (!%p6440_p2)
}
  0x76   : > { %s6444_s16 = scalar_lea.vmem %s302_s29, 64  ;;  %p6452_p3 = scmp.lt.s32.totalorder %s302_s29, %s302_s29 }
  0x77   : > { %p6445_p5 = scmp.ne.s32.totalorder %s302_s29, %s6444_s16  ;;  %p6453_p10 = scmp.lt.s32.totalorder %s6444_s16, %s6444_s16 }
  0x79   : > { %p6447_p7 = pnand %p6445_p5, %p6761_p8  ;;  %p6454_p11 = por %p6453_p10, %p6452_p3 }
  0x7b   : > { %p6448_p9 = pneg %p6447_p7 }
  0x7d   : > { %p6455_p12 = pnand %p6454_p11, %p6448_p9 }
  0x7f   : > { %6458 = shalt.err (!%p6455_p12)
}
  0x80   : > { %6006 = dma.hbm_to_vmem [thread:$0]  (!%p6745_p6), %s8120_s5, 64, %s302_s29, [#allocation15]  }
  0x81   : > { %s6634_s27 = smov [#allocation19]   ;;  %s6459_s28 = scalar_lea.hbm %s8123_s8, 8192 }
  0x82   : > { %s325_s0 = sshll.u32 %s6634_s27, 4  ;;  %p6460_p13 = scmp.ne.s32.totalorder %s8123_s8, %s6459_s28  ;;  %s326_s0 = int_to_ptr.vmem [resolvable:$true] %s325_s0 }
  0x83   : > { %p6466_p4 = scmp.lt.u32.totalorder %s6459_s28, %s8123_s8 }
  0x84   : > { %p6462_p0 = pnand %p6460_p13, %p6761_p8 }
  0x86   : > { %p6463_p1 = pneg %p6462_p0 }
  0x88   : > { %p6468_p2 = pnand %p6466_p4, %p6463_p1 }
  0x8a   : > { %6471 = shalt.err (!%p6468_p2)
}
  0x8b   : > { %s6472_s29 = scalar_lea.vmem %s326_s0, 8192  ;;  %p6480_p3 = scmp.lt.s32.totalorder %s326_s0, %s326_s0 }
  0x8c   : > { %p6473_p5 = scmp.ne.s32.totalorder %s326_s0, %s6472_s29  ;;  %p6481_p10 = scmp.lt.s32.totalorder %s6472_s29, %s6472_s29 }
  0x8e   : > { %p6475_p7 = pnand %p6473_p5, %p6761_p8  ;;  %p6482_p11 = por %p6481_p10, %p6480_p3 }
  0x90   : > { %p6476_p9 = pneg %p6475_p7 }
  0x92   : > { %p6483_p12 = pnand %p6482_p11, %p6476_p9 }
  0x94   : > { %6486 = shalt.err (!%p6483_p12)
}
  0x95   : > { %s6635_s15 = smov 128   ;;  %s6636_s16 = smov 8  }
  0x96   : > { %6012 = dma.hbm_to_vmem [thread:$0]  (!%p6745_p6), %s8123_s8, 8192, %s326_s0, [#allocation18], %s6635_s15, %s6635_s15, %s6636_s16  }
  0x97   : > { %s6637_s27 = smov [#allocation20]   ;;  %s6487_s30 = scalar_lea.hbm %s8124_s9, 16 }
  0x98   : > { %s339_s23 = sshll.u32 %s6637_s27, 4  ;;  %p6488_p13 = scmp.ne.s32.totalorder %s8124_s9, %s6487_s30  ;;  %s340_s23 = int_to_ptr.vmem [resolvable:$true] %s339_s23 }
  0x99   : > { %p6494_p4 = scmp.lt.u32.totalorder %s6487_s30, %s8124_s9 }
  0x9a   : > { %p6490_p0 = pnand %p6488_p13, %p6761_p8 }
  0x9c   : > { %p6491_p1 = pneg %p6490_p0 }
  0x9e   : > { %p6496_p2 = pnand %p6494_p4, %p6491_p1 }
  0xa0   : > { %6499 = shalt.err (!%p6496_p2)
}
  0xa1   : > { %s6500_s0 = scalar_lea.vmem %s340_s23, 16  ;;  %s6507_s15 = scalar_lea.vmem %s340_s23, 32 }
  0xa2   : > { %p6501_p5 = scmp.ne.s32.totalorder %s340_s23, %s6500_s0  ;;  %p6508_p3 = scmp.lt.s32.totalorder %s340_s23, %s340_s23 }
  0xa3   : > { %p6509_p10 = scmp.lt.s32.totalorder %s6507_s15, %s6500_s0 }
  0xa4   : > { %p6503_p7 = pnand %p6501_p5, %p6761_p8 }
  0xa5   : > { %p6510_p11 = por %p6509_p10, %p6508_p3 }
  0xa6   : > { %p6504_p9 = pneg %p6503_p7 }
  0xa8   : > { %p6511_p12 = pnand %p6510_p11, %p6504_p9 }
  0xaa   : > { %6514 = shalt.err (!%p6511_p12)
}
  0xab   : > { %6015 = dma.hbm_to_vmem [thread:$0]  (!%p6745_p6), %s8124_s9, 16, %s340_s23, [#allocation21]  }
  0xac   : > { %s6901_s13 = sadd.s32 1, %s6625_s20   ;;  %s38_s24 = sadd.s32 1, %s6621_s19 }
  0xad   : > { %s35_s25 = ssub.s32 %s6625_s20, %s6901_s13  ;;  %p45_p13 = scmp.ne.s32.totalorder %s6621_s19, %s6617_s18 }
  0xae   : > { %p36_p8 = scmp.eq.s32.totalorder %s35_s25, 0  ;;  %p46_p0 = scmp.eq.s32.totalorder %s6625_s20, 0 }
  0xaf   : > { %p51_p1 = scmp.ne.s32.totalorder %s6617_s18, %s6613_s17  ;;  %p8187_p2 = scmp.eq.s32.totalorder %s6729_s21, 0 }
  0xb0   : > { %s6912_s27 = scalar_select %p36_p8, %s6621_s19, %s38_s24  }
  0xb1   : > { %p47_p4 = por %p46_p0, %p45_p13  ;;  %p6916_p5 = por %p8187_p2, %p51_p1 }
  0xb2   : > { %p6027_p7 = scmp.lt.s32.totalorder %s6625_s20, 2  ;;  %s350_s28 = sand.u32 1, %s6621_s19  }
  0xb3   : > { %s4619_s23 = sshll.u32 %s350_s28, 10  ;;  %s4673_s30 = sshll.u32 %s6625_s20, 14 }
  0xb4   : > { %s6926_s14 = scalar_lea.hbm %s8116_s1, %s4673_s30  ;;  %s354_s17 = scalar_lea.vmem [#allocation8], %s4619_s23 }
  0xb5   : > { %s362_s29 = sshll.u32 %s354_s17, 4  ;;  %p6930_p6 = pnand %p6027_p7, %p47_p4  ;;  %s6928_s29 = int_to_ptr.vmem [resolvable:$true] %s362_s29 }
  0xb6   : > { %s6934_s20 = scalar_lea.sflag [#allocation9], %s350_s28  ;;  %s6515_s15 = scalar_lea.hbm %s6926_s14, 16384 }
  0xb7   : > { %p6516_p9 = scmp.ne.s32.totalorder %s6926_s14, %s6515_s15  ;;  %p6517_p3 = pneg %p6930_p6 }
  0xb8   : > { %s6520_s25 = scalar_lea.hbm %s8116_s1, 32768  ;;  %p6521_p12 = scmp.lt.u32.totalorder %s6926_s14, %s8116_s1 }
  0xb9   : > { %p6518_p10 = pnand %p6517_p3, %p6516_p9  ;;  %p6522_p8 = scmp.lt.u32.totalorder %s6520_s25, %s6515_s15 }
  0xba   : > { %p6524_p0 = scmp.lt.u32.totalorder %s6515_s15, %s6926_s14 }
  0xbb   : > { %p6519_p11 = pneg %p6518_p10  ;;  %p6523_p13 = por %p6522_p8, %p6521_p12 }
  0xbd   : > { %p6525_p1 = por %p6524_p0, %p6523_p13 }
  0xbf   : > { %p6526_p4 = pnand %p6525_p1, %p6519_p11 }
  0xc1   : > { %6529 = shalt.err (!%p6526_p4)
}
  0xc2   : > { %s6530_s28 = scalar_lea.vmem %s6928_s29, 16384  ;;  %s6638_s30 = smov [#allocation8]  }
  0xc3   : > { %p6531_p2 = scmp.ne.s32.totalorder %s6928_s29, %s6530_s28  ;;  %s6535_s11 = sshll.u32 %s6638_s30, 4  ;;  %s6536_s11 = int_to_ptr.vmem [resolvable:$false] %s6535_s11 }
  0xc4   : > { %s6537_s12 = scalar_lea.vmem %s6536_s11, 32768  ;;  %p6538_p10 = scmp.lt.s32.totalorder %s6928_s29, %s6536_s11 }
  0xc5   : > { %p6533_p7 = pnand %p6531_p2, %p6517_p3  ;;  %p6539_p12 = scmp.lt.s32.totalorder %s6537_s12, %s6530_s28 }
  0xc7   : > { %p6534_p9 = pneg %p6533_p7  ;;  %p6540_p8 = por %p6539_p12, %p6538_p10 }
  0xc9   : > { %p6541_p13 = pnand %p6540_p8, %p6534_p9 }
  0xcb   : > { %6544 = shalt.err (!%p6541_p13)
}
  0xcc   : > { %s6639_s17 = smov 1024   ;;  %s6640_s15 = smov 64  }
  0xcd   : > { %6019 = dma.hbm_to_vmem [thread:$0]  (!%p6930_p6), %s6926_s14, 16384, %s6928_s29, %s6934_s20, %s6639_s17, %s6639_s17, %s6640_s15  }
  0xce   : > { %p8190_p3 = scmp.ne.s32.totalorder %s8184_s22, 0 }
  0xd0   : > { %374 = sbr.rel (%p8190_p3) target bundleno = 1870 (0x74e), region = 56 }
  0xd7   : > { %s376_s16 = sand.u32 1, %s6617_s18  }
  0xd8   : > { %s4624_s26 = sshll.u32 %s376_s16, 10  ;;  %s377_s25 = scalar_lea.sflag [#allocation9], %s376_s16 }
  0xd9   : > { %s6965_s24 = scalar_lea.vmem [#allocation8], %s4624_s26 }
  0xda   : > { %6588 = dma.done.wait (%p6916_p5), %s377_s25, 16384  }
  0xdb   : > { %6590 = vsyncadd (%p6916_p5), %s377_s25, 4294950912  ;;  %p8191_p11 = scmp.eq.s32.totalorder %s6729_s21, 0 }
  0xdd   : > { %6592 = dma.done.wait (%p8191_p11), [#allocation12], 65600   ;;  %p8192_p6 = pmov %p8191_p11 }
  0xdf   : > { %6594 = vsyncadd (%p8192_p6), [#allocation12], 4294901696  ;;  %p8193_p0 = pmov %p8192_p6 }
  0xe1   : > { %6596 = dma.done.wait (%p8193_p0), [#allocation15], 32832   ;;  %p8194_p1 = pmov %p8193_p0 }
  0xe2   : > { %p8195_p4 = pmov %p8193_p0 }
  0xe3   : > { %6598 = vsyncadd (%p8194_p1), [#allocation15], 4294934464 }
  0xe4   : > { %6600 = dma.done.wait (%p8195_p4), [#allocation18], 8224   ;;  %p8196_p2 = pmov %p8193_p0 }
  0xe5   : > { %p8197_p5 = pmov %p8193_p0 }
  0xe6   : > { %6602 = vsyncadd (%p8196_p2), [#allocation18], 4294959072 }
  0xe7   : > { %6604 = dma.done.wait (%p8197_p5), [#allocation21], 16   ;;  %p8198_p7 = pmov %p8193_p0 }
  0xe8   : > { %p8199_p9 = scmp.ne.s32.totalorder %s6729_s21, 0 }
  0xe9   : > { %6606 = vsyncadd (%p8198_p7), [#allocation21], 4294967280  ;;  %vm443_vm0 = vcmask (!%p8199_p9), 0   ;;  %v446_v1 = vlaneseq (!%p8199_p9)  ;;  %v6641_v2 = vmov (!%p8199_p9), -inf   ;;  %v6642_v3 = vmov (!%p8199_p9), 0.0  }
  0xea   : > { %442 = sbr.rel (%p8199_p9) target bundleno = 241 (0xf1), region = 92  ;;  %444 = vst.msk [vmem:[#allocation2] sm:$0x1] (!%p8199_p9), %vm443_vm0, %v6641_v2  ;;  %445 = vst.msk [vmem:[#allocation3] sm:$0x1] (!%p8199_p9), %vm443_vm0, %v6642_v3 }
  0xeb   : > { %vm448_vm1 = vcmp.lt.s32.totalorder (!%p8199_p9), %v446_v1, 512 }
  0xec   : > { %450 = vst.msk [vmem:[#allocation4] sm:$0xf] (!%p8199_p9), %vm448_vm1, %v6642_v3 }
  0xf1 PF: > { %v580_v4 = vld [vmem:[#allocation11 + $0x8] sm:$0xff]  ;;  %v582_v6 = vld [vmem:[#allocation11 + $0x18] sm:$0xff]  ;;  %v579_v9 = vld [vmem:[#allocation11] sm:$0xff]  ;;  %s3793_s22 = sld [smem:[#allocation6]]  ;;  %s4666_s7 = sshll.u32 %s6729_s21, 7  ;;  %vm3828_vm3 = vcmask 7168  }
  0xf2   : > { %v584_v5 = vld [vmem:[#allocation11 + $0x28] sm:$0xff]  ;;  %v586_v8 = vld [vmem:[#allocation11 + $0x38] sm:$0xff]  ;;  %v583_v10 = vld [vmem:[#allocation11 + $0x20] sm:$0xff]  ;;  %p4667_p10 = scmp.ne.s32.totalorder %s6729_s21, 1 }
  0xf3   : > { %v4744_v7 = vpack.c.bf16 %v584_v5, %v580_v4  ;;  %v5000_v11 = vpack.c.bf16 %v586_v8, %v582_v6  ;;  %v4746_v12 = vpack.c.bf16 %v583_v10, %v579_v9  ;;  %v581_v13 = vld [vmem:[#allocation11 + $0x10] sm:$0xff]  ;;  %v588_v15 = vld [vmem:[#allocation11 + $0x48] sm:$0xff]  ;;  %v590_v18 = vld [vmem:[#allocation11 + $0x58] sm:$0xff] }
  0xf4   : > { %v585_v14 = vld [vmem:[#allocation11 + $0x30] sm:$0xff]  ;;  %v592_v17 = vld [vmem:[#allocation11 + $0x68] sm:$0xff]  ;;  %v594_v19 = vld [vmem:[#allocation11 + $0x78] sm:$0xff] }
  0xf5   : > { %4745 = vmatprep.subr.bf16.mxu0 %v4744_v7  ;;  %v5002_v16 = vpack.c.bf16 %v585_v14, %v581_v13  ;;  %5001 = vmatprep.subr.bf16.mxu1 %v5000_v11  ;;  %v4748_v20 = vpack.c.bf16 %v592_v17, %v588_v15  ;;  %v5004_v21 = vpack.c.bf16 %v594_v19, %v590_v18  ;;  %v587_v22 = vld [vmem:[#allocation11 + $0x40] sm:$0xff]  ;;  %v589_v24 = vld [vmem:[#allocation11 + $0x50] sm:$0xff]  ;;  %v596_v27 = vld [vmem:[#allocation11 + $0x88] sm:$0xff] }
  0xf6   : > { %4747 = vmatpush1.bf16.msra.mxu0 %v4746_v12  ;;  %v591_v23 = vld [vmem:[#allocation11 + $0x60] sm:$0xff]  ;;  %v593_v26 = vld [vmem:[#allocation11 + $0x70] sm:$0xff]  ;;  %v600_v28 = vld [vmem:[#allocation11 + $0xa8] sm:$0xff] }
  0xf7   : > { %5003 = vmatpush1.bf16.msra.mxu1 %v5002_v16  ;;  %v4750_v25 = vpack.c.bf16 %v591_v23, %v587_v22  ;;  %4749 = vmatprep.subr.bf16.mxu0 %v4748_v20  ;;  %v5006_v29 = vpack.c.bf16 %v593_v26, %v589_v24  ;;  %v4752_v30 = vpack.c.bf16 %v600_v28, %v596_v27  ;;  %v598_v31 = vld [vmem:[#allocation11 + $0x98] sm:$0xff]  ;;  %v595_v33 = vld [vmem:[#allocation11 + $0x80] sm:$0xff]  ;;  %v597_v36 = vld [vmem:[#allocation11 + $0x90] sm:$0xff] }
  0xf8   : > { %5005 = vmatprep.subr.bf16.mxu1 %v5004_v21  ;;  %v602_v32 = vld [vmem:[#allocation11 + $0xb8] sm:$0xff]  ;;  %v599_v35 = vld [vmem:[#allocation11 + $0xa0] sm:$0xff]  ;;  %v601_v37 = vld [vmem:[#allocation11 + $0xb0] sm:$0xff] }
  0xf9   : > { %v5008_v34 = vpack.c.bf16 %v602_v32, %v598_v31  ;;  %v4754_v38 = vpack.c.bf16 %v599_v35, %v595_v33  ;;  %v604_v39 = vld [vmem:[#allocation11 + $0xc8] sm:$0xff]  ;;  %v606_v41 = vld [vmem:[#allocation11 + $0xd8] sm:$0xff]  ;;  %v5010_v42 = vpack.c.bf16 %v601_v37, %v597_v36  ;;  %v603_v45 = vld [vmem:[#allocation11 + $0xc0] sm:$0xff] }
  0xfa   : > { %4751 = vmatpush1.bf16.msra.mxu0 %v4750_v25  ;;  %v608_v40 = vld [vmem:[#allocation11 + $0xe8] sm:$0xff]  ;;  %v610_v44 = vld [vmem:[#allocation11 + $0xf8] sm:$0xff]  ;;  %v607_v46 = vld [vmem:[#allocation11 + $0xe0] sm:$0xff] }
  0xfb   : > { %5007 = vmatpush1.bf16.msra.mxu1 %v5006_v29  ;;  %4753 = vmatprep.subr.bf16.mxu0 %v4752_v30  ;;  %v4756_v43 = vpack.c.bf16 %v608_v40, %v604_v39  ;;  %v5012_v47 = vpack.c.bf16 %v610_v44, %v606_v41  ;;  %v605_v48 = vld [vmem:[#allocation11 + $0xd0] sm:$0xff]  ;;  %v612_v50 = vld [vmem:[#allocation11 + $0x108] sm:$0xff]  ;;  %v614_v52 = vld [vmem:[#allocation11 + $0x118] sm:$0xff]  ;;  %v4758_v54 = vpack.c.bf16 %v607_v46, %v603_v45 }
  0xfc   : > { %5009 = vmatprep.subr.bf16.mxu1 %v5008_v34  ;;  %v609_v49 = vld [vmem:[#allocation11 + $0xf0] sm:$0xff]  ;;  %v616_v51 = vld [vmem:[#allocation11 + $0x128] sm:$0xff]  ;;  %v618_v53 = vld [vmem:[#allocation11 + $0x138] sm:$0xff] }
  0xfd   : > { %v5014_v55 = vpack.c.bf16 %v609_v49, %v605_v48  ;;  %v4760_v56 = vpack.c.bf16 %v616_v51, %v612_v50  ;;  %v611_v57 = vld [vmem:[#allocation11 + $0x100] sm:$0xff]  ;;  %v613_v59 = vld [vmem:[#allocation11 + $0x110] sm:$0xff]  ;;  %v5016_v60 = vpack.c.bf16 %v618_v53, %v614_v52  ;;  %v620_v62 = vld [vmem:[#allocation11 + $0x148] sm:$0xff] }
  0xfe   : > { %4755 = vmatpush1.bf16.msra.mxu0 %v4754_v38  ;;  %v615_v58 = vld [vmem:[#allocation11 + $0x120] sm:$0xff]  ;;  %v617_v61 = vld [vmem:[#allocation11 + $0x130] sm:$0xff]  ;;  %v624_v63 = vld [vmem:[#allocation11 + $0x168] sm:$0xff] }
  0xff   : > { %5011 = vmatpush1.bf16.msra.mxu1 %v5010_v42  ;;  %4757 = vmatprep.subr.bf16.mxu0 %v4756_v43  ;;  %v622_v0 = vld [vmem:[#allocation11 + $0x158] sm:$0xff]  ;;  %v4762_v2 = vpack.c.bf16 %v615_v58, %v611_v57  ;;  %v5018_v3 = vpack.c.bf16 %v617_v61, %v613_v59  ;;  %v4764_v4 = vpack.c.bf16 %v624_v63, %v620_v62  ;;  %v619_v5 = vld [vmem:[#allocation11 + $0x140] sm:$0xff]  ;;  %v621_v7 = vld [vmem:[#allocation11 + $0x150] sm:$0xff] }
 0x100   : > { %5013 = vmatprep.subr.bf16.mxu1 %v5012_v47  ;;  %v626_v1 = vld [vmem:[#allocation11 + $0x178] sm:$0xff]  ;;  %v623_v6 = vld [vmem:[#allocation11 + $0x160] sm:$0xff]  ;;  %v625_v9 = vld [vmem:[#allocation11 + $0x170] sm:$0xff] }
 0x101   : > { %v5020_v8 = vpack.c.bf16 %v626_v1, %v622_v0  ;;  %v628_v10 = vld [vmem:[#allocation11 + $0x188] sm:$0xff]  ;;  %v630_v12 = vld [vmem:[#allocation11 + $0x198] sm:$0xff]  ;;  %v4766_v14 = vpack.c.bf16 %v623_v6, %v619_v5  ;;  %v5022_v15 = vpack.c.bf16 %v625_v9, %v621_v7  ;;  %v627_v17 = vld [vmem:[#allocation11 + $0x180] sm:$0xff] }
 0x102   : > { %4759 = vmatpush1.bf16.msra.mxu0 %v4758_v54  ;;  %v632_v11 = vld [vmem:[#allocation11 + $0x1a8] sm:$0xff]  ;;  %v634_v13 = vld [vmem:[#allocation11 + $0x1b8] sm:$0xff]  ;;  %v631_v18 = vld [vmem:[#allocation11 + $0x1a0] sm:$0xff] }
 0x103   : > { %5015 = vmatpush1.bf16.msra.mxu1 %v5014_v55  ;;  %4761 = vmatprep.subr.bf16.mxu0 %v4760_v56  ;;  %v4768_v16 = vpack.c.bf16 %v632_v11, %v628_v10  ;;  %v629_v19 = vld [vmem:[#allocation11 + $0x190] sm:$0xff]  ;;  %v5024_v20 = vpack.c.bf16 %v634_v13, %v630_v12  ;;  %v636_v22 = vld [vmem:[#allocation11 + $0x1c8] sm:$0xff]  ;;  %v638_v24 = vld [vmem:[#allocation11 + $0x1d8] sm:$0xff]  ;;  %v4770_v26 = vpack.c.bf16 %v631_v18, %v627_v17 }
 0x104   : > { %5017 = vmatprep.subr.bf16.mxu1 %v5016_v60  ;;  %v633_v21 = vld [vmem:[#allocation11 + $0x1b0] sm:$0xff]  ;;  %v640_v23 = vld [vmem:[#allocation11 + $0x1e8] sm:$0xff]  ;;  %v642_v25 = vld [vmem:[#allocation11 + $0x1f8] sm:$0xff] }
 0x105   : > { %v5026_v27 = vpack.c.bf16 %v633_v21, %v629_v19  ;;  %v4772_v28 = vpack.c.bf16 %v640_v23, %v636_v22  ;;  %v635_v29 = vld [vmem:[#allocation11 + $0x1c0] sm:$0xff]  ;;  %v637_v31 = vld [vmem:[#allocation11 + $0x1d0] sm:$0xff]  ;;  %v5028_v32 = vpack.c.bf16 %v642_v25, %v638_v24  ;;  %v644_v34 = vld [vmem:[#allocation11 + $0x208] sm:$0xff] }
 0x106   : > { %4763 = vmatpush1.bf16.msra.mxu0 %v4762_v2  ;;  %v639_v30 = vld [vmem:[#allocation11 + $0x1e0] sm:$0xff]  ;;  %v641_v33 = vld [vmem:[#allocation11 + $0x1f0] sm:$0xff]  ;;  %v648_v35 = vld [vmem:[#allocation11 + $0x228] sm:$0xff] }
 0x107   : > { %5019 = vmatpush1.bf16.msra.mxu1 %v5018_v3  ;;  %4765 = vmatprep.subr.bf16.mxu0 %v4764_v4  ;;  %v646_v36 = vld [vmem:[#allocation11 + $0x218] sm:$0xff]  ;;  %v4774_v38 = vpack.c.bf16 %v639_v30, %v635_v29  ;;  %v5030_v39 = vpack.c.bf16 %v641_v33, %v637_v31  ;;  %v4776_v40 = vpack.c.bf16 %v648_v35, %v644_v34  ;;  %v643_v41 = vld [vmem:[#allocation11 + $0x200] sm:$0xff]  ;;  %v645_v43 = vld [vmem:[#allocation11 + $0x210] sm:$0xff] }
 0x108   : > { %5021 = vmatprep.subr.bf16.mxu1 %v5020_v8  ;;  %v650_v37 = vld [vmem:[#allocation11 + $0x238] sm:$0xff]  ;;  %v647_v42 = vld [vmem:[#allocation11 + $0x220] sm:$0xff]  ;;  %v649_v45 = vld [vmem:[#allocation11 + $0x230] sm:$0xff] }
 0x109   : > { %v5032_v44 = vpack.c.bf16 %v650_v37, %v646_v36  ;;  %v652_v46 = vld [vmem:[#allocation11 + $0x248] sm:$0xff]  ;;  %v654_v48 = vld [vmem:[#allocation11 + $0x258] sm:$0xff]  ;;  %v4778_v50 = vpack.c.bf16 %v647_v42, %v643_v41  ;;  %v5034_v51 = vpack.c.bf16 %v649_v45, %v645_v43  ;;  %v651_v53 = vld [vmem:[#allocation11 + $0x240] sm:$0xff] }
 0x10a   : > { %4767 = vmatpush1.bf16.msra.mxu0 %v4766_v14  ;;  %v656_v47 = vld [vmem:[#allocation11 + $0x268] sm:$0xff]  ;;  %v658_v49 = vld [vmem:[#allocation11 + $0x278] sm:$0xff]  ;;  %v655_v54 = vld [vmem:[#allocation11 + $0x260] sm:$0xff] }
 0x10b   : > { %5023 = vmatpush1.bf16.msra.mxu1 %v5022_v15  ;;  %4769 = vmatprep.subr.bf16.mxu0 %v4768_v16  ;;  %v4780_v52 = vpack.c.bf16 %v656_v47, %v652_v46  ;;  %v653_v55 = vld [vmem:[#allocation11 + $0x250] sm:$0xff]  ;;  %v5036_v56 = vpack.c.bf16 %v658_v49, %v654_v48  ;;  %v660_v58 = vld [vmem:[#allocation11 + $0x288] sm:$0xff]  ;;  %v662_v60 = vld [vmem:[#allocation11 + $0x298] sm:$0xff]  ;;  %v4782_v62 = vpack.c.bf16 %v655_v54, %v651_v53 }
 0x10c   : > { %5025 = vmatprep.subr.bf16.mxu1 %v5024_v20  ;;  %v657_v57 = vld [vmem:[#allocation11 + $0x270] sm:$0xff]  ;;  %v664_v59 = vld [vmem:[#allocation11 + $0x2a8] sm:$0xff]  ;;  %v666_v61 = vld [vmem:[#allocation11 + $0x2b8] sm:$0xff] }
 0x10d   : > { %v5038_v63 = vpack.c.bf16 %v657_v57, %v653_v55  ;;  %v4784_v0 = vpack.c.bf16 %v664_v59, %v660_v58  ;;  %v659_v1 = vld [vmem:[#allocation11 + $0x280] sm:$0xff]  ;;  %v661_v3 = vld [vmem:[#allocation11 + $0x290] sm:$0xff]  ;;  %v5040_v4 = vpack.c.bf16 %v666_v61, %v662_v60  ;;  %v668_v6 = vld [vmem:[#allocation11 + $0x2c8] sm:$0xff] }
 0x10e   : > { %4771 = vmatpush1.bf16.msra.mxu0 %v4770_v26  ;;  %v663_v2 = vld [vmem:[#allocation11 + $0x2a0] sm:$0xff]  ;;  %v665_v5 = vld [vmem:[#allocation11 + $0x2b0] sm:$0xff]  ;;  %v672_v7 = vld [vmem:[#allocation11 + $0x2e8] sm:$0xff] }
 0x10f   : > { %5027 = vmatpush1.bf16.msra.mxu1 %v5026_v27  ;;  %4773 = vmatprep.subr.bf16.mxu0 %v4772_v28  ;;  %v670_v8 = vld [vmem:[#allocation11 + $0x2d8] sm:$0xff]  ;;  %v4786_v10 = vpack.c.bf16 %v663_v2, %v659_v1  ;;  %v667_v11 = vld [vmem:[#allocation11 + $0x2c0] sm:$0xff]  ;;  %v5042_v12 = vpack.c.bf16 %v665_v5, %v661_v3  ;;  %v4788_v13 = vpack.c.bf16 %v672_v7, %v668_v6  ;;  %v669_v15 = vld [vmem:[#allocation11 + $0x2d0] sm:$0xff] }
 0x110   : > { %5029 = vmatprep.subr.bf16.mxu1 %v5028_v32  ;;  %v674_v9 = vld [vmem:[#allocation11 + $0x2f8] sm:$0xff]  ;;  %v671_v14 = vld [vmem:[#allocation11 + $0x2e0] sm:$0xff]  ;;  %v673_v16 = vld [vmem:[#allocation11 + $0x2f0] sm:$0xff] }
 0x111   : > { %v5044_v17 = vpack.c.bf16 %v674_v9, %v670_v8  ;;  %v676_v18 = vld [vmem:[#allocation11 + $0x308] sm:$0xff]  ;;  %v678_v21 = vld [vmem:[#allocation11 + $0x318] sm:$0xff]  ;;  %v4790_v23 = vpack.c.bf16 %v671_v14, %v667_v11  ;;  %v5046_v24 = vpack.c.bf16 %v673_v16, %v669_v15  ;;  %v675_v26 = vld [vmem:[#allocation11 + $0x300] sm:$0xff] }
 0x112   : > { %4775 = vmatpush1.bf16.msra.mxu0 %v4774_v38  ;;  %v680_v19 = vld [vmem:[#allocation11 + $0x328] sm:$0xff]  ;;  %v682_v22 = vld [vmem:[#allocation11 + $0x338] sm:$0xff]  ;;  %v679_v27 = vld [vmem:[#allocation11 + $0x320] sm:$0xff] }
 0x113   : > { %5031 = vmatpush1.bf16.msra.mxu1 %v5030_v39  ;;  %4777 = vmatprep.subr.bf16.mxu0 %v4776_v40  ;;  %v452_v20 = vld [vmem:[%s6965_s24 + $0x8] sm:$0xff]  ;;  %v4792_v25 = vpack.c.bf16 %v680_v19, %v676_v18  ;;  %v677_v28 = vld [vmem:[#allocation11 + $0x310] sm:$0xff]  ;;  %v5048_v29 = vpack.c.bf16 %v682_v22, %v678_v21  ;;  %v686_v33 = vld [vmem:[#allocation11 + $0x358] sm:$0xff]  ;;  %v4794_v35 = vpack.c.bf16 %v679_v27, %v675_v26 }
 0x114   : > { %5033 = vmatprep.subr.bf16.mxu1 %v5032_v44  ;;  %1177 = vmatprep.mubr.f32.mxu0 %v452_v20  ;;  %v681_v30 = vld [vmem:[#allocation11 + $0x330] sm:$0xff]  ;;  %v684_v31 = vld [vmem:[#allocation11 + $0x348] sm:$0xff]  ;;  %v690_v34 = vld [vmem:[#allocation11 + $0x378] sm:$0xff] }
 0x115   : > { %1821 = vmatprep.mubr.f32.mxu1 %v452_v20  ;;  %v688_v32 = vld [vmem:[#allocation11 + $0x368] sm:$0xff]  ;;  %v5050_v36 = vpack.c.bf16 %v681_v30, %v677_v28  ;;  %v683_v38 = vld [vmem:[#allocation11 + $0x340] sm:$0xff]  ;;  %v685_v40 = vld [vmem:[#allocation11 + $0x350] sm:$0xff]  ;;  %v5052_v41 = vpack.c.bf16 %v690_v34, %v686_v33 }
 0x116   : > { %4779 = vmatpush1.bf16.msra.mxu0 %v4778_v50  ;;  %v4796_v37 = vpack.c.bf16 %v688_v32, %v684_v31  ;;  %v687_v39 = vld [vmem:[#allocation11 + $0x360] sm:$0xff]  ;;  %v689_v42 = vld [vmem:[#allocation11 + $0x370] sm:$0xff]  ;;  %v692_v43 = vld [vmem:[#allocation11 + $0x388] sm:$0xff] }
 0x117   : > { %5035 = vmatpush1.bf16.msra.mxu1 %v5034_v51  ;;  %4781 = vmatprep.subr.bf16.mxu0 %v4780_v52  ;;  %v696_v44 = vld [vmem:[#allocation11 + $0x3a8] sm:$0xff]  ;;  %v694_v45 = vld [vmem:[#allocation11 + $0x398] sm:$0xff]  ;;  %v4798_v47 = vpack.c.bf16 %v687_v39, %v683_v38  ;;  %v5054_v48 = vpack.c.bf16 %v689_v42, %v685_v40  ;;  %v691_v50 = vld [vmem:[#allocation11 + $0x380] sm:$0xff] }
 0x118   : > { %5037 = vmatprep.subr.bf16.mxu1 %v5036_v56  ;;  %v698_v46 = vld [vmem:[#allocation11 + $0x3b8] sm:$0xff]  ;;  %v4800_v49 = vpack.c.bf16 %v696_v44, %v692_v43  ;;  %v695_v51 = vld [vmem:[#allocation11 + $0x3a0] sm:$0xff]  ;;  %v693_v52 = vld [vmem:[#allocation11 + $0x390] sm:$0xff] }
 0x119   : > { %v5056_v53 = vpack.c.bf16 %v698_v46, %v694_v45  ;;  %v697_v54 = vld [vmem:[#allocation11 + $0x3b0] sm:$0xff]  ;;  %v700_v55 = vld [vmem:[#allocation11 + $0x3c8] sm:$0xff]  ;;  %v702_v57 = vld [vmem:[#allocation11 + $0x3d8] sm:$0xff]  ;;  %v4802_v59 = vpack.c.bf16 %v695_v51, %v691_v50 }
 0x11a   : > { %4783 = vmatpush1.bf16.msra.mxu0 %v4782_v62  ;;  %v704_v56 = vld [vmem:[#allocation11 + $0x3e8] sm:$0xff]  ;;  %v706_v58 = vld [vmem:[#allocation11 + $0x3f8] sm:$0xff]  ;;  %v5058_v60 = vpack.c.bf16 %v697_v54, %v693_v52  ;;  %v699_v62 = vld [vmem:[#allocation11 + $0x3c0] sm:$0xff] }
 0x11b   : > { %5039 = vmatpush1.bf16.msra.mxu1 %v5038_v63  ;;  %4785 = vmatprep.subr.bf16.mxu0 %v4784_v0  ;;  %v4804_v61 = vpack.c.bf16 %v704_v56, %v700_v55  ;;  %v703_v63 = vld [vmem:[#allocation11 + $0x3e0] sm:$0xff]  ;;  %v701_v0 = vld [vmem:[#allocation11 + $0x3d0] sm:$0xff]  ;;  %v5060_v1 = vpack.c.bf16 %v706_v58, %v702_v57  ;;  %v708_v3 = vld [vmem:[#allocation11 + $0x408] sm:$0xff] }
 0x11c   : > { %5041 = vmatprep.subr.bf16.mxu1 %v5040_v4  ;;  %v705_v2 = vld [vmem:[#allocation11 + $0x3f0] sm:$0xff]  ;;  %v712_v4 = vld [vmem:[#allocation11 + $0x428] sm:$0xff]  ;;  %v710_v5 = vld [vmem:[#allocation11 + $0x418] sm:$0xff]  ;;  %v4806_v7 = vpack.c.bf16 %v703_v63, %v699_v62 }
 0x11d   : > { %v714_v6 = vld [vmem:[#allocation11 + $0x438] sm:$0xff]  ;;  %v5062_v8 = vpack.c.bf16 %v705_v2, %v701_v0  ;;  %v4808_v9 = vpack.c.bf16 %v712_v4, %v708_v3  ;;  %v711_v11 = vld [vmem:[#allocation11 + $0x420] sm:$0xff]  ;;  %v713_v14 = vld [vmem:[#allocation11 + $0x430] sm:$0xff] }
 0x11e   : > { %4787 = vmatpush1.bf16.msra.mxu0 %v4786_v10  ;;  %v707_v10 = vld [vmem:[#allocation11 + $0x400] sm:$0xff]  ;;  %v716_v15 = vld [vmem:[#allocation11 + $0x448] sm:$0xff]  ;;  %v718_v19 = vld [vmem:[#allocation11 + $0x458] sm:$0xff] }
 0x11f   : > { %5043 = vmatpush1.bf16.msra.mxu1 %v5042_v12  ;;  %4789 = vmatprep.subr.bf16.mxu0 %v4788_v13  ;;  %v5064_v12 = vpack.c.bf16 %v714_v6, %v710_v5  ;;  %v709_v13 = vld [vmem:[#allocation11 + $0x410] sm:$0xff]  ;;  %v720_v16 = vld [vmem:[#allocation11 + $0x468] sm:$0xff]  ;;  %v4810_v18 = vpack.c.bf16 %v711_v11, %v707_v10  ;;  %v722_v20 = vld [vmem:[#allocation11 + $0x478] sm:$0xff] }
 0x120   : > { %5045 = vmatprep.subr.bf16.mxu1 %v5044_v17  ;;  %v451_v17 = vld [vmem:[%s6965_s24] sm:$0xff]  ;;  %v5066_v21 = vpack.c.bf16 %v713_v14, %v709_v13  ;;  %v717_v26 = vld [vmem:[#allocation11 + $0x450] sm:$0xff]  ;;  %v5068_v28 = vpack.c.bf16 %v722_v20, %v718_v19  ;;  %v728_v30 = vld [vmem:[#allocation11 + $0x4a8] sm:$0xff] }
 0x121   : > { %v715_v22 = vld [vmem:[#allocation11 + $0x440] sm:$0xff]  ;;  %v721_v27 = vld [vmem:[#allocation11 + $0x470] sm:$0xff]  ;;  %v726_v33 = vld [vmem:[#allocation11 + $0x498] sm:$0xff] }
 0x122   : > { %4791 = vmatpush1.bf16.msra.mxu0 %v4790_v23  ;;  %v719_v23 = vld [vmem:[#allocation11 + $0x460] sm:$0xff]  ;;  %v730_v34 = vld [vmem:[#allocation11 + $0x4b8] sm:$0xff]  ;;  %v468_v38 = vld [vmem:[%s6965_s24 + $0x88] sm:$0xff] }
 0x123   : > { %5047 = vmatpush1.bf16.msra.mxu1 %v5046_v24  ;;  %4793 = vmatprep.subr.bf16.mxu0 %v4792_v25  ;;  %v460_v24 = vld [vmem:[%s6965_s24 + $0x48] sm:$0xff]  ;;  %v4812_v25 = vpack.c.bf16 %v720_v16, %v716_v15  ;;  %v459_v31 = vld [vmem:[%s6965_s24 + $0x40] sm:$0xff]  ;;  %v4814_v32 = vpack.c.bf16 %v719_v23, %v715_v22  ;;  %v725_v40 = vld [vmem:[#allocation11 + $0x490] sm:$0xff]  ;;  %v5072_v42 = vpack.c.bf16 %v730_v34, %v726_v33 }
 0x124   : > { %5049 = vmatprep.subr.bf16.mxu1 %v5048_v29  ;;  %v724_v29 = vld [vmem:[#allocation11 + $0x488] sm:$0xff]  ;;  %v467_v45 = vld [vmem:[%s6965_s24 + $0x80] sm:$0xff]  ;;  %v733_v54 = vld [vmem:[#allocation11 + $0x4d0] sm:$0xff] }
 0x125   : > { %v4816_v39 = vpack.c.bf16 %v728_v30, %v724_v29  ;;  %v732_v43 = vld [vmem:[#allocation11 + $0x4c8] sm:$0xff]  ;;  %v731_v50 = vld [vmem:[#allocation11 + $0x4c0] sm:$0xff]  ;;  %v737_v55 = vld [vmem:[#allocation11 + $0x4f0] sm:$0xff] }
 0x126   : > { %4795 = vmatpush1.bf16.msra.mxu0 %v4794_v35  ;;  %v5070_v35 = vpack.c.bf16 %v721_v27, %v717_v26  ;;  %v736_v44 = vld [vmem:[#allocation11 + $0x4e8] sm:$0xff]  ;;  %v735_v51 = vld [vmem:[#allocation11 + $0x4e0] sm:$0xff]  ;;  %v746_v62 = vld [vmem:[#allocation11 + $0x538] sm:$0xff]  ;;  %v5078_v63 = vpack.c.bf16 %v737_v55, %v733_v54 }
 0x127   : > { %5051 = vmatpush1.bf16.msra.mxu1 %v5050_v36  ;;  %4797 = vmatprep.subr.bf16.mxu0 %v4796_v37  ;;  %v723_v36 = vld [vmem:[#allocation11 + $0x480] sm:$0xff]  ;;  %v476_v52 = vld [vmem:[%s6965_s24 + $0xc8] sm:$0xff]  ;;  %v741_v4 = vld [vmem:[#allocation11 + $0x510] sm:$0xff] }
 0x128   : > { %5053 = vmatprep.subr.bf16.mxu1 %v5052_v41  ;;  %v727_v37 = vld [vmem:[#allocation11 + $0x4a0] sm:$0xff]  ;;  %v729_v41 = vld [vmem:[#allocation11 + $0x4b0] sm:$0xff]  ;;  %v740_v57 = vld [vmem:[#allocation11 + $0x508] sm:$0xff] }
 0x129   : > { %v4818_v46 = vpack.c.bf16 %v727_v37, %v723_v36  ;;  %v744_v58 = vld [vmem:[#allocation11 + $0x528] sm:$0xff]  ;;  %v739_v0 = vld [vmem:[#allocation11 + $0x500] sm:$0xff]  ;;  %v745_v5 = vld [vmem:[#allocation11 + $0x530] sm:$0xff] }
 0x12a   : > { %4799 = vmatpush1.bf16.msra.mxu0 %v4798_v47  ;;  %v734_v47 = vld [vmem:[#allocation11 + $0x4d8] sm:$0xff]  ;;  %v484_v2 = vld [vmem:[%s6965_s24 + $0x108] sm:$0xff]  ;;  %v4824_v3 = vpack.c.bf16 %v744_v58, %v740_v57  ;;  %v5082_v13 = vpack.c.bf16 %v745_v5, %v741_v4  ;;  %v747_v14 = vld [vmem:[#allocation11 + $0x540] sm:$0xff] }
 0x12b   : > { %5055 = vmatpush1.bf16.msra.mxu1 %v5054_v48  ;;  %4801 = vmatprep.subr.bf16.mxu0 %v4800_v49  ;;  %v738_v48 = vld [vmem:[#allocation11 + $0x4f8] sm:$0xff]  ;;  %v5074_v49 = vpack.c.bf16 %v729_v41, %v725_v40  ;;  %v751_v15 = vld [vmem:[#allocation11 + $0x560] sm:$0xff]  ;;  %v492_v16 = vld [vmem:[%s6965_s24 + $0x148] sm:$0xff] }
 0x12c   : > { %5057 = vmatprep.subr.bf16.mxu1 %v5056_v53  ;;  %v4820_v53 = vpack.c.bf16 %v736_v44, %v732_v43  ;;  %v5076_v56 = vpack.c.bf16 %v738_v48, %v734_v47  ;;  %v750_v11 = vld [vmem:[#allocation11 + $0x558] sm:$0xff]  ;;  %v753_v19 = vld [vmem:[#allocation11 + $0x570] sm:$0xff]  ;;  %v760_v22 = vld [vmem:[#allocation11 + $0x5a8] sm:$0xff] }
 0x12d   : > { %v491_v23 = vld [vmem:[%s6965_s24 + $0x140] sm:$0xff]  ;;  %v762_v26 = vld [vmem:[#allocation11 + $0x5b8] sm:$0xff]  ;;  %v500_v30 = vld [vmem:[%s6965_s24 + $0x188] sm:$0xff] }
 0x12e   : > { %4803 = vmatpush1.bf16.msra.mxu0 %v4802_v59  ;;  %v475_v59 = vld [vmem:[%s6965_s24 + $0xc0] sm:$0xff]  ;;  %v761_v33 = vld [vmem:[#allocation11 + $0x5b0] sm:$0xff]  ;;  %v768_v36 = vld [vmem:[#allocation11 + $0x5e8] sm:$0xff] }
 0x12f   : > { %5059 = vmatpush1.bf16.msra.mxu1 %v5058_v60  ;;  %4805 = vmatprep.subr.bf16.mxu0 %v4804_v61  ;;  %v4822_v60 = vpack.c.bf16 %v735_v51, %v731_v50  ;;  %v742_v61 = vld [vmem:[#allocation11 + $0x518] sm:$0xff]  ;;  %v759_v29 = vld [vmem:[#allocation11 + $0x5a0] sm:$0xff]  ;;  %v508_v44 = vld [vmem:[%s6965_s24 + $0x1c8] sm:$0xff] }
 0x130   : > { %5061 = vmatprep.subr.bf16.mxu1 %v5060_v1  ;;  %v743_v1 = vld [vmem:[#allocation11 + $0x520] sm:$0xff]  ;;  %v5080_v6 = vpack.c.bf16 %v746_v62, %v742_v61  ;;  %v770_v40 = vld [vmem:[#allocation11 + $0x5f8] sm:$0xff]  ;;  %v769_v47 = vld [vmem:[#allocation11 + $0x5f0] sm:$0xff] }
 0x131   : > { %v4826_v10 = vpack.c.bf16 %v743_v1, %v739_v0  ;;  %v499_v37 = vld [vmem:[%s6965_s24 + $0x180] sm:$0xff]  ;;  %v776_v50 = vld [vmem:[#allocation11 + $0x628] sm:$0xff]  ;;  %v778_v54 = vld [vmem:[#allocation11 + $0x638] sm:$0xff] }
 0x132   : > { %4807 = vmatpush1.bf16.msra.mxu0 %v4806_v7  ;;  %v748_v7 = vld [vmem:[#allocation11 + $0x548] sm:$0xff]  ;;  %v767_v43 = vld [vmem:[#allocation11 + $0x5e0] sm:$0xff]  ;;  %v777_v61 = vld [vmem:[#allocation11 + $0x630] sm:$0xff] }
 0x133   : > { %5063 = vmatpush1.bf16.msra.mxu1 %v5062_v8  ;;  %4809 = vmatprep.subr.bf16.mxu0 %v4808_v9  ;;  %v752_v8 = vld [vmem:[#allocation11 + $0x568] sm:$0xff]  ;;  %v483_v9 = vld [vmem:[%s6965_s24 + $0x100] sm:$0xff]  ;;  %v786_v4 = vld [vmem:[#allocation11 + $0x678] sm:$0xff] }
 0x134   : > { %5065 = vmatprep.subr.bf16.mxu1 %v5064_v12  ;;  %v754_v12 = vld [vmem:[#allocation11 + $0x578] sm:$0xff]  ;;  %v507_v51 = vld [vmem:[%s6965_s24 + $0x1c0] sm:$0xff]  ;;  %v516_v58 = vld [vmem:[%s6965_s24 + $0x208] sm:$0xff] }
 0x135   : > { %1178 = vmatmul.mubr.f32.vlgmr.msra.gmra.mrb[0].mxu0 %v451_v17  ;;  %v5084_v20 = vpack.c.bf16 %v754_v12, %v750_v11  ;;  %v775_v57 = vld [vmem:[#allocation11 + $0x620] sm:$0xff]  ;;  %v784_v0 = vld [vmem:[#allocation11 + $0x668] sm:$0xff]  ;;  %v785_v11 = vld [vmem:[#allocation11 + $0x670] sm:$0xff] }
 0x136   : > { %1822 = vmatmul.mubr.f32.vlgmr.msra.gmra.mrb[0].mxu1 %v451_v17  ;;  %4811 = vmatpush1.bf16.msra.mxu0 %v4810_v18  ;;  %v4828_v17 = vpack.c.bf16 %v752_v8, %v748_v7  ;;  %v749_v18 = vld [vmem:[#allocation11 + $0x550] sm:$0xff]  ;;  %v515_v1 = vld [vmem:[%s6965_s24 + $0x200] sm:$0xff]  ;;  %v524_v8 = vld [vmem:[%s6965_s24 + $0x248] sm:$0xff] }
 0x137   : > { %5067 = vmatpush1.bf16.msra.mxu1 %v5066_v21  ;;  %1183 = vmatprep.mubr.f32.mxu0 %v460_v24  ;;  %v756_v21 = vld [vmem:[#allocation11 + $0x588] sm:$0xff]  ;;  %v5086_v27 = vpack.c.bf16 %v753_v19, %v749_v18  ;;  %v783_v7 = vld [vmem:[#allocation11 + $0x660] sm:$0xff]  ;;  %v794_v18 = vld [vmem:[#allocation11 + $0x6b8] sm:$0xff] }
 0x138   : > { %1827 = vmatprep.mubr.f32.mxu1 %v460_v24  ;;  %4813 = vmatprep.subr.bf16.mxu0 %v4812_v25  ;;  %v4830_v24 = vpack.c.bf16 %v751_v15, %v747_v14  ;;  %v758_v25 = vld [vmem:[#allocation11 + $0x598] sm:$0xff]  ;;  %v792_v14 = vld [vmem:[#allocation11 + $0x6a8] sm:$0xff]  ;;  %v523_v15 = vld [vmem:[%s6965_s24 + $0x240] sm:$0xff] }
 0x139   : > { %1184 = vmatmul.mubr.f32.gmra.mrb[2].mxu0 %v459_v31  ;;  %5069 = vmatprep.subr.bf16.mxu1 %v5068_v28  ;;  %v755_v28 = vld [vmem:[#allocation11 + $0x580] sm:$0xff]  ;;  %v5088_v34 = vpack.c.bf16 %v762_v26, %v758_v25  ;;  %v793_v25 = vld [vmem:[#allocation11 + $0x6b0] sm:$0xff] }
 0x13a   : > { %1828 = vmatmul.mubr.f32.gmra.mrb[2].mxu1 %v459_v31  ;;  %4815 = vmatpush1.bf16.msra.mxu0 %v4814_v32  ;;  %v4832_v31 = vpack.c.bf16 %v760_v22, %v756_v21  ;;  %v757_v32 = vld [vmem:[#allocation11 + $0x590] sm:$0xff]  ;;  %v791_v21 = vld [vmem:[#allocation11 + $0x6a0] sm:$0xff]  ;;  %v532_v22 = vld [vmem:[%s6965_s24 + $0x288] sm:$0xff] }
 0x13b   : > { %5071 = vmatpush1.bf16.msra.mxu1 %v5070_v35  ;;  %1189 = vmatprep.mubr.f32.mxu0 %v468_v38  ;;  %v764_v35 = vld [vmem:[#allocation11 + $0x5c8] sm:$0xff]  ;;  %v5090_v41 = vpack.c.bf16 %v761_v33, %v757_v32  ;;  %v802_v32 = vld [vmem:[#allocation11 + $0x6f8] sm:$0xff] }
 0x13c   : > { %1833 = vmatprep.mubr.f32.mxu1 %v468_v38  ;;  %4817 = vmatprep.subr.bf16.mxu0 %v4816_v39  ;;  %v4834_v38 = vpack.c.bf16 %v759_v29, %v755_v28  ;;  %v766_v39 = vld [vmem:[#allocation11 + $0x5d8] sm:$0xff]  ;;  %v800_v28 = vld [vmem:[#allocation11 + $0x6e8] sm:$0xff]  ;;  %v531_v29 = vld [vmem:[%s6965_s24 + $0x280] sm:$0xff] }
 0x13d   : > { %1190 = vmatmul.mubr.f32.gmra.mrb[4].mxu0 %v467_v45  ;;  %5073 = vmatprep.subr.bf16.mxu1 %v5072_v42  ;;  %v763_v42 = vld [vmem:[#allocation11 + $0x5c0] sm:$0xff]  ;;  %v5092_v48 = vpack.c.bf16 %v770_v40, %v766_v39  ;;  %v801_v39 = vld [vmem:[#allocation11 + $0x6f0] sm:$0xff] }
 0x13e   : > { %1834 = vmatmul.mubr.f32.gmra.mrb[4].mxu1 %v467_v45  ;;  %4819 = vmatpush1.bf16.msra.mxu0 %v4818_v46  ;;  %v4836_v45 = vpack.c.bf16 %v768_v36, %v764_v35  ;;  %v765_v46 = vld [vmem:[#allocation11 + $0x5d0] sm:$0xff]  ;;  %v799_v35 = vld [vmem:[#allocation11 + $0x6e0] sm:$0xff]  ;;  %v540_v36 = vld [vmem:[%s6965_s24 + $0x2c8] sm:$0xff] }
 0x13f   : > { %5075 = vmatpush1.bf16.msra.mxu1 %v5074_v49  ;;  %1195 = vmatprep.mubr.f32.mxu0 %v476_v52  ;;  %v772_v49 = vld [vmem:[#allocation11 + $0x608] sm:$0xff]  ;;  %v5094_v55 = vpack.c.bf16 %v769_v47, %v765_v46  ;;  %v810_v46 = vld [vmem:[#allocation11 + $0x738] sm:$0xff] }
 0x140   : > { %1839 = vmatprep.mubr.f32.mxu1 %v476_v52  ;;  %4821 = vmatprep.subr.bf16.mxu0 %v4820_v53  ;;  %v4838_v52 = vpack.c.bf16 %v767_v43, %v763_v42  ;;  %v774_v53 = vld [vmem:[#allocation11 + $0x618] sm:$0xff]  ;;  %v808_v42 = vld [vmem:[#allocation11 + $0x728] sm:$0xff]  ;;  %v539_v43 = vld [vmem:[%s6965_s24 + $0x2c0] sm:$0xff] }
 0x141   : > { %1196 = vmatmul.mubr.f32.gmra.mrb[6].mxu0 %v475_v59  ;;  %5077 = vmatprep.subr.bf16.mxu1 %v5076_v56  ;;  %v771_v56 = vld [vmem:[#allocation11 + $0x600] sm:$0xff]  ;;  %v5096_v62 = vpack.c.bf16 %v778_v54, %v774_v53  ;;  %v809_v53 = vld [vmem:[#allocation11 + $0x730] sm:$0xff] }
 0x142   : > { %1840 = vmatmul.mubr.f32.gmra.mrb[6].mxu1 %v475_v59  ;;  %4823 = vmatpush1.bf16.msra.mxu0 %v4822_v60  ;;  %v4840_v59 = vpack.c.bf16 %v776_v50, %v772_v49  ;;  %v773_v60 = vld [vmem:[#allocation11 + $0x610] sm:$0xff]  ;;  %v807_v49 = vld [vmem:[#allocation11 + $0x720] sm:$0xff]  ;;  %v548_v50 = vld [vmem:[%s6965_s24 + $0x308] sm:$0xff] }
 0x143   : > { %5079 = vmatpush1.bf16.msra.mxu1 %v5078_v63  ;;  %1201 = vmatprep.mubr.f32.mxu0 %v484_v2  ;;  %v780_v63 = vld [vmem:[#allocation11 + $0x648] sm:$0xff]  ;;  %v5098_v5 = vpack.c.bf16 %v777_v61, %v773_v60  ;;  %v818_v60 = vld [vmem:[#allocation11 + $0x778] sm:$0xff] }
 0x144   : > { %1845 = vmatprep.mubr.f32.mxu1 %v484_v2  ;;  %4825 = vmatprep.subr.bf16.mxu0 %v4824_v3  ;;  %v4842_v2 = vpack.c.bf16 %v775_v57, %v771_v56  ;;  %v782_v3 = vld [vmem:[#allocation11 + $0x658] sm:$0xff]  ;;  %v816_v56 = vld [vmem:[#allocation11 + $0x768] sm:$0xff]  ;;  %v547_v57 = vld [vmem:[%s6965_s24 + $0x300] sm:$0xff] }
 0x145   : > { %1202 = vmatmul.mubr.f32.gmra.mrb[8].mxu0 %v483_v9  ;;  %5081 = vmatprep.subr.bf16.mxu1 %v5080_v6  ;;  %v779_v6 = vld [vmem:[#allocation11 + $0x640] sm:$0xff]  ;;  %v5100_v12 = vpack.c.bf16 %v786_v4, %v782_v3  ;;  %v817_v3 = vld [vmem:[#allocation11 + $0x770] sm:$0xff] }
 0x146   : > { %1846 = vmatmul.mubr.f32.gmra.mrb[8].mxu1 %v483_v9  ;;  %4827 = vmatpush1.bf16.msra.mxu0 %v4826_v10  ;;  %v4844_v9 = vpack.c.bf16 %v784_v0, %v780_v63  ;;  %v781_v10 = vld [vmem:[#allocation11 + $0x650] sm:$0xff]  ;;  %v815_v63 = vld [vmem:[#allocation11 + $0x760] sm:$0xff]  ;;  %v556_v0 = vld [vmem:[%s6965_s24 + $0x348] sm:$0xff] }
 0x147   : > { %5083 = vmatpush1.bf16.msra.mxu1 %v5082_v13  ;;  %1207 = vmatprep.mubr.f32.mxu0 %v492_v16  ;;  %v788_v13 = vld [vmem:[#allocation11 + $0x688] sm:$0xff]  ;;  %v5102_v19 = vpack.c.bf16 %v785_v11, %v781_v10  ;;  %v826_v10 = vld [vmem:[#allocation11 + $0x7b8] sm:$0xff] }
 0x148   : > { %1851 = vmatprep.mubr.f32.mxu1 %v492_v16  ;;  %4829 = vmatprep.subr.bf16.mxu0 %v4828_v17  ;;  %v4846_v16 = vpack.c.bf16 %v783_v7, %v779_v6  ;;  %v790_v17 = vld [vmem:[#allocation11 + $0x698] sm:$0xff]  ;;  %v824_v6 = vld [vmem:[#allocation11 + $0x7a8] sm:$0xff]  ;;  %v555_v7 = vld [vmem:[%s6965_s24 + $0x340] sm:$0xff] }
 0x149   : > { %1208 = vmatmul.mubr.f32.gmra.mrb[10].mxu0 %v491_v23  ;;  %5085 = vmatprep.subr.bf16.mxu1 %v5084_v20  ;;  %v787_v20 = vld [vmem:[#allocation11 + $0x680] sm:$0xff]  ;;  %v5104_v26 = vpack.c.bf16 %v794_v18, %v790_v17  ;;  %v825_v17 = vld [vmem:[#allocation11 + $0x7b0] sm:$0xff] }
 0x14a   : > { %1852 = vmatmul.mubr.f32.gmra.mrb[10].mxu1 %v491_v23  ;;  %4831 = vmatpush1.bf16.msra.mxu0 %v4830_v24  ;;  %v4848_v23 = vpack.c.bf16 %v792_v14, %v788_v13  ;;  %v789_v24 = vld [vmem:[#allocation11 + $0x690] sm:$0xff]  ;;  %v823_v13 = vld [vmem:[#allocation11 + $0x7a0] sm:$0xff]  ;;  %v564_v14 = vld [vmem:[%s6965_s24 + $0x388] sm:$0xff] }
 0x14b   : > { %5087 = vmatpush1.bf16.msra.mxu1 %v5086_v27  ;;  %1213 = vmatprep.mubr.f32.mxu0 %v500_v30  ;;  %v796_v27 = vld [vmem:[#allocation11 + $0x6c8] sm:$0xff]  ;;  %v5106_v33 = vpack.c.bf16 %v793_v25, %v789_v24  ;;  %v834_v24 = vld [vmem:[#allocation11 + $0x7f8] sm:$0xff] }
 0x14c   : > { %1857 = vmatprep.mubr.f32.mxu1 %v500_v30  ;;  %4833 = vmatprep.subr.bf16.mxu0 %v4832_v31  ;;  %v4850_v30 = vpack.c.bf16 %v791_v21, %v787_v20  ;;  %v798_v31 = vld [vmem:[#allocation11 + $0x6d8] sm:$0xff]  ;;  %v832_v20 = vld [vmem:[#allocation11 + $0x7e8] sm:$0xff]  ;;  %v563_v21 = vld [vmem:[%s6965_s24 + $0x380] sm:$0xff] }
 0x14d   : > { %1214 = vmatmul.mubr.f32.gmra.mrb[12].mxu0 %v499_v37  ;;  %5089 = vmatprep.subr.bf16.mxu1 %v5088_v34  ;;  %v795_v34 = vld [vmem:[#allocation11 + $0x6c0] sm:$0xff]  ;;  %v5108_v40 = vpack.c.bf16 %v802_v32, %v798_v31  ;;  %v833_v31 = vld [vmem:[#allocation11 + $0x7f0] sm:$0xff] }
 0x14e   : > { %1858 = vmatmul.mubr.f32.gmra.mrb[12].mxu1 %v499_v37  ;;  %4835 = vmatpush1.bf16.msra.mxu0 %v4834_v38  ;;  %v4852_v37 = vpack.c.bf16 %v800_v28, %v796_v27  ;;  %v797_v38 = vld [vmem:[#allocation11 + $0x6d0] sm:$0xff]  ;;  %v831_v27 = vld [vmem:[#allocation11 + $0x7e0] sm:$0xff]  ;;  %v572_v28 = vld [vmem:[%s6965_s24 + $0x3c8] sm:$0xff] }
 0x14f   : > { %5091 = vmatpush1.bf16.msra.mxu1 %v5090_v41  ;;  %1219 = vmatprep.mubr.f32.mxu0 %v508_v44  ;;  %v804_v41 = vld [vmem:[#allocation11 + $0x708] sm:$0xff]  ;;  %v5110_v47 = vpack.c.bf16 %v801_v39, %v797_v38  ;;  %v842_v38 = vld [vmem:[#allocation11 + $0x838] sm:$0xff] }
 0x150   : > { %1863 = vmatprep.mubr.f32.mxu1 %v508_v44  ;;  %4837 = vmatprep.subr.bf16.mxu0 %v4836_v45  ;;  %v4854_v44 = vpack.c.bf16 %v799_v35, %v795_v34  ;;  %v806_v45 = vld [vmem:[#allocation11 + $0x718] sm:$0xff]  ;;  %v840_v34 = vld [vmem:[#allocation11 + $0x828] sm:$0xff]  ;;  %v571_v35 = vld [vmem:[%s6965_s24 + $0x3c0] sm:$0xff] }
 0x151   : > { %1220 = vmatmul.mubr.f32.gmra.mrb[14].mxu0 %v507_v51  ;;  %5093 = vmatprep.subr.bf16.mxu1 %v5092_v48  ;;  %v803_v48 = vld [vmem:[#allocation11 + $0x700] sm:$0xff]  ;;  %v5112_v54 = vpack.c.bf16 %v810_v46, %v806_v45  ;;  %v841_v45 = vld [vmem:[#allocation11 + $0x830] sm:$0xff] }
 0x152   : > { %1864 = vmatmul.mubr.f32.gmra.mrb[14].mxu1 %v507_v51  ;;  %4839 = vmatpush1.bf16.msra.mxu0 %v4838_v52  ;;  %v4856_v51 = vpack.c.bf16 %v808_v42, %v804_v41  ;;  %v805_v52 = vld [vmem:[#allocation11 + $0x710] sm:$0xff]  ;;  %v839_v41 = vld [vmem:[#allocation11 + $0x820] sm:$0xff]  ;;  %v454_v42 = vld [vmem:[%s6965_s24 + $0x18] sm:$0xff] }
 0x153   : > { %5095 = vmatpush1.bf16.msra.mxu1 %v5094_v55  ;;  %1225 = vmatprep.mubr.f32.mxu0 %v516_v58  ;;  %v812_v55 = vld [vmem:[#allocation11 + $0x748] sm:$0xff]  ;;  %v5114_v61 = vpack.c.bf16 %v809_v53, %v805_v52  ;;  %v850_v52 = vld [vmem:[#allocation11 + $0x878] sm:$0xff] }
 0x154   : > { %1869 = vmatprep.mubr.f32.mxu1 %v516_v58  ;;  %4841 = vmatprep.subr.bf16.mxu0 %v4840_v59  ;;  %v4858_v58 = vpack.c.bf16 %v807_v49, %v803_v48  ;;  %v814_v59 = vld [vmem:[#allocation11 + $0x758] sm:$0xff]  ;;  %v848_v48 = vld [vmem:[#allocation11 + $0x868] sm:$0xff]  ;;  %v453_v49 = vld [vmem:[%s6965_s24 + $0x10] sm:$0xff] }
 0x155   : > { %1226 = vmatmul.mubr.f32.gmra.mrb[16].mxu0 %v515_v1  ;;  %5097 = vmatprep.subr.bf16.mxu1 %v5096_v62  ;;  %v811_v62 = vld [vmem:[#allocation11 + $0x740] sm:$0xff]  ;;  %v5116_v4 = vpack.c.bf16 %v818_v60, %v814_v59  ;;  %v849_v59 = vld [vmem:[#allocation11 + $0x870] sm:$0xff] }
 0x156   : > { %1870 = vmatmul.mubr.f32.gmra.mrb[16].mxu1 %v515_v1  ;;  %4843 = vmatpush1.bf16.msra.mxu0 %v4842_v2  ;;  %v4860_v1 = vpack.c.bf16 %v816_v56, %v812_v55  ;;  %v813_v2 = vld [vmem:[#allocation11 + $0x750] sm:$0xff]  ;;  %v847_v55 = vld [vmem:[#allocation11 + $0x860] sm:$0xff]  ;;  %v462_v56 = vld [vmem:[%s6965_s24 + $0x58] sm:$0xff] }
 0x157   : > { %5099 = vmatpush1.bf16.msra.mxu1 %v5098_v5  ;;  %1231 = vmatprep.mubr.f32.mxu0 %v524_v8  ;;  %v820_v5 = vld [vmem:[#allocation11 + $0x788] sm:$0xff]  ;;  %v5118_v11 = vpack.c.bf16 %v817_v3, %v813_v2  ;;  %v858_v2 = vld [vmem:[#allocation11 + $0x8b8] sm:$0xff] }
 0x158   : > { %1875 = vmatprep.mubr.f32.mxu1 %v524_v8  ;;  %4845 = vmatprep.subr.bf16.mxu0 %v4844_v9  ;;  %v4862_v8 = vpack.c.bf16 %v815_v63, %v811_v62  ;;  %v822_v9 = vld [vmem:[#allocation11 + $0x798] sm:$0xff]  ;;  %v856_v62 = vld [vmem:[#allocation11 + $0x8a8] sm:$0xff]  ;;  %v461_v63 = vld [vmem:[%s6965_s24 + $0x50] sm:$0xff] }
 0x159   : > { %1232 = vmatmul.mubr.f32.gmra.mrb[18].mxu0 %v523_v15  ;;  %5101 = vmatprep.subr.bf16.mxu1 %v5100_v12  ;;  %v819_v12 = vld [vmem:[#allocation11 + $0x780] sm:$0xff]  ;;  %v5120_v18 = vpack.c.bf16 %v826_v10, %v822_v9  ;;  %v857_v9 = vld [vmem:[#allocation11 + $0x8b0] sm:$0xff] }
 0x15a   : > { %1876 = vmatmul.mubr.f32.gmra.mrb[18].mxu1 %v523_v15  ;;  %4847 = vmatpush1.bf16.msra.mxu0 %v4846_v16  ;;  %v4864_v15 = vpack.c.bf16 %v824_v6, %v820_v5  ;;  %v821_v16 = vld [vmem:[#allocation11 + $0x790] sm:$0xff]  ;;  %v855_v5 = vld [vmem:[#allocation11 + $0x8a0] sm:$0xff]  ;;  %v470_v6 = vld [vmem:[%s6965_s24 + $0x98] sm:$0xff] }
 0x15b   : > { %5103 = vmatpush1.bf16.msra.mxu1 %v5102_v19  ;;  %1237 = vmatprep.mubr.f32.mxu0 %v532_v22  ;;  %v828_v19 = vld [vmem:[#allocation11 + $0x7c8] sm:$0xff]  ;;  %v5122_v25 = vpack.c.bf16 %v825_v17, %v821_v16  ;;  %v866_v16 = vld [vmem:[#allocation11 + $0x8f8] sm:$0xff] }
 0x15c   : > { %1881 = vmatprep.mubr.f32.mxu1 %v532_v22  ;;  %4849 = vmatprep.subr.bf16.mxu0 %v4848_v23  ;;  %v4866_v22 = vpack.c.bf16 %v823_v13, %v819_v12  ;;  %v830_v23 = vld [vmem:[#allocation11 + $0x7d8] sm:$0xff]  ;;  %v864_v12 = vld [vmem:[#allocation11 + $0x8e8] sm:$0xff]  ;;  %v469_v13 = vld [vmem:[%s6965_s24 + $0x90] sm:$0xff] }
 0x15d   : > { %1238 = vmatmul.mubr.f32.gmra.mrb[20].mxu0 %v531_v29  ;;  %5105 = vmatprep.subr.bf16.mxu1 %v5104_v26  ;;  %v827_v26 = vld [vmem:[#allocation11 + $0x7c0] sm:$0xff]  ;;  %v5124_v32 = vpack.c.bf16 %v834_v24, %v830_v23  ;;  %v865_v23 = vld [vmem:[#allocation11 + $0x8f0] sm:$0xff] }
 0x15e   : > { %1882 = vmatmul.mubr.f32.gmra.mrb[20].mxu1 %v531_v29  ;;  %4851 = vmatpush1.bf16.msra.mxu0 %v4850_v30  ;;  %v4868_v29 = vpack.c.bf16 %v832_v20, %v828_v19  ;;  %v829_v30 = vld [vmem:[#allocation11 + $0x7d0] sm:$0xff]  ;;  %v863_v19 = vld [vmem:[#allocation11 + $0x8e0] sm:$0xff]  ;;  %v478_v20 = vld [vmem:[%s6965_s24 + $0xd8] sm:$0xff] }
 0x15f   : > { %5107 = vmatpush1.bf16.msra.mxu1 %v5106_v33  ;;  %1243 = vmatprep.mubr.f32.mxu0 %v540_v36  ;;  %v836_v33 = vld [vmem:[#allocation11 + $0x808] sm:$0xff]  ;;  %v5126_v39 = vpack.c.bf16 %v833_v31, %v829_v30  ;;  %v874_v30 = vld [vmem:[#allocation11 + $0x938] sm:$0xff] }
 0x160   : > { %1887 = vmatprep.mubr.f32.mxu1 %v540_v36  ;;  %4853 = vmatprep.subr.bf16.mxu0 %v4852_v37  ;;  %v4870_v36 = vpack.c.bf16 %v831_v27, %v827_v26  ;;  %v838_v37 = vld [vmem:[#allocation11 + $0x818] sm:$0xff]  ;;  %v872_v26 = vld [vmem:[#allocation11 + $0x928] sm:$0xff]  ;;  %v477_v27 = vld [vmem:[%s6965_s24 + $0xd0] sm:$0xff] }
 0x161   : > { %1244 = vmatmul.mubr.f32.gmra.mrb[22].mxu0 %v539_v43  ;;  %5109 = vmatprep.subr.bf16.mxu1 %v5108_v40  ;;  %v835_v40 = vld [vmem:[#allocation11 + $0x800] sm:$0xff]  ;;  %v5128_v46 = vpack.c.bf16 %v842_v38, %v838_v37  ;;  %v873_v37 = vld [vmem:[#allocation11 + $0x930] sm:$0xff] }
 0x162   : > { %1888 = vmatmul.mubr.f32.gmra.mrb[22].mxu1 %v539_v43  ;;  %4855 = vmatpush1.bf16.msra.mxu0 %v4854_v44  ;;  %v4872_v43 = vpack.c.bf16 %v840_v34, %v836_v33  ;;  %v837_v44 = vld [vmem:[#allocation11 + $0x810] sm:$0xff]  ;;  %v871_v33 = vld [vmem:[#allocation11 + $0x920] sm:$0xff]  ;;  %v486_v34 = vld [vmem:[%s6965_s24 + $0x118] sm:$0xff] }
 0x163   : > { %5111 = vmatpush1.bf16.msra.mxu1 %v5110_v47  ;;  %1249 = vmatprep.mubr.f32.mxu0 %v548_v50  ;;  %v844_v47 = vld [vmem:[#allocation11 + $0x848] sm:$0xff]  ;;  %v5130_v53 = vpack.c.bf16 %v841_v45, %v837_v44  ;;  %v882_v44 = vld [vmem:[#allocation11 + $0x978] sm:$0xff] }
 0x164   : > { %1893 = vmatprep.mubr.f32.mxu1 %v548_v50  ;;  %4857 = vmatprep.subr.bf16.mxu0 %v4856_v51  ;;  %v4874_v50 = vpack.c.bf16 %v839_v41, %v835_v40  ;;  %v846_v51 = vld [vmem:[#allocation11 + $0x858] sm:$0xff]  ;;  %v880_v40 = vld [vmem:[#allocation11 + $0x968] sm:$0xff]  ;;  %v485_v41 = vld [vmem:[%s6965_s24 + $0x110] sm:$0xff] }
 0x165   : > { %1250 = vmatmul.mubr.f32.gmra.mrb[24].mxu0 %v547_v57  ;;  %5113 = vmatprep.subr.bf16.mxu1 %v5112_v54  ;;  %v843_v54 = vld [vmem:[#allocation11 + $0x840] sm:$0xff]  ;;  %v5132_v60 = vpack.c.bf16 %v850_v52, %v846_v51  ;;  %v881_v51 = vld [vmem:[#allocation11 + $0x970] sm:$0xff] }
 0x166   : > { %1894 = vmatmul.mubr.f32.gmra.mrb[24].mxu1 %v547_v57  ;;  %4859 = vmatpush1.bf16.msra.mxu0 %v4858_v58  ;;  %v4876_v57 = vpack.c.bf16 %v848_v48, %v844_v47  ;;  %v845_v58 = vld [vmem:[#allocation11 + $0x850] sm:$0xff]  ;;  %v879_v47 = vld [vmem:[#allocation11 + $0x960] sm:$0xff]  ;;  %v494_v48 = vld [vmem:[%s6965_s24 + $0x158] sm:$0xff] }
 0x167   : > { %5115 = vmatpush1.bf16.msra.mxu1 %v5114_v61  ;;  %1255 = vmatprep.mubr.f32.mxu0 %v556_v0  ;;  %v852_v61 = vld [vmem:[#allocation11 + $0x888] sm:$0xff]  ;;  %v5134_v3 = vpack.c.bf16 %v849_v59, %v845_v58  ;;  %v890_v58 = vld [vmem:[#allocation11 + $0x9b8] sm:$0xff] }
 0x168   : > { %1899 = vmatprep.mubr.f32.mxu1 %v556_v0  ;;  %4861 = vmatprep.subr.bf16.mxu0 %v4860_v1  ;;  %v4878_v0 = vpack.c.bf16 %v847_v55, %v843_v54  ;;  %v854_v1 = vld [vmem:[#allocation11 + $0x898] sm:$0xff]  ;;  %v888_v54 = vld [vmem:[#allocation11 + $0x9a8] sm:$0xff]  ;;  %v493_v55 = vld [vmem:[%s6965_s24 + $0x150] sm:$0xff] }
 0x169   : > { %1256 = vmatmul.mubr.f32.gmra.mrb[26].mxu0 %v555_v7  ;;  %5117 = vmatprep.subr.bf16.mxu1 %v5116_v4  ;;  %v851_v4 = vld [vmem:[#allocation11 + $0x880] sm:$0xff]  ;;  %v5136_v10 = vpack.c.bf16 %v858_v2, %v854_v1  ;;  %v889_v1 = vld [vmem:[#allocation11 + $0x9b0] sm:$0xff] }
 0x16a   : > { %1900 = vmatmul.mubr.f32.gmra.mrb[26].mxu1 %v555_v7  ;;  %4863 = vmatpush1.bf16.msra.mxu0 %v4862_v8  ;;  %v4880_v7 = vpack.c.bf16 %v856_v62, %v852_v61  ;;  %v853_v8 = vld [vmem:[#allocation11 + $0x890] sm:$0xff]  ;;  %v887_v61 = vld [vmem:[#allocation11 + $0x9a0] sm:$0xff]  ;;  %v502_v62 = vld [vmem:[%s6965_s24 + $0x198] sm:$0xff] }
 0x16b   : > { %5119 = vmatpush1.bf16.msra.mxu1 %v5118_v11  ;;  %1261 = vmatprep.mubr.f32.mxu0 %v564_v14  ;;  %v860_v11 = vld [vmem:[#allocation11 + $0x8c8] sm:$0xff]  ;;  %v5138_v17 = vpack.c.bf16 %v857_v9, %v853_v8  ;;  %v898_v8 = vld [vmem:[#allocation11 + $0x9f8] sm:$0xff] }
 0x16c   : > { %1905 = vmatprep.mubr.f32.mxu1 %v564_v14  ;;  %4865 = vmatprep.subr.bf16.mxu0 %v4864_v15  ;;  %v4882_v14 = vpack.c.bf16 %v855_v5, %v851_v4  ;;  %v862_v15 = vld [vmem:[#allocation11 + $0x8d8] sm:$0xff]  ;;  %v896_v4 = vld [vmem:[#allocation11 + $0x9e8] sm:$0xff]  ;;  %v501_v5 = vld [vmem:[%s6965_s24 + $0x190] sm:$0xff] }
 0x16d   : > { %1262 = vmatmul.mubr.f32.gmra.mrb[28].mxu0 %v563_v21  ;;  %5121 = vmatprep.subr.bf16.mxu1 %v5120_v18  ;;  %v859_v18 = vld [vmem:[#allocation11 + $0x8c0] sm:$0xff]  ;;  %v5140_v24 = vpack.c.bf16 %v866_v16, %v862_v15  ;;  %v897_v15 = vld [vmem:[#allocation11 + $0x9f0] sm:$0xff] }
 0x16e   : > { %1906 = vmatmul.mubr.f32.gmra.mrb[28].mxu1 %v563_v21  ;;  %4867 = vmatpush1.bf16.msra.mxu0 %v4866_v22  ;;  %v4884_v21 = vpack.c.bf16 %v864_v12, %v860_v11  ;;  %v861_v22 = vld [vmem:[#allocation11 + $0x8d0] sm:$0xff]  ;;  %v895_v11 = vld [vmem:[#allocation11 + $0x9e0] sm:$0xff]  ;;  %v510_v12 = vld [vmem:[%s6965_s24 + $0x1d8] sm:$0xff] }
 0x16f   : > { %5123 = vmatpush1.bf16.msra.mxu1 %v5122_v25  ;;  %1267 = vmatprep.mubr.f32.mxu0 %v572_v28  ;;  %v868_v25 = vld [vmem:[#allocation11 + $0x908] sm:$0xff]  ;;  %v5142_v31 = vpack.c.bf16 %v865_v23, %v861_v22  ;;  %v906_v22 = vld [vmem:[#allocation11 + $0xa38] sm:$0xff] }
 0x170   : > { %1911 = vmatprep.mubr.f32.mxu1 %v572_v28  ;;  %4869 = vmatprep.subr.bf16.mxu0 %v4868_v29  ;;  %v4886_v28 = vpack.c.bf16 %v863_v19, %v859_v18  ;;  %v870_v29 = vld [vmem:[#allocation11 + $0x918] sm:$0xff]  ;;  %v904_v18 = vld [vmem:[#allocation11 + $0xa28] sm:$0xff]  ;;  %v509_v19 = vld [vmem:[%s6965_s24 + $0x1d0] sm:$0xff] }
 0x171   : > { %1268 = vmatmul.mubr.f32.gmra.mrb[30].mxu0 %v571_v35  ;;  %5125 = vmatprep.subr.bf16.mxu1 %v5124_v32  ;;  %v867_v32 = vld [vmem:[#allocation11 + $0x900] sm:$0xff]  ;;  %v5144_v38 = vpack.c.bf16 %v874_v30, %v870_v29  ;;  %v905_v29 = vld [vmem:[#allocation11 + $0xa30] sm:$0xff] }
 0x172   : > { %1912 = vmatmul.mubr.f32.gmra.mrb[30].mxu1 %v571_v35  ;;  %4871 = vmatpush1.bf16.msra.mxu0 %v4870_v36  ;;  %v4888_v35 = vpack.c.bf16 %v872_v26, %v868_v25  ;;  %v869_v36 = vld [vmem:[#allocation11 + $0x910] sm:$0xff]  ;;  %v903_v25 = vld [vmem:[#allocation11 + $0xa20] sm:$0xff]  ;;  %v518_v26 = vld [vmem:[%s6965_s24 + $0x218] sm:$0xff] }
 0x173   : > { %5127 = vmatpush1.bf16.msra.mxu1 %v5126_v39  ;;  %1338 = vmatprep.mubr.f32.mxu0 %v454_v42  ;;  %v876_v39 = vld [vmem:[#allocation11 + $0x948] sm:$0xff]  ;;  %v5146_v45 = vpack.c.bf16 %v873_v37, %v869_v36  ;;  %v914_v36 = vld [vmem:[#allocation11 + $0xa78] sm:$0xff] }
 0x174   : > { %1982 = vmatprep.mubr.f32.mxu1 %v454_v42  ;;  %4873 = vmatprep.subr.bf16.mxu0 %v4872_v43  ;;  %v4890_v42 = vpack.c.bf16 %v871_v33, %v867_v32  ;;  %v878_v43 = vld [vmem:[#allocation11 + $0x958] sm:$0xff]  ;;  %v912_v32 = vld [vmem:[#allocation11 + $0xa68] sm:$0xff]  ;;  %v517_v33 = vld [vmem:[%s6965_s24 + $0x210] sm:$0xff] }
 0x175   : > { %1339 = vmatmul.mubr.f32.vlgmr.msra.gmra.mrb[0].mxu0 %v453_v49  ;;  %5129 = vmatprep.subr.bf16.mxu1 %v5128_v46  ;;  %v875_v46 = vld [vmem:[#allocation11 + $0x940] sm:$0xff]  ;;  %v5148_v52 = vpack.c.bf16 %v882_v44, %v878_v43  ;;  %v913_v43 = vld [vmem:[#allocation11 + $0xa70] sm:$0xff] }
 0x176   : > { %1983 = vmatmul.mubr.f32.vlgmr.msra.gmra.mrb[0].mxu1 %v453_v49  ;;  %4875 = vmatpush1.bf16.msra.mxu0 %v4874_v50  ;;  %v4892_v49 = vpack.c.bf16 %v880_v40, %v876_v39  ;;  %v877_v50 = vld [vmem:[#allocation11 + $0x950] sm:$0xff]  ;;  %v911_v39 = vld [vmem:[#allocation11 + $0xa60] sm:$0xff]  ;;  %v526_v40 = vld [vmem:[%s6965_s24 + $0x258] sm:$0xff] }
 0x177   : > { %5131 = vmatpush1.bf16.msra.mxu1 %v5130_v53  ;;  %1344 = vmatprep.mubr.f32.mxu0 %v462_v56  ;;  %v884_v53 = vld [vmem:[#allocation11 + $0x988] sm:$0xff]  ;;  %v5150_v59 = vpack.c.bf16 %v881_v51, %v877_v50  ;;  %v922_v50 = vld [vmem:[#allocation11 + $0xab8] sm:$0xff] }
 0x178   : > { %1988 = vmatprep.mubr.f32.mxu1 %v462_v56  ;;  %4877 = vmatprep.subr.bf16.mxu0 %v4876_v57  ;;  %v4894_v56 = vpack.c.bf16 %v879_v47, %v875_v46  ;;  %v886_v57 = vld [vmem:[#allocation11 + $0x998] sm:$0xff]  ;;  %v920_v46 = vld [vmem:[#allocation11 + $0xaa8] sm:$0xff]  ;;  %v525_v47 = vld [vmem:[%s6965_s24 + $0x250] sm:$0xff] }
 0x179   : > { %1345 = vmatmul.mubr.f32.gmra.mrb[2].mxu0 %v461_v63  ;;  %5133 = vmatprep.subr.bf16.mxu1 %v5132_v60  ;;  %v883_v60 = vld [vmem:[#allocation11 + $0x980] sm:$0xff]  ;;  %v5152_v2 = vpack.c.bf16 %v890_v58, %v886_v57  ;;  %v921_v57 = vld [vmem:[#allocation11 + $0xab0] sm:$0xff] }
 0x17a   : > { %1989 = vmatmul.mubr.f32.gmra.mrb[2].mxu1 %v461_v63  ;;  %4879 = vmatpush1.bf16.msra.mxu0 %v4878_v0  ;;  %v4896_v63 = vpack.c.bf16 %v888_v54, %v884_v53  ;;  %v885_v0 = vld [vmem:[#allocation11 + $0x990] sm:$0xff]  ;;  %v919_v53 = vld [vmem:[#allocation11 + $0xaa0] sm:$0xff]  ;;  %v534_v54 = vld [vmem:[%s6965_s24 + $0x298] sm:$0xff] }
 0x17b   : > { %5135 = vmatpush1.bf16.msra.mxu1 %v5134_v3  ;;  %1350 = vmatprep.mubr.f32.mxu0 %v470_v6  ;;  %v892_v3 = vld [vmem:[#allocation11 + $0x9c8] sm:$0xff]  ;;  %v5154_v9 = vpack.c.bf16 %v889_v1, %v885_v0  ;;  %v930_v0 = vld [vmem:[#allocation11 + $0xaf8] sm:$0xff] }
 0x17c   : > { %1994 = vmatprep.mubr.f32.mxu1 %v470_v6  ;;  %4881 = vmatprep.subr.bf16.mxu0 %v4880_v7  ;;  %v4898_v6 = vpack.c.bf16 %v887_v61, %v883_v60  ;;  %v894_v7 = vld [vmem:[#allocation11 + $0x9d8] sm:$0xff]  ;;  %v928_v60 = vld [vmem:[#allocation11 + $0xae8] sm:$0xff]  ;;  %v533_v61 = vld [vmem:[%s6965_s24 + $0x290] sm:$0xff] }
 0x17d   : > { %1351 = vmatmul.mubr.f32.gmra.mrb[4].mxu0 %v469_v13  ;;  %5137 = vmatprep.subr.bf16.mxu1 %v5136_v10  ;;  %v891_v10 = vld [vmem:[#allocation11 + $0x9c0] sm:$0xff]  ;;  %v5156_v16 = vpack.c.bf16 %v898_v8, %v894_v7  ;;  %v929_v7 = vld [vmem:[#allocation11 + $0xaf0] sm:$0xff] }
 0x17e   : > { %1995 = vmatmul.mubr.f32.gmra.mrb[4].mxu1 %v469_v13  ;;  %4883 = vmatpush1.bf16.msra.mxu0 %v4882_v14  ;;  %v4900_v13 = vpack.c.bf16 %v896_v4, %v892_v3  ;;  %v893_v14 = vld [vmem:[#allocation11 + $0x9d0] sm:$0xff]  ;;  %v927_v3 = vld [vmem:[#allocation11 + $0xae0] sm:$0xff]  ;;  %v542_v4 = vld [vmem:[%s6965_s24 + $0x2d8] sm:$0xff] }
 0x17f   : > { %5139 = vmatpush1.bf16.msra.mxu1 %v5138_v17  ;;  %1356 = vmatprep.mubr.f32.mxu0 %v478_v20  ;;  %v900_v17 = vld [vmem:[#allocation11 + $0xa08] sm:$0xff]  ;;  %v5158_v23 = vpack.c.bf16 %v897_v15, %v893_v14  ;;  %v938_v14 = vld [vmem:[#allocation11 + $0xb38] sm:$0xff] }
 0x180   : > { %2000 = vmatprep.mubr.f32.mxu1 %v478_v20  ;;  %4885 = vmatprep.subr.bf16.mxu0 %v4884_v21  ;;  %v4902_v20 = vpack.c.bf16 %v895_v11, %v891_v10  ;;  %v902_v21 = vld [vmem:[#allocation11 + $0xa18] sm:$0xff]  ;;  %v936_v10 = vld [vmem:[#allocation11 + $0xb28] sm:$0xff]  ;;  %v541_v11 = vld [vmem:[%s6965_s24 + $0x2d0] sm:$0xff] }
 0x181   : > { %1357 = vmatmul.mubr.f32.gmra.mrb[6].mxu0 %v477_v27  ;;  %5141 = vmatprep.subr.bf16.mxu1 %v5140_v24  ;;  %v899_v24 = vld [vmem:[#allocation11 + $0xa00] sm:$0xff]  ;;  %v5160_v30 = vpack.c.bf16 %v906_v22, %v902_v21  ;;  %v937_v21 = vld [vmem:[#allocation11 + $0xb30] sm:$0xff] }
 0x182   : > { %2001 = vmatmul.mubr.f32.gmra.mrb[6].mxu1 %v477_v27  ;;  %4887 = vmatpush1.bf16.msra.mxu0 %v4886_v28  ;;  %v4904_v27 = vpack.c.bf16 %v904_v18, %v900_v17  ;;  %v901_v28 = vld [vmem:[#allocation11 + $0xa10] sm:$0xff]  ;;  %v935_v17 = vld [vmem:[#allocation11 + $0xb20] sm:$0xff]  ;;  %v550_v18 = vld [vmem:[%s6965_s24 + $0x318] sm:$0xff] }
 0x183   : > { %5143 = vmatpush1.bf16.msra.mxu1 %v5142_v31  ;;  %1362 = vmatprep.mubr.f32.mxu0 %v486_v34  ;;  %v908_v31 = vld [vmem:[#allocation11 + $0xa48] sm:$0xff]  ;;  %v5162_v37 = vpack.c.bf16 %v905_v29, %v901_v28  ;;  %v946_v28 = vld [vmem:[#allocation11 + $0xb78] sm:$0xff] }
 0x184   : > { %2006 = vmatprep.mubr.f32.mxu1 %v486_v34  ;;  %4889 = vmatprep.subr.bf16.mxu0 %v4888_v35  ;;  %v4906_v34 = vpack.c.bf16 %v903_v25, %v899_v24  ;;  %v910_v35 = vld [vmem:[#allocation11 + $0xa58] sm:$0xff]  ;;  %v944_v24 = vld [vmem:[#allocation11 + $0xb68] sm:$0xff]  ;;  %v549_v25 = vld [vmem:[%s6965_s24 + $0x310] sm:$0xff] }
 0x185   : > { %1363 = vmatmul.mubr.f32.gmra.mrb[8].mxu0 %v485_v41  ;;  %5145 = vmatprep.subr.bf16.mxu1 %v5144_v38  ;;  %v907_v38 = vld [vmem:[#allocation11 + $0xa40] sm:$0xff]  ;;  %v5164_v44 = vpack.c.bf16 %v914_v36, %v910_v35  ;;  %v945_v35 = vld [vmem:[#allocation11 + $0xb70] sm:$0xff] }
 0x186   : > { %2007 = vmatmul.mubr.f32.gmra.mrb[8].mxu1 %v485_v41  ;;  %4891 = vmatpush1.bf16.msra.mxu0 %v4890_v42  ;;  %v4908_v41 = vpack.c.bf16 %v912_v32, %v908_v31  ;;  %v909_v42 = vld [vmem:[#allocation11 + $0xa50] sm:$0xff]  ;;  %v943_v31 = vld [vmem:[#allocation11 + $0xb60] sm:$0xff]  ;;  %v558_v32 = vld [vmem:[%s6965_s24 + $0x358] sm:$0xff] }
 0x187   : > { %5147 = vmatpush1.bf16.msra.mxu1 %v5146_v45  ;;  %1368 = vmatprep.mubr.f32.mxu0 %v494_v48  ;;  %v916_v45 = vld [vmem:[#allocation11 + $0xa88] sm:$0xff]  ;;  %v5166_v51 = vpack.c.bf16 %v913_v43, %v909_v42  ;;  %v954_v42 = vld [vmem:[#allocation11 + $0xbb8] sm:$0xff] }
 0x188   : > { %2012 = vmatprep.mubr.f32.mxu1 %v494_v48  ;;  %4893 = vmatprep.subr.bf16.mxu0 %v4892_v49  ;;  %v4910_v48 = vpack.c.bf16 %v911_v39, %v907_v38  ;;  %v918_v49 = vld [vmem:[#allocation11 + $0xa98] sm:$0xff]  ;;  %v952_v38 = vld [vmem:[#allocation11 + $0xba8] sm:$0xff]  ;;  %v557_v39 = vld [vmem:[%s6965_s24 + $0x350] sm:$0xff] }
 0x189   : > { %1369 = vmatmul.mubr.f32.gmra.mrb[10].mxu0 %v493_v55  ;;  %5149 = vmatprep.subr.bf16.mxu1 %v5148_v52  ;;  %v915_v52 = vld [vmem:[#allocation11 + $0xa80] sm:$0xff]  ;;  %v5168_v58 = vpack.c.bf16 %v922_v50, %v918_v49  ;;  %v953_v49 = vld [vmem:[#allocation11 + $0xbb0] sm:$0xff] }
 0x18a   : > { %2013 = vmatmul.mubr.f32.gmra.mrb[10].mxu1 %v493_v55  ;;  %4895 = vmatpush1.bf16.msra.mxu0 %v4894_v56  ;;  %v4912_v55 = vpack.c.bf16 %v920_v46, %v916_v45  ;;  %v917_v56 = vld [vmem:[#allocation11 + $0xa90] sm:$0xff]  ;;  %v951_v45 = vld [vmem:[#allocation11 + $0xba0] sm:$0xff]  ;;  %v566_v46 = vld [vmem:[%s6965_s24 + $0x398] sm:$0xff] }
 0x18b   : > { %5151 = vmatpush1.bf16.msra.mxu1 %v5150_v59  ;;  %1374 = vmatprep.mubr.f32.mxu0 %v502_v62  ;;  %v924_v59 = vld [vmem:[#allocation11 + $0xac8] sm:$0xff]  ;;  %v5170_v1 = vpack.c.bf16 %v921_v57, %v917_v56  ;;  %v962_v56 = vld [vmem:[#allocation11 + $0xbf8] sm:$0xff] }
 0x18c   : > { %2018 = vmatprep.mubr.f32.mxu1 %v502_v62  ;;  %4897 = vmatprep.subr.bf16.mxu0 %v4896_v63  ;;  %v4914_v62 = vpack.c.bf16 %v919_v53, %v915_v52  ;;  %v926_v63 = vld [vmem:[#allocation11 + $0xad8] sm:$0xff]  ;;  %v960_v52 = vld [vmem:[#allocation11 + $0xbe8] sm:$0xff]  ;;  %v565_v53 = vld [vmem:[%s6965_s24 + $0x390] sm:$0xff] }
 0x18d   : > { %1375 = vmatmul.mubr.f32.gmra.mrb[12].mxu0 %v501_v5  ;;  %5153 = vmatprep.subr.bf16.mxu1 %v5152_v2  ;;  %v923_v2 = vld [vmem:[#allocation11 + $0xac0] sm:$0xff]  ;;  %v5172_v8 = vpack.c.bf16 %v930_v0, %v926_v63  ;;  %v961_v63 = vld [vmem:[#allocation11 + $0xbf0] sm:$0xff] }
 0x18e   : > { %2019 = vmatmul.mubr.f32.gmra.mrb[12].mxu1 %v501_v5  ;;  %4899 = vmatpush1.bf16.msra.mxu0 %v4898_v6  ;;  %v4916_v5 = vpack.c.bf16 %v928_v60, %v924_v59  ;;  %v925_v6 = vld [vmem:[#allocation11 + $0xad0] sm:$0xff]  ;;  %v959_v59 = vld [vmem:[#allocation11 + $0xbe0] sm:$0xff]  ;;  %v574_v60 = vld [vmem:[%s6965_s24 + $0x3d8] sm:$0xff] }
 0x18f   : > { %5155 = vmatpush1.bf16.msra.mxu1 %v5154_v9  ;;  %1380 = vmatprep.mubr.f32.mxu0 %v510_v12  ;;  %v932_v9 = vld [vmem:[#allocation11 + $0xb08] sm:$0xff]  ;;  %v5174_v15 = vpack.c.bf16 %v929_v7, %v925_v6  ;;  %v970_v6 = vld [vmem:[#allocation11 + $0xc38] sm:$0xff] }
 0x190   : > { %2024 = vmatprep.mubr.f32.mxu1 %v510_v12  ;;  %4901 = vmatprep.subr.bf16.mxu0 %v4900_v13  ;;  %v4918_v12 = vpack.c.bf16 %v927_v3, %v923_v2  ;;  %v934_v13 = vld [vmem:[#allocation11 + $0xb18] sm:$0xff]  ;;  %v968_v2 = vld [vmem:[#allocation11 + $0xc28] sm:$0xff]  ;;  %v573_v3 = vld [vmem:[%s6965_s24 + $0x3d0] sm:$0xff] }
 0x191   : > { %1381 = vmatmul.mubr.f32.gmra.mrb[14].mxu0 %v509_v19  ;;  %5157 = vmatprep.subr.bf16.mxu1 %v5156_v16  ;;  %v931_v16 = vld [vmem:[#allocation11 + $0xb00] sm:$0xff]  ;;  %v5176_v22 = vpack.c.bf16 %v938_v14, %v934_v13  ;;  %v969_v13 = vld [vmem:[#allocation11 + $0xc30] sm:$0xff] }
 0x192   : > { %2025 = vmatmul.mubr.f32.gmra.mrb[14].mxu1 %v509_v19  ;;  %4903 = vmatpush1.bf16.msra.mxu0 %v4902_v20  ;;  %v4920_v19 = vpack.c.bf16 %v936_v10, %v932_v9  ;;  %v933_v20 = vld [vmem:[#allocation11 + $0xb10] sm:$0xff]  ;;  %v967_v9 = vld [vmem:[#allocation11 + $0xc20] sm:$0xff]  ;;  %v456_v10 = vld [vmem:[%s6965_s24 + $0x28] sm:$0xff] }
 0x193   : > { %5159 = vmatpush1.bf16.msra.mxu1 %v5158_v23  ;;  %1386 = vmatprep.mubr.f32.mxu0 %v518_v26  ;;  %v940_v23 = vld [vmem:[#allocation11 + $0xb48] sm:$0xff]  ;;  %v5178_v29 = vpack.c.bf16 %v937_v21, %v933_v20  ;;  %v978_v20 = vld [vmem:[#allocation11 + $0xc78] sm:$0xff] }
 0x194   : > { %2030 = vmatprep.mubr.f32.mxu1 %v518_v26  ;;  %4905 = vmatprep.subr.bf16.mxu0 %v4904_v27  ;;  %v4922_v26 = vpack.c.bf16 %v935_v17, %v931_v16  ;;  %v942_v27 = vld [vmem:[#allocation11 + $0xb58] sm:$0xff]  ;;  %v976_v16 = vld [vmem:[#allocation11 + $0xc68] sm:$0xff]  ;;  %v455_v17 = vld [vmem:[%s6965_s24 + $0x20] sm:$0xff] }
 0x195   : > { %1387 = vmatmul.mubr.f32.gmra.mrb[16].mxu0 %v517_v33  ;;  %5161 = vmatprep.subr.bf16.mxu1 %v5160_v30  ;;  %v939_v30 = vld [vmem:[#allocation11 + $0xb40] sm:$0xff]  ;;  %v5180_v36 = vpack.c.bf16 %v946_v28, %v942_v27  ;;  %v977_v27 = vld [vmem:[#allocation11 + $0xc70] sm:$0xff] }
 0x196   : > { %2031 = vmatmul.mubr.f32.gmra.mrb[16].mxu1 %v517_v33  ;;  %4907 = vmatpush1.bf16.msra.mxu0 %v4906_v34  ;;  %v4924_v33 = vpack.c.bf16 %v944_v24, %v940_v23  ;;  %v941_v34 = vld [vmem:[#allocation11 + $0xb50] sm:$0xff]  ;;  %v975_v23 = vld [vmem:[#allocation11 + $0xc60] sm:$0xff]  ;;  %v464_v24 = vld [vmem:[%s6965_s24 + $0x68] sm:$0xff] }
 0x197   : > { %5163 = vmatpush1.bf16.msra.mxu1 %v5162_v37  ;;  %1392 = vmatprep.mubr.f32.mxu0 %v526_v40  ;;  %v948_v37 = vld [vmem:[#allocation11 + $0xb88] sm:$0xff]  ;;  %v5182_v43 = vpack.c.bf16 %v945_v35, %v941_v34  ;;  %v986_v34 = vld [vmem:[#allocation11 + $0xcb8] sm:$0xff] }
 0x198   : > { %2036 = vmatprep.mubr.f32.mxu1 %v526_v40  ;;  %4909 = vmatprep.subr.bf16.mxu0 %v4908_v41  ;;  %v4926_v40 = vpack.c.bf16 %v943_v31, %v939_v30  ;;  %v950_v41 = vld [vmem:[#allocation11 + $0xb98] sm:$0xff]  ;;  %v984_v30 = vld [vmem:[#allocation11 + $0xca8] sm:$0xff]  ;;  %v463_v31 = vld [vmem:[%s6965_s24 + $0x60] sm:$0xff] }
 0x199   : > { %1393 = vmatmul.mubr.f32.gmra.mrb[18].mxu0 %v525_v47  ;;  %5165 = vmatprep.subr.bf16.mxu1 %v5164_v44  ;;  %v947_v44 = vld [vmem:[#allocation11 + $0xb80] sm:$0xff]  ;;  %v5184_v50 = vpack.c.bf16 %v954_v42, %v950_v41  ;;  %v985_v41 = vld [vmem:[#allocation11 + $0xcb0] sm:$0xff] }
 0x19a   : > { %2037 = vmatmul.mubr.f32.gmra.mrb[18].mxu1 %v525_v47  ;;  %4911 = vmatpush1.bf16.msra.mxu0 %v4910_v48  ;;  %v4928_v47 = vpack.c.bf16 %v952_v38, %v948_v37  ;;  %v949_v48 = vld [vmem:[#allocation11 + $0xb90] sm:$0xff]  ;;  %v983_v37 = vld [vmem:[#allocation11 + $0xca0] sm:$0xff]  ;;  %v472_v38 = vld [vmem:[%s6965_s24 + $0xa8] sm:$0xff] }
 0x19b   : > { %5167 = vmatpush1.bf16.msra.mxu1 %v5166_v51  ;;  %1398 = vmatprep.mubr.f32.mxu0 %v534_v54  ;;  %v956_v51 = vld [vmem:[#allocation11 + $0xbc8] sm:$0xff]  ;;  %v5186_v57 = vpack.c.bf16 %v953_v49, %v949_v48  ;;  %v994_v48 = vld [vmem:[#allocation11 + $0xcf8] sm:$0xff] }
 0x19c   : > { %2042 = vmatprep.mubr.f32.mxu1 %v534_v54  ;;  %4913 = vmatprep.subr.bf16.mxu0 %v4912_v55  ;;  %v4930_v54 = vpack.c.bf16 %v951_v45, %v947_v44  ;;  %v958_v55 = vld [vmem:[#allocation11 + $0xbd8] sm:$0xff]  ;;  %v992_v44 = vld [vmem:[#allocation11 + $0xce8] sm:$0xff]  ;;  %v471_v45 = vld [vmem:[%s6965_s24 + $0xa0] sm:$0xff] }
 0x19d   : > { %1399 = vmatmul.mubr.f32.gmra.mrb[20].mxu0 %v533_v61  ;;  %5169 = vmatprep.subr.bf16.mxu1 %v5168_v58  ;;  %v955_v58 = vld [vmem:[#allocation11 + $0xbc0] sm:$0xff]  ;;  %v5188_v0 = vpack.c.bf16 %v962_v56, %v958_v55  ;;  %v993_v55 = vld [vmem:[#allocation11 + $0xcf0] sm:$0xff] }
 0x19e   : > { %2043 = vmatmul.mubr.f32.gmra.mrb[20].mxu1 %v533_v61  ;;  %4915 = vmatpush1.bf16.msra.mxu0 %v4914_v62  ;;  %v4932_v61 = vpack.c.bf16 %v960_v52, %v956_v51  ;;  %v957_v62 = vld [vmem:[#allocation11 + $0xbd0] sm:$0xff]  ;;  %v991_v51 = vld [vmem:[#allocation11 + $0xce0] sm:$0xff]  ;;  %v480_v52 = vld [vmem:[%s6965_s24 + $0xe8] sm:$0xff] }
 0x19f   : > { %5171 = vmatpush1.bf16.msra.mxu1 %v5170_v1  ;;  %1404 = vmatprep.mubr.f32.mxu0 %v542_v4  ;;  %v964_v1 = vld [vmem:[#allocation11 + $0xc08] sm:$0xff]  ;;  %v5190_v7 = vpack.c.bf16 %v961_v63, %v957_v62  ;;  %v1002_v62 = vld [vmem:[#allocation11 + $0xd38] sm:$0xff] }
 0x1a0   : > { %2048 = vmatprep.mubr.f32.mxu1 %v542_v4  ;;  %4917 = vmatprep.subr.bf16.mxu0 %v4916_v5  ;;  %v4934_v4 = vpack.c.bf16 %v959_v59, %v955_v58  ;;  %v966_v5 = vld [vmem:[#allocation11 + $0xc18] sm:$0xff]  ;;  %v1000_v58 = vld [vmem:[#allocation11 + $0xd28] sm:$0xff]  ;;  %v479_v59 = vld [vmem:[%s6965_s24 + $0xe0] sm:$0xff] }
 0x1a1   : > { %1405 = vmatmul.mubr.f32.gmra.mrb[22].mxu0 %v541_v11  ;;  %5173 = vmatprep.subr.bf16.mxu1 %v5172_v8  ;;  %v963_v8 = vld [vmem:[#allocation11 + $0xc00] sm:$0xff]  ;;  %v5192_v14 = vpack.c.bf16 %v970_v6, %v966_v5  ;;  %v1001_v5 = vld [vmem:[#allocation11 + $0xd30] sm:$0xff] }
 0x1a2   : > { %2049 = vmatmul.mubr.f32.gmra.mrb[22].mxu1 %v541_v11  ;;  %4919 = vmatpush1.bf16.msra.mxu0 %v4918_v12  ;;  %v4936_v11 = vpack.c.bf16 %v968_v2, %v964_v1  ;;  %v965_v12 = vld [vmem:[#allocation11 + $0xc10] sm:$0xff]  ;;  %v999_v1 = vld [vmem:[#allocation11 + $0xd20] sm:$0xff]  ;;  %v488_v2 = vld [vmem:[%s6965_s24 + $0x128] sm:$0xff] }
 0x1a3   : > { %5175 = vmatpush1.bf16.msra.mxu1 %v5174_v15  ;;  %1410 = vmatprep.mubr.f32.mxu0 %v550_v18  ;;  %v972_v15 = vld [vmem:[#allocation11 + $0xc48] sm:$0xff]  ;;  %v5194_v21 = vpack.c.bf16 %v969_v13, %v965_v12  ;;  %v1010_v12 = vld [vmem:[#allocation11 + $0xd78] sm:$0xff] }
 0x1a4   : > { %2054 = vmatprep.mubr.f32.mxu1 %v550_v18  ;;  %4921 = vmatprep.subr.bf16.mxu0 %v4920_v19  ;;  %v4938_v18 = vpack.c.bf16 %v967_v9, %v963_v8  ;;  %v974_v19 = vld [vmem:[#allocation11 + $0xc58] sm:$0xff]  ;;  %v1008_v8 = vld [vmem:[#allocation11 + $0xd68] sm:$0xff]  ;;  %v487_v9 = vld [vmem:[%s6965_s24 + $0x120] sm:$0xff] }
 0x1a5   : > { %1411 = vmatmul.mubr.f32.gmra.mrb[24].mxu0 %v549_v25  ;;  %5177 = vmatprep.subr.bf16.mxu1 %v5176_v22  ;;  %v971_v22 = vld [vmem:[#allocation11 + $0xc40] sm:$0xff]  ;;  %v5196_v28 = vpack.c.bf16 %v978_v20, %v974_v19  ;;  %v1009_v19 = vld [vmem:[#allocation11 + $0xd70] sm:$0xff] }
 0x1a6   : > { %2055 = vmatmul.mubr.f32.gmra.mrb[24].mxu1 %v549_v25  ;;  %4923 = vmatpush1.bf16.msra.mxu0 %v4922_v26  ;;  %v4940_v25 = vpack.c.bf16 %v976_v16, %v972_v15  ;;  %v973_v26 = vld [vmem:[#allocation11 + $0xc50] sm:$0xff]  ;;  %v1007_v15 = vld [vmem:[#allocation11 + $0xd60] sm:$0xff]  ;;  %v496_v16 = vld [vmem:[%s6965_s24 + $0x168] sm:$0xff] }
 0x1a7   : > { %5179 = vmatpush1.bf16.msra.mxu1 %v5178_v29  ;;  %1416 = vmatprep.mubr.f32.mxu0 %v558_v32  ;;  %v980_v29 = vld [vmem:[#allocation11 + $0xc88] sm:$0xff]  ;;  %v5198_v35 = vpack.c.bf16 %v977_v27, %v973_v26  ;;  %v1018_v26 = vld [vmem:[#allocation11 + $0xdb8] sm:$0xff] }
 0x1a8   : > { %2060 = vmatprep.mubr.f32.mxu1 %v558_v32  ;;  %4925 = vmatprep.subr.bf16.mxu0 %v4924_v33  ;;  %v4942_v32 = vpack.c.bf16 %v975_v23, %v971_v22  ;;  %v982_v33 = vld [vmem:[#allocation11 + $0xc98] sm:$0xff]  ;;  %v1016_v22 = vld [vmem:[#allocation11 + $0xda8] sm:$0xff]  ;;  %v495_v23 = vld [vmem:[%s6965_s24 + $0x160] sm:$0xff] }
 0x1a9   : > { %1417 = vmatmul.mubr.f32.gmra.mrb[26].mxu0 %v557_v39  ;;  %5181 = vmatprep.subr.bf16.mxu1 %v5180_v36  ;;  %v979_v36 = vld [vmem:[#allocation11 + $0xc80] sm:$0xff]  ;;  %v5200_v42 = vpack.c.bf16 %v986_v34, %v982_v33  ;;  %v1017_v33 = vld [vmem:[#allocation11 + $0xdb0] sm:$0xff] }
 0x1aa   : > { %2061 = vmatmul.mubr.f32.gmra.mrb[26].mxu1 %v557_v39  ;;  %4927 = vmatpush1.bf16.msra.mxu0 %v4926_v40  ;;  %v4944_v39 = vpack.c.bf16 %v984_v30, %v980_v29  ;;  %v981_v40 = vld [vmem:[#allocation11 + $0xc90] sm:$0xff]  ;;  %v1015_v29 = vld [vmem:[#allocation11 + $0xda0] sm:$0xff]  ;;  %v504_v30 = vld [vmem:[%s6965_s24 + $0x1a8] sm:$0xff] }
 0x1ab   : > { %5183 = vmatpush1.bf16.msra.mxu1 %v5182_v43  ;;  %1422 = vmatprep.mubr.f32.mxu0 %v566_v46  ;;  %v988_v43 = vld [vmem:[#allocation11 + $0xcc8] sm:$0xff]  ;;  %v5202_v49 = vpack.c.bf16 %v985_v41, %v981_v40  ;;  %v1026_v40 = vld [vmem:[#allocation11 + $0xdf8] sm:$0xff] }
 0x1ac   : > { %2066 = vmatprep.mubr.f32.mxu1 %v566_v46  ;;  %4929 = vmatprep.subr.bf16.mxu0 %v4928_v47  ;;  %v4946_v46 = vpack.c.bf16 %v983_v37, %v979_v36  ;;  %v990_v47 = vld [vmem:[#allocation11 + $0xcd8] sm:$0xff]  ;;  %v1024_v36 = vld [vmem:[#allocation11 + $0xde8] sm:$0xff]  ;;  %v503_v37 = vld [vmem:[%s6965_s24 + $0x1a0] sm:$0xff] }
 0x1ad   : > { %1423 = vmatmul.mubr.f32.gmra.mrb[28].mxu0 %v565_v53  ;;  %5185 = vmatprep.subr.bf16.mxu1 %v5184_v50  ;;  %v987_v50 = vld [vmem:[#allocation11 + $0xcc0] sm:$0xff]  ;;  %v5204_v56 = vpack.c.bf16 %v994_v48, %v990_v47  ;;  %v1025_v47 = vld [vmem:[#allocation11 + $0xdf0] sm:$0xff] }
 0x1ae   : > { %2067 = vmatmul.mubr.f32.gmra.mrb[28].mxu1 %v565_v53  ;;  %4931 = vmatpush1.bf16.msra.mxu0 %v4930_v54  ;;  %v4948_v53 = vpack.c.bf16 %v992_v44, %v988_v43  ;;  %v989_v54 = vld [vmem:[#allocation11 + $0xcd0] sm:$0xff]  ;;  %v1023_v43 = vld [vmem:[#allocation11 + $0xde0] sm:$0xff]  ;;  %v512_v44 = vld [vmem:[%s6965_s24 + $0x1e8] sm:$0xff] }
 0x1af   : > { %5187 = vmatpush1.bf16.msra.mxu1 %v5186_v57  ;;  %1428 = vmatprep.mubr.f32.mxu0 %v574_v60  ;;  %v996_v57 = vld [vmem:[#allocation11 + $0xd08] sm:$0xff]  ;;  %v5206_v63 = vpack.c.bf16 %v993_v55, %v989_v54  ;;  %v1034_v54 = vld [vmem:[#allocation11 + $0xe38] sm:$0xff] }
 0x1b0   : > { %2072 = vmatprep.mubr.f32.mxu1 %v574_v60  ;;  %4933 = vmatprep.subr.bf16.mxu0 %v4932_v61  ;;  %v4950_v60 = vpack.c.bf16 %v991_v51, %v987_v50  ;;  %v998_v61 = vld [vmem:[#allocation11 + $0xd18] sm:$0xff]  ;;  %v1032_v50 = vld [vmem:[#allocation11 + $0xe28] sm:$0xff]  ;;  %v511_v51 = vld [vmem:[%s6965_s24 + $0x1e0] sm:$0xff] }
 0x1b1   : > { %1429 = vmatmul.mubr.f32.gmra.mrb[30].mxu0 %v573_v3  ;;  %5189 = vmatprep.subr.bf16.mxu1 %v5188_v0  ;;  %v995_v0 = vld [vmem:[#allocation11 + $0xd00] sm:$0xff]  ;;  %v5208_v6 = vpack.c.bf16 %v1002_v62, %v998_v61  ;;  %v1033_v61 = vld [vmem:[#allocation11 + $0xe30] sm:$0xff] }
 0x1b2   : > { %2073 = vmatmul.mubr.f32.gmra.mrb[30].mxu1 %v573_v3  ;;  %4935 = vmatpush1.bf16.msra.mxu0 %v4934_v4  ;;  %v4952_v3 = vpack.c.bf16 %v1000_v58, %v996_v57  ;;  %v997_v4 = vld [vmem:[#allocation11 + $0xd10] sm:$0xff]  ;;  %v1031_v57 = vld [vmem:[#allocation11 + $0xe20] sm:$0xff]  ;;  %v520_v58 = vld [vmem:[%s6965_s24 + $0x228] sm:$0xff] }
 0x1b3   : > { %5191 = vmatpush1.bf16.msra.mxu1 %v5190_v7  ;;  %1499 = vmatprep.mubr.f32.mxu0 %v456_v10  ;;  %v1004_v7 = vld [vmem:[#allocation11 + $0xd48] sm:$0xff]  ;;  %v5210_v13 = vpack.c.bf16 %v1001_v5, %v997_v4  ;;  %v1042_v4 = vld [vmem:[#allocation11 + $0xe78] sm:$0xff] }
 0x1b4   : > { %2143 = vmatprep.mubr.f32.mxu1 %v456_v10  ;;  %4937 = vmatprep.subr.bf16.mxu0 %v4936_v11  ;;  %v4954_v10 = vpack.c.bf16 %v999_v1, %v995_v0  ;;  %v1006_v11 = vld [vmem:[#allocation11 + $0xd58] sm:$0xff]  ;;  %v1040_v0 = vld [vmem:[#allocation11 + $0xe68] sm:$0xff]  ;;  %v519_v1 = vld [vmem:[%s6965_s24 + $0x220] sm:$0xff] }
 0x1b5   : > { %1500 = vmatmul.mubr.f32.vlgmr.msra.gmra.mrb[0].mxu0 %v455_v17  ;;  %5193 = vmatprep.subr.bf16.mxu1 %v5192_v14  ;;  %v1003_v14 = vld [vmem:[#allocation11 + $0xd40] sm:$0xff]  ;;  %v5212_v20 = vpack.c.bf16 %v1010_v12, %v1006_v11  ;;  %v1041_v11 = vld [vmem:[#allocation11 + $0xe70] sm:$0xff] }
 0x1b6   : > { %2144 = vmatmul.mubr.f32.vlgmr.msra.gmra.mrb[0].mxu1 %v455_v17  ;;  %4939 = vmatpush1.bf16.msra.mxu0 %v4938_v18  ;;  %v4956_v17 = vpack.c.bf16 %v1008_v8, %v1004_v7  ;;  %v1005_v18 = vld [vmem:[#allocation11 + $0xd50] sm:$0xff]  ;;  %v1039_v7 = vld [vmem:[#allocation11 + $0xe60] sm:$0xff]  ;;  %v528_v8 = vld [vmem:[%s6965_s24 + $0x268] sm:$0xff] }
 0x1b7   : > { %5195 = vmatpush1.bf16.msra.mxu1 %v5194_v21  ;;  %1505 = vmatprep.mubr.f32.mxu0 %v464_v24  ;;  %v1012_v21 = vld [vmem:[#allocation11 + $0xd88] sm:$0xff]  ;;  %v5214_v27 = vpack.c.bf16 %v1009_v19, %v1005_v18  ;;  %v1050_v18 = vld [vmem:[#allocation11 + $0xeb8] sm:$0xff] }
 0x1b8   : > { %2149 = vmatprep.mubr.f32.mxu1 %v464_v24  ;;  %4941 = vmatprep.subr.bf16.mxu0 %v4940_v25  ;;  %v4958_v24 = vpack.c.bf16 %v1007_v15, %v1003_v14  ;;  %v1014_v25 = vld [vmem:[#allocation11 + $0xd98] sm:$0xff]  ;;  %v1048_v14 = vld [vmem:[#allocation11 + $0xea8] sm:$0xff]  ;;  %v527_v15 = vld [vmem:[%s6965_s24 + $0x260] sm:$0xff] }
 0x1b9   : > { %1506 = vmatmul.mubr.f32.gmra.mrb[2].mxu0 %v463_v31  ;;  %5197 = vmatprep.subr.bf16.mxu1 %v5196_v28  ;;  %v1011_v28 = vld [vmem:[#allocation11 + $0xd80] sm:$0xff]  ;;  %v5216_v34 = vpack.c.bf16 %v1018_v26, %v1014_v25  ;;  %v1049_v25 = vld [vmem:[#allocation11 + $0xeb0] sm:$0xff] }
 0x1ba   : > { %2150 = vmatmul.mubr.f32.gmra.mrb[2].mxu1 %v463_v31  ;;  %4943 = vmatpush1.bf16.msra.mxu0 %v4942_v32  ;;  %v4960_v31 = vpack.c.bf16 %v1016_v22, %v1012_v21  ;;  %v1013_v32 = vld [vmem:[#allocation11 + $0xd90] sm:$0xff]  ;;  %v1047_v21 = vld [vmem:[#allocation11 + $0xea0] sm:$0xff]  ;;  %v536_v22 = vld [vmem:[%s6965_s24 + $0x2a8] sm:$0xff] }
 0x1bb   : > { %5199 = vmatpush1.bf16.msra.mxu1 %v5198_v35  ;;  %1511 = vmatprep.mubr.f32.mxu0 %v472_v38  ;;  %v1020_v35 = vld [vmem:[#allocation11 + $0xdc8] sm:$0xff]  ;;  %v5218_v41 = vpack.c.bf16 %v1017_v33, %v1013_v32  ;;  %v1058_v32 = vld [vmem:[#allocation11 + $0xef8] sm:$0xff] }
 0x1bc   : > { %2155 = vmatprep.mubr.f32.mxu1 %v472_v38  ;;  %4945 = vmatprep.subr.bf16.mxu0 %v4944_v39  ;;  %v4962_v38 = vpack.c.bf16 %v1015_v29, %v1011_v28  ;;  %v1022_v39 = vld [vmem:[#allocation11 + $0xdd8] sm:$0xff]  ;;  %v1056_v28 = vld [vmem:[#allocation11 + $0xee8] sm:$0xff]  ;;  %v535_v29 = vld [vmem:[%s6965_s24 + $0x2a0] sm:$0xff] }
 0x1bd   : > { %1512 = vmatmul.mubr.f32.gmra.mrb[4].mxu0 %v471_v45  ;;  %5201 = vmatprep.subr.bf16.mxu1 %v5200_v42  ;;  %v1019_v42 = vld [vmem:[#allocation11 + $0xdc0] sm:$0xff]  ;;  %v5220_v48 = vpack.c.bf16 %v1026_v40, %v1022_v39  ;;  %v1057_v39 = vld [vmem:[#allocation11 + $0xef0] sm:$0xff] }
 0x1be   : > { %2156 = vmatmul.mubr.f32.gmra.mrb[4].mxu1 %v471_v45  ;;  %4947 = vmatpush1.bf16.msra.mxu0 %v4946_v46  ;;  %v4964_v45 = vpack.c.bf16 %v1024_v36, %v1020_v35  ;;  %v1021_v46 = vld [vmem:[#allocation11 + $0xdd0] sm:$0xff]  ;;  %v1055_v35 = vld [vmem:[#allocation11 + $0xee0] sm:$0xff]  ;;  %v544_v36 = vld [vmem:[%s6965_s24 + $0x2e8] sm:$0xff] }
 0x1bf   : > { %5203 = vmatpush1.bf16.msra.mxu1 %v5202_v49  ;;  %1517 = vmatprep.mubr.f32.mxu0 %v480_v52  ;;  %v1028_v49 = vld [vmem:[#allocation11 + $0xe08] sm:$0xff]  ;;  %v5222_v55 = vpack.c.bf16 %v1025_v47, %v1021_v46  ;;  %v1066_v46 = vld [vmem:[#allocation11 + $0xf38] sm:$0xff] }
 0x1c0   : > { %2161 = vmatprep.mubr.f32.mxu1 %v480_v52  ;;  %4949 = vmatprep.subr.bf16.mxu0 %v4948_v53  ;;  %v4966_v52 = vpack.c.bf16 %v1023_v43, %v1019_v42  ;;  %v1030_v53 = vld [vmem:[#allocation11 + $0xe18] sm:$0xff]  ;;  %v1064_v42 = vld [vmem:[#allocation11 + $0xf28] sm:$0xff]  ;;  %v543_v43 = vld [vmem:[%s6965_s24 + $0x2e0] sm:$0xff] }
 0x1c1   : > { %1518 = vmatmul.mubr.f32.gmra.mrb[6].mxu0 %v479_v59  ;;  %5205 = vmatprep.subr.bf16.mxu1 %v5204_v56  ;;  %v1027_v56 = vld [vmem:[#allocation11 + $0xe00] sm:$0xff]  ;;  %v5224_v62 = vpack.c.bf16 %v1034_v54, %v1030_v53  ;;  %v1065_v53 = vld [vmem:[#allocation11 + $0xf30] sm:$0xff] }
 0x1c2   : > { %2162 = vmatmul.mubr.f32.gmra.mrb[6].mxu1 %v479_v59  ;;  %4951 = vmatpush1.bf16.msra.mxu0 %v4950_v60  ;;  %v4968_v59 = vpack.c.bf16 %v1032_v50, %v1028_v49  ;;  %v1029_v60 = vld [vmem:[#allocation11 + $0xe10] sm:$0xff]  ;;  %v1063_v49 = vld [vmem:[#allocation11 + $0xf20] sm:$0xff]  ;;  %v552_v50 = vld [vmem:[%s6965_s24 + $0x328] sm:$0xff] }
 0x1c3   : > { %5207 = vmatpush1.bf16.msra.mxu1 %v5206_v63  ;;  %1523 = vmatprep.mubr.f32.mxu0 %v488_v2  ;;  %v1036_v63 = vld [vmem:[#allocation11 + $0xe48] sm:$0xff]  ;;  %v5226_v5 = vpack.c.bf16 %v1033_v61, %v1029_v60  ;;  %v1074_v60 = vld [vmem:[#allocation11 + $0xf78] sm:$0xff] }
 0x1c4   : > { %2167 = vmatprep.mubr.f32.mxu1 %v488_v2  ;;  %4953 = vmatprep.subr.bf16.mxu0 %v4952_v3  ;;  %v4970_v2 = vpack.c.bf16 %v1031_v57, %v1027_v56  ;;  %v1038_v3 = vld [vmem:[#allocation11 + $0xe58] sm:$0xff]  ;;  %v1072_v56 = vld [vmem:[#allocation11 + $0xf68] sm:$0xff]  ;;  %v551_v57 = vld [vmem:[%s6965_s24 + $0x320] sm:$0xff] }
 0x1c5   : > { %1524 = vmatmul.mubr.f32.gmra.mrb[8].mxu0 %v487_v9  ;;  %5209 = vmatprep.subr.bf16.mxu1 %v5208_v6  ;;  %v1035_v6 = vld [vmem:[#allocation11 + $0xe40] sm:$0xff]  ;;  %v5228_v12 = vpack.c.bf16 %v1042_v4, %v1038_v3  ;;  %v1073_v3 = vld [vmem:[#allocation11 + $0xf70] sm:$0xff] }
 0x1c6   : > { %2168 = vmatmul.mubr.f32.gmra.mrb[8].mxu1 %v487_v9  ;;  %4955 = vmatpush1.bf16.msra.mxu0 %v4954_v10  ;;  %v4972_v9 = vpack.c.bf16 %v1040_v0, %v1036_v63  ;;  %v1037_v10 = vld [vmem:[#allocation11 + $0xe50] sm:$0xff]  ;;  %v1071_v63 = vld [vmem:[#allocation11 + $0xf60] sm:$0xff]  ;;  %v560_v0 = vld [vmem:[%s6965_s24 + $0x368] sm:$0xff] }
 0x1c7   : > { %5211 = vmatpush1.bf16.msra.mxu1 %v5210_v13  ;;  %1529 = vmatprep.mubr.f32.mxu0 %v496_v16  ;;  %v1044_v13 = vld [vmem:[#allocation11 + $0xe88] sm:$0xff]  ;;  %v5230_v19 = vpack.c.bf16 %v1041_v11, %v1037_v10  ;;  %v1082_v10 = vld [vmem:[#allocation11 + $0xfb8] sm:$0xff] }
 0x1c8   : > { %2173 = vmatprep.mubr.f32.mxu1 %v496_v16  ;;  %4957 = vmatprep.subr.bf16.mxu0 %v4956_v17  ;;  %v4974_v16 = vpack.c.bf16 %v1039_v7, %v1035_v6  ;;  %v1046_v17 = vld [vmem:[#allocation11 + $0xe98] sm:$0xff]  ;;  %v1080_v6 = vld [vmem:[#allocation11 + $0xfa8] sm:$0xff]  ;;  %v559_v7 = vld [vmem:[%s6965_s24 + $0x360] sm:$0xff] }
 0x1c9   : > { %1530 = vmatmul.mubr.f32.gmra.mrb[10].mxu0 %v495_v23  ;;  %5213 = vmatprep.subr.bf16.mxu1 %v5212_v20  ;;  %v1043_v20 = vld [vmem:[#allocation11 + $0xe80] sm:$0xff]  ;;  %v5232_v26 = vpack.c.bf16 %v1050_v18, %v1046_v17  ;;  %v1081_v17 = vld [vmem:[#allocation11 + $0xfb0] sm:$0xff] }
 0x1ca   : > { %2174 = vmatmul.mubr.f32.gmra.mrb[10].mxu1 %v495_v23  ;;  %4959 = vmatpush1.bf16.msra.mxu0 %v4958_v24  ;;  %v4976_v23 = vpack.c.bf16 %v1048_v14, %v1044_v13  ;;  %v1045_v24 = vld [vmem:[#allocation11 + $0xe90] sm:$0xff]  ;;  %v1079_v13 = vld [vmem:[#allocation11 + $0xfa0] sm:$0xff]  ;;  %v568_v14 = vld [vmem:[%s6965_s24 + $0x3a8] sm:$0xff] }
 0x1cb   : > { %5215 = vmatpush1.bf16.msra.mxu1 %v5214_v27  ;;  %1535 = vmatprep.mubr.f32.mxu0 %v504_v30  ;;  %v1052_v27 = vld [vmem:[#allocation11 + $0xec8] sm:$0xff]  ;;  %v5234_v33 = vpack.c.bf16 %v1049_v25, %v1045_v24  ;;  %v1090_v24 = vld [vmem:[#allocation11 + $0xff8] sm:$0xff] }
 0x1cc   : > { %2179 = vmatprep.mubr.f32.mxu1 %v504_v30  ;;  %4961 = vmatprep.subr.bf16.mxu0 %v4960_v31  ;;  %v4978_v30 = vpack.c.bf16 %v1047_v21, %v1043_v20  ;;  %v1054_v31 = vld [vmem:[#allocation11 + $0xed8] sm:$0xff]  ;;  %v1088_v20 = vld [vmem:[#allocation11 + $0xfe8] sm:$0xff]  ;;  %v567_v21 = vld [vmem:[%s6965_s24 + $0x3a0] sm:$0xff] }
 0x1cd   : > { %1536 = vmatmul.mubr.f32.gmra.mrb[12].mxu0 %v503_v37  ;;  %5217 = vmatprep.subr.bf16.mxu1 %v5216_v34  ;;  %v1051_v34 = vld [vmem:[#allocation11 + $0xec0] sm:$0xff]  ;;  %v5236_v40 = vpack.c.bf16 %v1058_v32, %v1054_v31  ;;  %v1089_v31 = vld [vmem:[#allocation11 + $0xff0] sm:$0xff] }
 0x1ce   : > { %2180 = vmatmul.mubr.f32.gmra.mrb[12].mxu1 %v503_v37  ;;  %4963 = vmatpush1.bf16.msra.mxu0 %v4962_v38  ;;  %v4980_v37 = vpack.c.bf16 %v1056_v28, %v1052_v27  ;;  %v1053_v38 = vld [vmem:[#allocation11 + $0xed0] sm:$0xff]  ;;  %v1087_v27 = vld [vmem:[#allocation11 + $0xfe0] sm:$0xff]  ;;  %v576_v28 = vld [vmem:[%s6965_s24 + $0x3e8] sm:$0xff] }
 0x1cf   : > { %5219 = vmatpush1.bf16.msra.mxu1 %v5218_v41  ;;  %1541 = vmatprep.mubr.f32.mxu0 %v512_v44  ;;  %v1060_v41 = vld [vmem:[#allocation11 + $0xf08] sm:$0xff]  ;;  %v5238_v47 = vpack.c.bf16 %v1057_v39, %v1053_v38  ;;  %v2472_v38 = vld [vmem:[#allocation14 + $0x38] sm:$0xff] }
 0x1d0   : > { %2185 = vmatprep.mubr.f32.mxu1 %v512_v44  ;;  %4965 = vmatprep.subr.bf16.mxu0 %v4964_v45  ;;  %v4982_v44 = vpack.c.bf16 %v1055_v35, %v1051_v34  ;;  %v1062_v45 = vld [vmem:[#allocation11 + $0xf18] sm:$0xff]  ;;  %v2470_v34 = vld [vmem:[#allocation14 + $0x28] sm:$0xff]  ;;  %v575_v35 = vld [vmem:[%s6965_s24 + $0x3e0] sm:$0xff] }
 0x1d1   : > { %1542 = vmatmul.mubr.f32.gmra.mrb[14].mxu0 %v511_v51  ;;  %5221 = vmatprep.subr.bf16.mxu1 %v5220_v48  ;;  %v1059_v48 = vld [vmem:[#allocation11 + $0xf00] sm:$0xff]  ;;  %v5240_v54 = vpack.c.bf16 %v1066_v46, %v1062_v45  ;;  %v2471_v46 = vld [vmem:[#allocation14 + $0x30] sm:$0xff] }
 0x1d2   : > { %2186 = vmatmul.mubr.f32.gmra.mrb[14].mxu1 %v511_v51  ;;  %4967 = vmatpush1.bf16.msra.mxu0 %v4966_v52  ;;  %v4984_v51 = vpack.c.bf16 %v1064_v42, %v1060_v41  ;;  %v1061_v52 = vld [vmem:[#allocation11 + $0xf10] sm:$0xff]  ;;  %v2465_v42 = vld [vmem:[#allocation14] sm:$0xff] }
 0x1d3   : > { %5223 = vmatpush1.bf16.msra.mxu1 %v5222_v55  ;;  %1547 = vmatprep.mubr.f32.mxu0 %v520_v58  ;;  %v1068_v55 = vld [vmem:[#allocation11 + $0xf48] sm:$0xff]  ;;  %v5242_v61 = vpack.c.bf16 %v1065_v53, %v1061_v52  ;;  %v466_v52 = vld [vmem:[%s6965_s24 + $0x78] sm:$0xff] }
 0x1d4   : > { %2191 = vmatprep.mubr.f32.mxu1 %v520_v58  ;;  %4969 = vmatprep.subr.bf16.mxu0 %v4968_v59  ;;  %v4986_v58 = vpack.c.bf16 %v1063_v49, %v1059_v48  ;;  %v1070_v59 = vld [vmem:[#allocation11 + $0xf58] sm:$0xff]  ;;  %v2478_v48 = vld [vmem:[#allocation14 + $0x68] sm:$0xff] }
 0x1d5   : > { %1548 = vmatmul.mubr.f32.gmra.mrb[16].mxu0 %v519_v1  ;;  %5225 = vmatprep.subr.bf16.mxu1 %v5224_v62  ;;  %v1067_v62 = vld [vmem:[#allocation11 + $0xf40] sm:$0xff]  ;;  %v5244_v4 = vpack.c.bf16 %v1074_v60, %v1070_v59  ;;  %v457_v49 = vld [vmem:[%s6965_s24 + $0x30] sm:$0xff] }
 0x1d6   : > { %2192 = vmatmul.mubr.f32.gmra.mrb[16].mxu1 %v519_v1  ;;  %4971 = vmatpush1.bf16.msra.mxu0 %v4970_v2  ;;  %v4988_v1 = vpack.c.bf16 %v1072_v56, %v1068_v55  ;;  %v1069_v2 = vld [vmem:[#allocation11 + $0xf50] sm:$0xff]  ;;  %v2473_v56 = vld [vmem:[#allocation14 + $0x40] sm:$0xff] }
 0x1d7   : > { %5227 = vmatpush1.bf16.msra.mxu1 %v5226_v5  ;;  %1553 = vmatprep.mubr.f32.mxu0 %v528_v8  ;;  %v1076_v5 = vld [vmem:[#allocation11 + $0xf88] sm:$0xff]  ;;  %v5246_v11 = vpack.c.bf16 %v1073_v3, %v1069_v2  ;;  %v2479_v60 = vld [vmem:[#allocation14 + $0x70] sm:$0xff] }
 0x1d8   : > { %2197 = vmatprep.mubr.f32.mxu1 %v528_v8  ;;  %4973 = vmatprep.subr.bf16.mxu0 %v4972_v9  ;;  %v4990_v8 = vpack.c.bf16 %v1071_v63, %v1067_v62  ;;  %v1078_v9 = vld [vmem:[#allocation11 + $0xf98] sm:$0xff]  ;;  %v2486_v62 = vld [vmem:[#allocation14 + $0xa8] sm:$0xff] }
 0x1d9   : > { %1554 = vmatmul.mubr.f32.gmra.mrb[18].mxu0 %v527_v15  ;;  %5229 = vmatprep.subr.bf16.mxu1 %v5228_v12  ;;  %v1075_v12 = vld [vmem:[#allocation11 + $0xf80] sm:$0xff]  ;;  %v5248_v18 = vpack.c.bf16 %v1082_v10, %v1078_v9  ;;  %v465_v63 = vld [vmem:[%s6965_s24 + $0x70] sm:$0xff]  ;;  %v474_v2 = vld [vmem:[%s6965_s24 + $0xb8] sm:$0xff] }
 0x1da   : > { %2198 = vmatmul.mubr.f32.gmra.mrb[18].mxu1 %v527_v15  ;;  %4975 = vmatpush1.bf16.msra.mxu0 %v4974_v16  ;;  %v4992_v15 = vpack.c.bf16 %v1080_v6, %v1076_v5  ;;  %v1077_v16 = vld [vmem:[#allocation11 + $0xf90] sm:$0xff]  ;;  %v2481_v6 = vld [vmem:[#allocation14 + $0x80] sm:$0xff] }
 0x1db   : > { %5231 = vmatpush1.bf16.msra.mxu1 %v5230_v19  ;;  %1559 = vmatprep.mubr.f32.mxu0 %v536_v22  ;;  %v1084_v19 = vld [vmem:[#allocation11 + $0xfc8] sm:$0xff]  ;;  %v5250_v25 = vpack.c.bf16 %v1081_v17, %v1077_v16  ;;  %v2487_v10 = vld [vmem:[#allocation14 + $0xb0] sm:$0xff] }
 0x1dc   : > { %2203 = vmatprep.mubr.f32.mxu1 %v536_v22  ;;  %4977 = vmatprep.subr.bf16.mxu0 %v4976_v23  ;;  %v4994_v22 = vpack.c.bf16 %v1079_v13, %v1075_v12  ;;  %v1086_v23 = vld [vmem:[#allocation11 + $0xfd8] sm:$0xff]  ;;  %v2494_v12 = vld [vmem:[#allocation14 + $0xe8] sm:$0xff] }
 0x1dd   : > { %1560 = vmatmul.mubr.f32.gmra.mrb[20].mxu0 %v535_v29  ;;  %5233 = vmatprep.subr.bf16.mxu1 %v5232_v26  ;;  %v1083_v26 = vld [vmem:[#allocation11 + $0xfc0] sm:$0xff]  ;;  %v5252_v32 = vpack.c.bf16 %v1090_v24, %v1086_v23  ;;  %v473_v13 = vld [vmem:[%s6965_s24 + $0xb0] sm:$0xff]  ;;  %v482_v16 = vld [vmem:[%s6965_s24 + $0xf8] sm:$0xff] }
 0x1de   : > { %2204 = vmatmul.mubr.f32.gmra.mrb[20].mxu1 %v535_v29  ;;  %4979 = vmatpush1.bf16.msra.mxu0 %v4978_v30  ;;  %v4996_v29 = vpack.c.bf16 %v1088_v20, %v1084_v19  ;;  %v1085_v30 = vld [vmem:[#allocation11 + $0xfd0] sm:$0xff]  ;;  %v2489_v20 = vld [vmem:[#allocation14 + $0xc0] sm:$0xff] }
 0x1df   : > { %5235 = vmatpush1.bf16.msra.mxu1 %v5234_v33  ;;  %1565 = vmatprep.mubr.f32.mxu0 %v544_v36  ;;  %v2466_v33 = vld [vmem:[#allocation14 + $0x8] sm:$0xff]  ;;  %v5254_v39 = vpack.c.bf16 %v1089_v31, %v1085_v30  ;;  %v2495_v24 = vld [vmem:[#allocation14 + $0xf0] sm:$0xff] }
 0x1e0   : > { %2209 = vmatprep.mubr.f32.mxu1 %v544_v36  ;;  %4981 = vmatprep.subr.bf16.mxu0 %v4980_v37  ;;  %v4998_v36 = vpack.c.bf16 %v1087_v27, %v1083_v26  ;;  %v2468_v37 = vld [vmem:[#allocation14 + $0x18] sm:$0xff]  ;;  %v5256_v41 = vpack.c.bf16 %v2470_v34, %v2466_v33  ;;  %v2502_v26 = vld [vmem:[#allocation14 + $0x128] sm:$0xff]  ;;  %v2497_v34 = vld [vmem:[#allocation14 + $0x100] sm:$0xff] }
 0x1e1   : > { %1566 = vmatmul.mubr.f32.gmra.mrb[22].mxu0 %v543_v43  ;;  %5237 = vmatprep.subr.bf16.mxu1 %v5236_v40  ;;  %v458_v40 = vld [vmem:[%s6965_s24 + $0x38] sm:$0xff]  ;;  %v5384_v45 = vpack.c.bf16 %v2472_v38, %v2468_v37  ;;  %v481_v27 = vld [vmem:[%s6965_s24 + $0xf0] sm:$0xff] }
 0x1e2   : > { %2210 = vmatmul.mubr.f32.gmra.mrb[22].mxu1 %v543_v43  ;;  %4983 = vmatpush1.bf16.msra.mxu0 %v4982_v44  ;;  %v2469_v43 = vld [vmem:[#allocation14 + $0x20] sm:$0xff]  ;;  %v2467_v44 = vld [vmem:[#allocation14 + $0x10] sm:$0xff] }
 0x1e3   : > { %5239 = vmatpush1.bf16.msra.mxu1 %v5238_v47  ;;  %1571 = vmatprep.mubr.f32.mxu0 %v552_v50  ;;  %v2474_v47 = vld [vmem:[#allocation14 + $0x48] sm:$0xff]  ;;  %v5258_v53 = vpack.c.bf16 %v2469_v43, %v2465_v42  ;;  %v490_v30 = vld [vmem:[%s6965_s24 + $0x138] sm:$0xff] }
 0x1e4   : > { %2215 = vmatprep.mubr.f32.mxu1 %v552_v50  ;;  %4985 = vmatprep.subr.bf16.mxu0 %v4984_v51  ;;  %v2476_v50 = vld [vmem:[#allocation14 + $0x58] sm:$0xff]  ;;  %v5260_v55 = vpack.c.bf16 %v2478_v48, %v2474_v47  ;;  %v2503_v38 = vld [vmem:[#allocation14 + $0x130] sm:$0xff]  ;;  %v2505_v48 = vld [vmem:[#allocation14 + $0x140] sm:$0xff] }
 0x1e5   : > { %1572 = vmatmul.mubr.f32.gmra.mrb[24].mxu0 %v551_v57  ;;  %5241 = vmatprep.subr.bf16.mxu1 %v5240_v54  ;;  %v2480_v51 = vld [vmem:[#allocation14 + $0x78] sm:$0xff]  ;;  %v5386_v54 = vpack.c.bf16 %v2471_v46, %v2467_v44 }
 0x1e6   : > { %2216 = vmatmul.mubr.f32.gmra.mrb[24].mxu1 %v551_v57  ;;  %4987 = vmatpush1.bf16.msra.mxu0 %v4986_v58  ;;  %v2477_v57 = vld [vmem:[#allocation14 + $0x60] sm:$0xff]  ;;  %v2475_v58 = vld [vmem:[#allocation14 + $0x50] sm:$0xff]  ;;  %v5388_v59 = vpack.c.bf16 %v2480_v51, %v2476_v50  ;;  %v2508_v42 = vld [vmem:[#allocation14 + $0x158] sm:$0xff] }
 0x1e7   : > { %5243 = vmatpush1.bf16.msra.mxu1 %v5242_v61  ;;  %1577 = vmatprep.mubr.f32.mxu0 %v560_v0  ;;  %v2482_v61 = vld [vmem:[#allocation14 + $0x88] sm:$0xff]  ;;  %v5262_v3 = vpack.c.bf16 %v2477_v57, %v2473_v56  ;;  %v2512_v43 = vld [vmem:[#allocation14 + $0x178] sm:$0xff]  ;;  %v2507_v50 = vld [vmem:[#allocation14 + $0x150] sm:$0xff] }
 0x1e8   : > { %2221 = vmatprep.mubr.f32.mxu1 %v560_v0  ;;  %4989 = vmatprep.subr.bf16.mxu0 %v4988_v1  ;;  %v2484_v0 = vld [vmem:[#allocation14 + $0x98] sm:$0xff]  ;;  %v5264_v5 = vpack.c.bf16 %v2486_v62, %v2482_v61  ;;  %v5404_v51 = vpack.c.bf16 %v2512_v43, %v2508_v42  ;;  %v2513_v62 = vld [vmem:[#allocation14 + $0x180] sm:$0xff]  ;;  %v2539_v42 = vld [vmem:[#allocation14 + $0x250] sm:$0xff] }
 0x1e9   : > { %1578 = vmatmul.mubr.f32.gmra.mrb[26].mxu0 %v559_v7  ;;  %5245 = vmatprep.subr.bf16.mxu1 %v5244_v4  ;;  %v2488_v1 = vld [vmem:[#allocation14 + $0xb8] sm:$0xff]  ;;  %v5390_v4 = vpack.c.bf16 %v2479_v60, %v2475_v58 }
 0x1ea   : > { %2222 = vmatmul.mubr.f32.gmra.mrb[26].mxu1 %v559_v7  ;;  %4991 = vmatpush1.bf16.msra.mxu0 %v4990_v8  ;;  %v2485_v7 = vld [vmem:[#allocation14 + $0xa0] sm:$0xff]  ;;  %v2483_v8 = vld [vmem:[#allocation14 + $0x90] sm:$0xff]  ;;  %v5392_v9 = vpack.c.bf16 %v2488_v1, %v2484_v0  ;;  %v2516_v56 = vld [vmem:[#allocation14 + $0x198] sm:$0xff] }
 0x1eb   : > { %5247 = vmatpush1.bf16.msra.mxu1 %v5246_v11  ;;  %1583 = vmatprep.mubr.f32.mxu0 %v568_v14  ;;  %v2490_v11 = vld [vmem:[#allocation14 + $0xc8] sm:$0xff]  ;;  %v5266_v17 = vpack.c.bf16 %v2485_v7, %v2481_v6  ;;  %v498_v44 = vld [vmem:[%s6965_s24 + $0x178] sm:$0xff] }
 0x1ec   : > { %2227 = vmatprep.mubr.f32.mxu1 %v568_v14  ;;  %4993 = vmatprep.subr.bf16.mxu0 %v4992_v15  ;;  %v2492_v14 = vld [vmem:[#allocation14 + $0xd8] sm:$0xff]  ;;  %v5268_v19 = vpack.c.bf16 %v2494_v12, %v2490_v11  ;;  %v2515_v0 = vld [vmem:[#allocation14 + $0x190] sm:$0xff]  ;;  %v2521_v12 = vld [vmem:[#allocation14 + $0x1c0] sm:$0xff] }
 0x1ed   : > { %1584 = vmatmul.mubr.f32.gmra.mrb[28].mxu0 %v567_v21  ;;  %5249 = vmatprep.subr.bf16.mxu1 %v5248_v18  ;;  %v2496_v15 = vld [vmem:[#allocation14 + $0xf8] sm:$0xff]  ;;  %v5394_v18 = vpack.c.bf16 %v2487_v10, %v2483_v8 }
 0x1ee   : > { %2228 = vmatmul.mubr.f32.gmra.mrb[28].mxu1 %v567_v21  ;;  %4995 = vmatpush1.bf16.msra.mxu0 %v4994_v22  ;;  %v2493_v21 = vld [vmem:[#allocation14 + $0xe0] sm:$0xff]  ;;  %v2491_v22 = vld [vmem:[#allocation14 + $0xd0] sm:$0xff]  ;;  %v5396_v23 = vpack.c.bf16 %v2496_v15, %v2492_v14  ;;  %v2520_v57 = vld [vmem:[#allocation14 + $0x1b8] sm:$0xff] }
 0x1ef   : > { %5251 = vmatpush1.bf16.msra.mxu1 %v5250_v25  ;;  %1589 = vmatprep.mubr.f32.mxu0 %v576_v28  ;;  %v2498_v25 = vld [vmem:[#allocation14 + $0x108] sm:$0xff]  ;;  %v5270_v31 = vpack.c.bf16 %v2493_v21, %v2489_v20  ;;  %v506_v58 = vld [vmem:[%s6965_s24 + $0x1b8] sm:$0xff]  ;;  %v5408_v1 = vpack.c.bf16 %v2520_v57, %v2516_v56 }
 0x1f0   : > { %2233 = vmatprep.mubr.f32.mxu1 %v576_v28  ;;  %4997 = vmatprep.subr.bf16.mxu0 %v4996_v29  ;;  %v2500_v28 = vld [vmem:[#allocation14 + $0x118] sm:$0xff]  ;;  %v5272_v33 = vpack.c.bf16 %v2502_v26, %v2498_v25  ;;  %v2523_v14 = vld [vmem:[#allocation14 + $0x1d0] sm:$0xff]  ;;  %v2529_v26 = vld [vmem:[#allocation14 + $0x200] sm:$0xff] }
 0x1f1   : > { %1590 = vmatmul.mubr.f32.gmra.mrb[30].mxu0 %v575_v35  ;;  %5253 = vmatprep.subr.bf16.mxu1 %v5252_v32  ;;  %v2504_v29 = vld [vmem:[#allocation14 + $0x138] sm:$0xff]  ;;  %v5398_v32 = vpack.c.bf16 %v2495_v24, %v2491_v22  ;;  %v2547_v56 = vld [vmem:[#allocation14 + $0x290] sm:$0xff] }
 0x1f2   : > { %2234 = vmatmul.mubr.f32.gmra.mrb[30].mxu1 %v575_v35  ;;  %4999 = vmatpush1.bf16.msra.mxu0 %v4998_v36  ;;  %v2501_v35 = vld [vmem:[#allocation14 + $0x120] sm:$0xff]  ;;  %v2499_v36 = vld [vmem:[#allocation14 + $0x110] sm:$0xff]  ;;  %v5400_v37 = vpack.c.bf16 %v2504_v29, %v2500_v28  ;;  %v2524_v6 = vld [vmem:[#allocation14 + $0x1d8] sm:$0xff] }
 0x1f3   : > { %5255 = vmatpush1.bf16.msra.mxu1 %v5254_v39  ;;  %1660 = vmatprep.mubr.f32.mxu0 %v458_v40  ;;  %v2506_v39 = vld [vmem:[#allocation14 + $0x148] sm:$0xff]  ;;  %v5402_v46 = vpack.c.bf16 %v2503_v38, %v2499_v36  ;;  %v2528_v7 = vld [vmem:[#allocation14 + $0x1f8] sm:$0xff]  ;;  %v2531_v28 = vld [vmem:[#allocation14 + $0x210] sm:$0xff] }
 0x1f4   : > { %2304 = vmatprep.mubr.f32.mxu1 %v458_v40  ;;  %5257 = vmatprep.subr.bf16.mxu0 %v5256_v41  ;;  %v2510_v40 = vld [vmem:[#allocation14 + $0x168] sm:$0xff]  ;;  %v514_v8 = vld [vmem:[%s6965_s24 + $0x1f8] sm:$0xff]  ;;  %v5412_v15 = vpack.c.bf16 %v2528_v7, %v2524_v6 }
 0x1f5   : > { %1661 = vmatmul.mubr.f32.vlgmr.msra.gmra.mrb[0].mxu0 %v457_v49  ;;  %5385 = vmatprep.subr.bf16.mxu1 %v5384_v45  ;;  %v489_v41 = vld [vmem:[%s6965_s24 + $0x130] sm:$0xff]  ;;  %v5274_v45 = vpack.c.bf16 %v2501_v35, %v2497_v34  ;;  %v5276_v47 = vpack.c.bf16 %v2510_v40, %v2506_v39  ;;  %v2532_v20 = vld [vmem:[#allocation14 + $0x218] sm:$0xff]  ;;  %v2537_v40 = vld [vmem:[#allocation14 + $0x240] sm:$0xff] }
 0x1f6   : > { %2305 = vmatmul.mubr.f32.vlgmr.msra.gmra.mrb[0].mxu1 %v457_v49  ;;  %1666 = vmatprep.mubr.f32.mxu0 %v466_v52  ;;  %v2509_v49 = vld [vmem:[#allocation14 + $0x160] sm:$0xff]  ;;  %v2536_v21 = vld [vmem:[#allocation14 + $0x238] sm:$0xff]  ;;  %v2555_v6 = vld [vmem:[#allocation14 + $0x2d0] sm:$0xff] }
 0x1f7   : > { %2310 = vmatprep.mubr.f32.mxu1 %v466_v52  ;;  %5259 = vmatpush1.bf16.msra.mxu0 %v5258_v53  ;;  %v2511_v52 = vld [vmem:[#allocation14 + $0x170] sm:$0xff]  ;;  %v2514_v53 = vld [vmem:[#allocation14 + $0x188] sm:$0xff]  ;;  %v5416_v29 = vpack.c.bf16 %v2536_v21, %v2532_v20  ;;  %v2540_v34 = vld [vmem:[#allocation14 + $0x258] sm:$0xff] }
 0x1f8   : > { %5387 = vmatpush1.bf16.msra.mxu1 %v5386_v54  ;;  %5261 = vmatprep.subr.bf16.mxu0 %v5260_v55  ;;  %v2518_v54 = vld [vmem:[#allocation14 + $0x1a8] sm:$0xff]  ;;  %v5406_v60 = vpack.c.bf16 %v2511_v52, %v2507_v50  ;;  %v522_v22 = vld [vmem:[%s6965_s24 + $0x238] sm:$0xff] }
 0x1f9   : > { %1667 = vmatmul.mubr.f32.gmra.mrb[2].mxu0 %v465_v63  ;;  %5389 = vmatprep.subr.bf16.mxu1 %v5388_v59  ;;  %v497_v55 = vld [vmem:[%s6965_s24 + $0x170] sm:$0xff]  ;;  %v5278_v59 = vpack.c.bf16 %v2509_v49, %v2505_v48  ;;  %v5280_v61 = vpack.c.bf16 %v2518_v54, %v2514_v53  ;;  %v2544_v35 = vld [vmem:[#allocation14 + $0x278] sm:$0xff]  ;;  %v2545_v54 = vld [vmem:[#allocation14 + $0x280] sm:$0xff] }
 0x1fa   : > { %2311 = vmatmul.mubr.f32.gmra.mrb[2].mxu1 %v465_v63  ;;  %1672 = vmatprep.mubr.f32.mxu0 %v474_v2  ;;  %v2517_v63 = vld [vmem:[#allocation14 + $0x1a0] sm:$0xff]  ;;  %v530_v36 = vld [vmem:[%s6965_s24 + $0x278] sm:$0xff]  ;;  %v5420_v43 = vpack.c.bf16 %v2544_v35, %v2540_v34 }
 0x1fb   : > { %2316 = vmatprep.mubr.f32.mxu1 %v474_v2  ;;  %5263 = vmatpush1.bf16.msra.mxu0 %v5262_v3  ;;  %v2519_v2 = vld [vmem:[#allocation14 + $0x1b0] sm:$0xff]  ;;  %v2522_v3 = vld [vmem:[#allocation14 + $0x1c8] sm:$0xff]  ;;  %v2548_v48 = vld [vmem:[#allocation14 + $0x298] sm:$0xff] }
 0x1fc   : > { %5391 = vmatpush1.bf16.msra.mxu1 %v5390_v4  ;;  %5265 = vmatprep.subr.bf16.mxu0 %v5264_v5  ;;  %v2526_v4 = vld [vmem:[#allocation14 + $0x1e8] sm:$0xff]  ;;  %v5410_v10 = vpack.c.bf16 %v2519_v2, %v2515_v0  ;;  %v2552_v49 = vld [vmem:[#allocation14 + $0x2b8] sm:$0xff]  ;;  %v2563_v20 = vld [vmem:[#allocation14 + $0x310] sm:$0xff] }
 0x1fd   : > { %1673 = vmatmul.mubr.f32.gmra.mrb[4].mxu0 %v473_v13  ;;  %5393 = vmatprep.subr.bf16.mxu1 %v5392_v9  ;;  %v505_v5 = vld [vmem:[%s6965_s24 + $0x1b0] sm:$0xff]  ;;  %v5282_v9 = vpack.c.bf16 %v2517_v63, %v2513_v62  ;;  %v5284_v11 = vpack.c.bf16 %v2526_v4, %v2522_v3  ;;  %v538_v50 = vld [vmem:[%s6965_s24 + $0x2b8] sm:$0xff]  ;;  %v5424_v57 = vpack.c.bf16 %v2552_v49, %v2548_v48  ;;  %v2553_v4 = vld [vmem:[#allocation14 + $0x2c0] sm:$0xff] }
 0x1fe   : > { %2317 = vmatmul.mubr.f32.gmra.mrb[4].mxu1 %v473_v13  ;;  %1678 = vmatprep.mubr.f32.mxu0 %v482_v16  ;;  %v2525_v13 = vld [vmem:[#allocation14 + $0x1e0] sm:$0xff]  ;;  %v2556_v62 = vld [vmem:[#allocation14 + $0x2d8] sm:$0xff]  ;;  %v2571_v34 = vld [vmem:[#allocation14 + $0x350] sm:$0xff] }
 0x1ff   : > { %2322 = vmatprep.mubr.f32.mxu1 %v482_v16  ;;  %5267 = vmatpush1.bf16.msra.mxu0 %v5266_v17  ;;  %v2527_v16 = vld [vmem:[#allocation14 + $0x1f0] sm:$0xff]  ;;  %v2530_v17 = vld [vmem:[#allocation14 + $0x208] sm:$0xff]  ;;  %v2560_v63 = vld [vmem:[#allocation14 + $0x2f8] sm:$0xff] }
 0x200   : > { %5395 = vmatpush1.bf16.msra.mxu1 %v5394_v18  ;;  %5269 = vmatprep.subr.bf16.mxu0 %v5268_v19  ;;  %v2534_v18 = vld [vmem:[#allocation14 + $0x228] sm:$0xff]  ;;  %v5414_v24 = vpack.c.bf16 %v2527_v16, %v2523_v14  ;;  %v546_v0 = vld [vmem:[%s6965_s24 + $0x2f8] sm:$0xff]  ;;  %v5428_v7 = vpack.c.bf16 %v2560_v63, %v2556_v62  ;;  %v2589_v62 = vld [vmem:[#allocation14 + $0x3e0] sm:$0xff] }
 0x201   : > { %1679 = vmatmul.mubr.f32.gmra.mrb[6].mxu0 %v481_v27  ;;  %5397 = vmatprep.subr.bf16.mxu1 %v5396_v23  ;;  %v513_v19 = vld [vmem:[%s6965_s24 + $0x1f0] sm:$0xff]  ;;  %v5286_v23 = vpack.c.bf16 %v2525_v13, %v2521_v12  ;;  %v5288_v25 = vpack.c.bf16 %v2534_v18, %v2530_v17  ;;  %v2564_v12 = vld [vmem:[#allocation14 + $0x318] sm:$0xff]  ;;  %v2561_v18 = vld [vmem:[#allocation14 + $0x300] sm:$0xff] }
 0x202   : > { %2323 = vmatmul.mubr.f32.gmra.mrb[6].mxu1 %v481_v27  ;;  %1684 = vmatprep.mubr.f32.mxu0 %v490_v30  ;;  %v2533_v27 = vld [vmem:[#allocation14 + $0x220] sm:$0xff]  ;;  %v2568_v13 = vld [vmem:[#allocation14 + $0x338] sm:$0xff]  ;;  %v577_v49 = vld [vmem:[%s6965_s24 + $0x3f0] sm:$0xff] }
 0x203   : > { %2328 = vmatprep.mubr.f32.mxu1 %v490_v30  ;;  %5271 = vmatpush1.bf16.msra.mxu0 %v5270_v31  ;;  %v2535_v30 = vld [vmem:[#allocation14 + $0x230] sm:$0xff]  ;;  %v2538_v31 = vld [vmem:[#allocation14 + $0x248] sm:$0xff]  ;;  %v5432_v21 = vpack.c.bf16 %v2568_v13, %v2564_v12  ;;  %v7123_v13 = vld [vmem:[#allocation13] sm:$0xf] }
 0x204   : > { %5399 = vmatpush1.bf16.msra.mxu1 %v5398_v32  ;;  %5273 = vmatprep.subr.bf16.mxu0 %v5272_v33  ;;  %v2542_v32 = vld [vmem:[#allocation14 + $0x268] sm:$0xff]  ;;  %v5418_v38 = vpack.c.bf16 %v2535_v30, %v2531_v28  ;;  %v554_v14 = vld [vmem:[%s6965_s24 + $0x338] sm:$0xff] }
 0x205   : > { %1685 = vmatmul.mubr.f32.gmra.mrb[8].mxu0 %v489_v41  ;;  %5401 = vmatprep.subr.bf16.mxu1 %v5400_v37  ;;  %v521_v33 = vld [vmem:[%s6965_s24 + $0x230] sm:$0xff]  ;;  %v5290_v37 = vpack.c.bf16 %v2533_v27, %v2529_v26  ;;  %v5292_v39 = vpack.c.bf16 %v2542_v32, %v2538_v31  ;;  %v2572_v26 = vld [vmem:[#allocation14 + $0x358] sm:$0xff]  ;;  %v2569_v32 = vld [vmem:[#allocation14 + $0x340] sm:$0xff] }
 0x206   : > { %2329 = vmatmul.mubr.f32.gmra.mrb[8].mxu1 %v489_v41  ;;  %1690 = vmatprep.mubr.f32.mxu0 %v498_v44  ;;  %v2541_v41 = vld [vmem:[#allocation14 + $0x260] sm:$0xff]  ;;  %v2576_v27 = vld [vmem:[#allocation14 + $0x378] sm:$0xff] }
 0x207   : > { %2334 = vmatprep.mubr.f32.mxu1 %v498_v44  ;;  %5275 = vmatpush1.bf16.msra.mxu0 %v5274_v45  ;;  %v2543_v44 = vld [vmem:[#allocation14 + $0x270] sm:$0xff]  ;;  %v2546_v45 = vld [vmem:[#allocation14 + $0x288] sm:$0xff]  ;;  %v5436_v35 = vpack.c.bf16 %v2576_v27, %v2572_v26 }
 0x208   : > { %5403 = vmatpush1.bf16.msra.mxu1 %v5402_v46  ;;  %5277 = vmatprep.subr.bf16.mxu0 %v5276_v47  ;;  %v2550_v46 = vld [vmem:[#allocation14 + $0x2a8] sm:$0xff]  ;;  %v5422_v52 = vpack.c.bf16 %v2543_v44, %v2539_v42  ;;  %v562_v28 = vld [vmem:[%s6965_s24 + $0x378] sm:$0xff] }
 0x209   : > { %1691 = vmatmul.mubr.f32.gmra.mrb[10].mxu0 %v497_v55  ;;  %5405 = vmatprep.subr.bf16.mxu1 %v5404_v51  ;;  %v529_v47 = vld [vmem:[%s6965_s24 + $0x270] sm:$0xff]  ;;  %v5294_v51 = vpack.c.bf16 %v2541_v41, %v2537_v40  ;;  %v5296_v53 = vpack.c.bf16 %v2550_v46, %v2546_v45  ;;  %v2580_v40 = vld [vmem:[#allocation14 + $0x398] sm:$0xff] }
 0x20a   : > { %2335 = vmatmul.mubr.f32.gmra.mrb[10].mxu1 %v497_v55  ;;  %1696 = vmatprep.mubr.f32.mxu0 %v506_v58  ;;  %v2549_v55 = vld [vmem:[#allocation14 + $0x2a0] sm:$0xff]  ;;  %v2584_v41 = vld [vmem:[#allocation14 + $0x3b8] sm:$0xff] }
 0x20b   : > { %2340 = vmatprep.mubr.f32.mxu1 %v506_v58  ;;  %5279 = vmatpush1.bf16.msra.mxu0 %v5278_v59  ;;  %v2551_v58 = vld [vmem:[#allocation14 + $0x2b0] sm:$0xff]  ;;  %v2554_v59 = vld [vmem:[#allocation14 + $0x2c8] sm:$0xff]  ;;  %v5440_v46 = vpack.c.bf16 %v2584_v41, %v2580_v40 }
 0x20c   : > { %5407 = vmatpush1.bf16.msra.mxu1 %v5406_v60  ;;  %5281 = vmatprep.subr.bf16.mxu0 %v5280_v61  ;;  %v2558_v60 = vld [vmem:[#allocation14 + $0x2e8] sm:$0xff]  ;;  %v5426_v2 = vpack.c.bf16 %v2551_v58, %v2547_v56  ;;  %v570_v42 = vld [vmem:[%s6965_s24 + $0x3b8] sm:$0xff] }
 0x20d   : > { %1697 = vmatmul.mubr.f32.gmra.mrb[12].mxu0 %v505_v5  ;;  %5409 = vmatprep.subr.bf16.mxu1 %v5408_v1  ;;  %v537_v61 = vld [vmem:[%s6965_s24 + $0x2b0] sm:$0xff]  ;;  %v5298_v1 = vpack.c.bf16 %v2549_v55, %v2545_v54  ;;  %v5300_v3 = vpack.c.bf16 %v2558_v60, %v2554_v59  ;;  %v578_v48 = vld [vmem:[%s6965_s24 + $0x3f8] sm:$0xff] }
 0x20e   : > { %2341 = vmatmul.mubr.f32.gmra.mrb[12].mxu1 %v505_v5  ;;  %1702 = vmatprep.mubr.f32.mxu0 %v514_v8  ;;  %v2557_v5 = vld [vmem:[#allocation14 + $0x2e0] sm:$0xff]  ;;  %v2583_v54 = vld [vmem:[#allocation14 + $0x3b0] sm:$0xff]  ;;  %v2586_v56 = vld [vmem:[#allocation14 + $0x3c8] sm:$0xff] }
 0x20f   : > { %2346 = vmatprep.mubr.f32.mxu1 %v514_v8  ;;  %5283 = vmatpush1.bf16.msra.mxu0 %v5282_v9  ;;  %v2559_v8 = vld [vmem:[#allocation14 + $0x2f0] sm:$0xff]  ;;  %v2562_v9 = vld [vmem:[#allocation14 + $0x308] sm:$0xff]  ;;  %v2588_v58 = vld [vmem:[#allocation14 + $0x3d8] sm:$0xff] }
 0x210   : > { %5411 = vmatpush1.bf16.msra.mxu1 %v5410_v10  ;;  %5285 = vmatprep.subr.bf16.mxu0 %v5284_v11  ;;  %v2566_v10 = vld [vmem:[#allocation14 + $0x328] sm:$0xff]  ;;  %v5430_v16 = vpack.c.bf16 %v2559_v8, %v2555_v6  ;;  %v2592_v60 = vld [vmem:[#allocation14 + $0x3f8] sm:$0xff] }
 0x211   : > { %1703 = vmatmul.mubr.f32.gmra.mrb[14].mxu0 %v513_v19  ;;  %5413 = vmatprep.subr.bf16.mxu1 %v5412_v15  ;;  %v545_v11 = vld [vmem:[%s6965_s24 + $0x2f0] sm:$0xff]  ;;  %v5302_v15 = vpack.c.bf16 %v2557_v5, %v2553_v4  ;;  %v5304_v17 = vpack.c.bf16 %v2566_v10, %v2562_v9  ;;  %v5444_v63 = vpack.c.bf16 %v2592_v60, %v2588_v58  ;;  %v2596_v6 = vld [vmem:[#allocation14 + $0x418] sm:$0xff]  ;;  %v8128_v10 = vlaneseq }
 0x212   : > { %2347 = vmatmul.mubr.f32.gmra.mrb[14].mxu1 %v513_v19  ;;  %1708 = vmatprep.mubr.f32.mxu0 %v522_v22  ;;  %v2565_v19 = vld [vmem:[#allocation14 + $0x320] sm:$0xff]  ;;  %v2594_v4 = vld [vmem:[#allocation14 + $0x408] sm:$0xff]  ;;  %v2600_v8 = vld [vmem:[#allocation14 + $0x438] sm:$0xff] }
 0x213   : > { %2352 = vmatprep.mubr.f32.mxu1 %v522_v22  ;;  %5287 = vmatpush1.bf16.msra.mxu0 %v5286_v23  ;;  %v2567_v22 = vld [vmem:[#allocation14 + $0x330] sm:$0xff]  ;;  %v2570_v23 = vld [vmem:[#allocation14 + $0x348] sm:$0xff]  ;;  %v5448_v9 = vpack.c.bf16 %v2600_v8, %v2596_v6  ;;  %v2624_v6 = vld [vmem:[#allocation14 + $0x4f8] sm:$0xff] }
 0x214   : > { %5415 = vmatpush1.bf16.msra.mxu1 %v5414_v24  ;;  %5289 = vmatprep.subr.bf16.mxu0 %v5288_v25  ;;  %v2574_v24 = vld [vmem:[#allocation14 + $0x368] sm:$0xff]  ;;  %v5434_v30 = vpack.c.bf16 %v2567_v22, %v2563_v20 }
 0x215   : > { %1709 = vmatmul.mubr.f32.gmra.mrb[16].mxu0 %v521_v33  ;;  %5417 = vmatprep.subr.bf16.mxu1 %v5416_v29  ;;  %v553_v25 = vld [vmem:[%s6965_s24 + $0x330] sm:$0xff]  ;;  %v5306_v29 = vpack.c.bf16 %v2565_v19, %v2561_v18  ;;  %v5308_v31 = vpack.c.bf16 %v2574_v24, %v2570_v23  ;;  %v2593_v18 = vld [vmem:[#allocation14 + $0x400] sm:$0xff] }
 0x216   : > { %2353 = vmatmul.mubr.f32.gmra.mrb[16].mxu1 %v521_v33  ;;  %1714 = vmatprep.mubr.f32.mxu0 %v530_v36  ;;  %v2573_v33 = vld [vmem:[#allocation14 + $0x360] sm:$0xff]  ;;  %v2598_v5 = vld [vmem:[#allocation14 + $0x428] sm:$0xff]  ;;  %v2595_v23 = vld [vmem:[#allocation14 + $0x410] sm:$0xff] }
 0x217   : > { %2358 = vmatprep.mubr.f32.mxu1 %v530_v36  ;;  %5291 = vmatpush1.bf16.msra.mxu0 %v5290_v37  ;;  %v2575_v36 = vld [vmem:[#allocation14 + $0x370] sm:$0xff]  ;;  %v2578_v37 = vld [vmem:[#allocation14 + $0x388] sm:$0xff]  ;;  %v2597_v19 = vld [vmem:[#allocation14 + $0x420] sm:$0xff] }
 0x218   : > { %5419 = vmatpush1.bf16.msra.mxu1 %v5418_v38  ;;  %5293 = vmatprep.subr.bf16.mxu0 %v5292_v39  ;;  %v2582_v38 = vld [vmem:[#allocation14 + $0x3a8] sm:$0xff]  ;;  %v5438_v44 = vpack.c.bf16 %v2575_v36, %v2571_v34  ;;  %v2599_v24 = vld [vmem:[#allocation14 + $0x430] sm:$0xff]  ;;  %v2605_v36 = vld [vmem:[#allocation14 + $0x460] sm:$0xff] }
 0x219   : > { %1715 = vmatmul.mubr.f32.gmra.mrb[18].mxu0 %v529_v47  ;;  %5421 = vmatprep.subr.bf16.mxu1 %v5420_v43  ;;  %v561_v39 = vld [vmem:[%s6965_s24 + $0x370] sm:$0xff]  ;;  %v5310_v43 = vpack.c.bf16 %v2573_v33, %v2569_v32  ;;  %v5312_v45 = vpack.c.bf16 %v2582_v38, %v2578_v37  ;;  %v5322_v33 = vpack.c.bf16 %v2597_v19, %v2593_v18  ;;  %v2617_v18 = vld [vmem:[#allocation14 + $0x4c0] sm:$0xff] }
 0x21a   : > { %2359 = vmatmul.mubr.f32.gmra.mrb[18].mxu1 %v529_v47  ;;  %1720 = vmatprep.mubr.f32.mxu0 %v538_v50  ;;  %v569_v47 = vld [vmem:[%s6965_s24 + $0x3b0] sm:$0xff]  ;;  %v5450_v34 = vpack.c.bf16 %v2599_v24, %v2595_v23  ;;  %v2621_v19 = vld [vmem:[#allocation14 + $0x4e0] sm:$0xff] }
 0x21b   : > { %2364 = vmatprep.mubr.f32.mxu1 %v538_v50  ;;  %5295 = vmatpush1.bf16.msra.mxu0 %v5294_v51  ;;  %v2577_v50 = vld [vmem:[#allocation14 + $0x380] sm:$0xff] }
 0x21c   : > { %5423 = vmatpush1.bf16.msra.mxu1 %v5422_v52  ;;  %5297 = vmatprep.subr.bf16.mxu0 %v5296_v53  ;;  %v2581_v51 = vld [vmem:[#allocation14 + $0x3a0] sm:$0xff]  ;;  %v2579_v52 = vld [vmem:[#allocation14 + $0x390] sm:$0xff] }
 0x21d   : > { %1721 = vmatmul.mubr.f32.gmra.mrb[20].mxu0 %v537_v61  ;;  %5425 = vmatprep.subr.bf16.mxu1 %v5424_v57  ;;  %v5314_v53 = vpack.c.bf16 %v2581_v51, %v2577_v50  ;;  %v5442_v55 = vpack.c.bf16 %v2583_v54, %v2579_v52  ;;  %v2590_v57 = vld [vmem:[#allocation14 + $0x3e8] sm:$0xff]  ;;  %v2616_v50 = vld [vmem:[#allocation14 + $0x4b8] sm:$0xff] }
 0x21e   : > { %2365 = vmatmul.mubr.f32.gmra.mrb[20].mxu1 %v537_v61  ;;  %1726 = vmatprep.mubr.f32.mxu0 %v546_v0  ;;  %v5316_v59 = vpack.c.bf16 %v2590_v57, %v2586_v56  ;;  %v2585_v61 = vld [vmem:[#allocation14 + $0x3c0] sm:$0xff] }
 0x21f   : > { %2370 = vmatprep.mubr.f32.mxu1 %v546_v0  ;;  %5299 = vmatpush1.bf16.msra.mxu0 %v5298_v1  ;;  %v5318_v0 = vpack.c.bf16 %v2589_v62, %v2585_v61  ;;  %v2587_v1 = vld [vmem:[#allocation14 + $0x3d0] sm:$0xff]  ;;  %v2613_v56 = vld [vmem:[#allocation14 + $0x4a0] sm:$0xff] }
 0x220   : > { %5427 = vmatpush1.bf16.msra.mxu1 %v5426_v2  ;;  %5301 = vmatprep.subr.bf16.mxu0 %v5300_v3  ;;  %v2591_v2 = vld [vmem:[#allocation14 + $0x3f0] sm:$0xff] }
 0x221   : > { %1727 = vmatmul.mubr.f32.gmra.mrb[22].mxu0 %v545_v11  ;;  %5429 = vmatprep.subr.bf16.mxu1 %v5428_v7  ;;  %v5446_v3 = vpack.c.bf16 %v2591_v2, %v2587_v1  ;;  %v5320_v7 = vpack.c.bf16 %v2598_v5, %v2594_v4  ;;  %v2618_v1 = vld [vmem:[#allocation14 + $0x4c8] sm:$0xff]  ;;  %v2620_v5 = vld [vmem:[#allocation14 + $0x4d8] sm:$0xff] }
 0x222   : > { %2371 = vmatmul.mubr.f32.gmra.mrb[22].mxu1 %v545_v11  ;;  %1732 = vmatprep.mubr.f32.mxu0 %v554_v14  ;;  %v7118_v11 = vshrl.u32 %v8128_v10, 7  ;;  %v2622_v4 = vld [vmem:[#allocation14 + $0x4e8] sm:$0xff] }
 0x223   : > { %2376 = vmatprep.mubr.f32.mxu1 %v554_v14  ;;  %5303 = vmatpush1.bf16.msra.mxu0 %v5302_v15  ;;  %v2666_v10 = vld [vmem:[#allocation14 + $0x648] sm:$0xff] }
 0x224   : > { %5431 = vmatpush1.bf16.msra.mxu1 %v5430_v16  ;;  %5305 = vmatprep.subr.bf16.mxu0 %v5304_v17  ;;  %8200 = vst [vmem:[#allocation29_spill] sm:$0xff] %v7118_v11  ;;  %v7121_v12 = vsub.s32 0, %v7118_v11  ;;  %v7126_v14 = vsub.s32 1, %v7118_v11 }
 0x225   : > { %1733 = vmatmul.mubr.f32.gmra.mrb[24].mxu0 %v553_v25  ;;  %5433 = vmatprep.subr.bf16.mxu1 %v5432_v21 }
 0x226   : > { %2377 = vmatmul.mubr.f32.gmra.mrb[24].mxu1 %v553_v25  ;;  %1738 = vmatprep.mubr.f32.mxu0 %v562_v28  ;;  %8201 = vst [vmem:[#allocation30_spill] sm:$0xff] %v7126_v14  ;;  %v7130_v15 = vrot.slane %v7123_v13, %v7121_v12  ;;  %v7134_v16 = vrot.slane %v7123_v13, %v7126_v14  ;;  %v2602_v25 = vld [vmem:[#allocation14 + $0x448] sm:$0xff] }
 0x227   : > { %2382 = vmatprep.mubr.f32.mxu1 %v562_v28  ;;  %5307 = vmatpush1.bf16.msra.mxu0 %v5306_v29  ;;  %v2606_v28 = vld [vmem:[#allocation14 + $0x468] sm:$0xff]  ;;  %v2604_v29 = vld [vmem:[#allocation14 + $0x458] sm:$0xff] }
 0x228   : > { %5435 = vmatpush1.bf16.msra.mxu1 %v5434_v30  ;;  %5309 = vmatprep.subr.bf16.mxu0 %v5308_v31  ;;  %v2608_v30 = vld [vmem:[#allocation14 + $0x478] sm:$0xff]  ;;  %v5324_v41 = vpack.c.bf16 %v2606_v28, %v2602_v25  ;;  %v5332_v25 = vpack.c.bf16 %v2622_v4, %v2618_v1  ;;  %v2619_v28 = vld [vmem:[#allocation14 + $0x4d0] sm:$0xff]  ;;  %v2633_v4 = vld [vmem:[#allocation14 + $0x540] sm:$0xff] }
 0x229   : > { %1739 = vmatmul.mubr.f32.gmra.mrb[26].mxu0 %v561_v39  ;;  %5437 = vmatprep.subr.bf16.mxu1 %v5436_v35  ;;  %v2601_v35 = vld [vmem:[#allocation14 + $0x440] sm:$0xff] }
 0x22a   : > { %2383 = vmatmul.mubr.f32.gmra.mrb[26].mxu1 %v561_v39  ;;  %1744 = vmatprep.mubr.f32.mxu0 %v570_v42 }
 0x22b   : > { %2388 = vmatprep.mubr.f32.mxu1 %v570_v42  ;;  %5311 = vmatpush1.bf16.msra.mxu0 %v5310_v43  ;;  %v5452_v42 = vpack.c.bf16 %v2608_v30, %v2604_v29  ;;  %v2603_v43 = vld [vmem:[#allocation14 + $0x450] sm:$0xff]  ;;  %v2626_v30 = vld [vmem:[#allocation14 + $0x508] sm:$0xff] }
 0x22c   : > { %5439 = vmatpush1.bf16.msra.mxu1 %v5438_v44  ;;  %5313 = vmatprep.subr.bf16.mxu0 %v5312_v45  ;;  %v2607_v44 = vld [vmem:[#allocation14 + $0x470] sm:$0xff]  ;;  %v2610_v45 = vld [vmem:[#allocation14 + $0x488] sm:$0xff] }
 0x22d   : > { %1745 = vmatmul.mubr.f32.gmra.mrb[28].mxu0 %v569_v47  ;;  %5441 = vmatprep.subr.bf16.mxu1 %v5440_v46  ;;  %v5454_v54 = vpack.c.bf16 %v2607_v44, %v2603_v43  ;;  %v2623_v29 = vld [vmem:[#allocation14 + $0x4f0] sm:$0xff]  ;;  %v2625_v43 = vld [vmem:[#allocation14 + $0x500] sm:$0xff] }
 0x22e   : > { %2389 = vmatmul.mubr.f32.gmra.mrb[28].mxu1 %v569_v47  ;;  %1750 = vmatprep.mubr.f32.mxu0 %v578_v48  ;;  %v2629_v44 = vld [vmem:[#allocation14 + $0x520] sm:$0xff] }
 0x22f   : > { %2394 = vmatprep.mubr.f32.mxu1 %v578_v48  ;;  %5315 = vmatpush1.bf16.msra.mxu0 %v5314_v53  ;;  %v2614_v48 = vld [vmem:[#allocation14 + $0x4a8] sm:$0xff]  ;;  %v5326_v53 = vpack.c.bf16 %v2605_v36, %v2601_v35  ;;  %v2628_v35 = vld [vmem:[#allocation14 + $0x518] sm:$0xff]  ;;  %v5338_v1 = vpack.c.bf16 %v2629_v44, %v2625_v43 }
 0x230   : > { %5443 = vmatpush1.bf16.msra.mxu1 %v5442_v55  ;;  %5317 = vmatprep.subr.bf16.mxu0 %v5316_v59  ;;  %v2609_v55 = vld [vmem:[#allocation14 + $0x480] sm:$0xff]  ;;  %v5328_v61 = vpack.c.bf16 %v2614_v48, %v2610_v45  ;;  %v2632_v36 = vld [vmem:[#allocation14 + $0x538] sm:$0xff] }
 0x231   : > { %1751 = vmatmul.mubr.f32.gmra.mrb[30].mxu0 %v577_v49  ;;  %5445 = vmatprep.subr.bf16.mxu1 %v5444_v63  ;;  %v2611_v63 = vld [vmem:[#allocation14 + $0x490] sm:$0xff] }
 0x232   : > { %2395 = vmatmul.mubr.f32.gmra.mrb[30].mxu1 %v577_v49  ;;  %v2612_v49 = vld [vmem:[#allocation14 + $0x498] sm:$0xff] }
 0x233   : > { %5319 = vmatpush1.bf16.msra.mxu0 %v5318_v0  ;;  %v5456_v62 = vpack.c.bf16 %v2616_v50, %v2612_v49  ;;  %v2615_v0 = vld [vmem:[#allocation14 + $0x4b0] sm:$0xff] }
 0x234   : > { %5447 = vmatpush1.bf16.msra.mxu1 %v5446_v3  ;;  %5321 = vmatprep.subr.bf16.mxu0 %v5320_v7 }
 0x235   : > { %5449 = vmatprep.subr.bf16.mxu1 %v5448_v9  ;;  %v5330_v9 = vpack.c.bf16 %v2613_v56, %v2609_v55  ;;  %v2634_v55 = vld [vmem:[#allocation14 + $0x548] sm:$0xff] }
 0x2c8   : > { %v1662_v17 = vpop.f32.mrb[0].mxu0 }
 0x2c9   : > { %v5576_v20 = vadd.f32 %v1662_v17, %v7130_v15  ;;  %v7137_v21 = vpop.f32.mrb[0].mxu1  ;;  %v1664_v22 = vpop.f32.mrb[1].mxu0  ;;  %v5458_v17 = vpack.c.bf16 %v2615_v0, %v2611_v63 }
 0x2ca   : > { %v5577_v26 = vadd.f32 %v1664_v22, %v7134_v16  ;;  %v7140_v27 = vpop.f32.mrb[1].mxu1 }
 0x2cb   : > { %v7144_v37 = vmax.f32 %v5576_v20, 0.0 }
 0x2cc   : > { %v7142_v31 = vmax.f32 %v5577_v26, 0.0  ;;  %v1668_v32 = vpop.f32.mrb[2].mxu0  ;;  %v5460_v26 = vpack.c.bf16 %v2624_v6, %v2620_v5  ;;  %v2637_v5 = vld [vmem:[#allocation14 + $0x560] sm:$0xff] }
 0x2cd   : > { %8203 = vst [vmem:[#allocation32_spill] sm:$0xff] %v7144_v37  ;;  %v5578_v38 = vadd.f32 %v1668_v32, %v7130_v15  ;;  %v7147_v39 = vpop.f32.mrb[2].mxu1  ;;  %v1670_v40 = vpop.f32.mrb[3].mxu0 }
 0x2ce   : > { %8202 = vst [vmem:[#allocation31_spill] sm:$0xff] %v7142_v31  ;;  %v5579_v46 = vadd.f32 %v1670_v40, %v7134_v16  ;;  %v7150_v47 = vpop.f32.mrb[3].mxu1  ;;  %2807 = vmatprep.mubr.f32.mxu0 %v7142_v31  ;;  %3129 = vmatprep.mubr.f32.mxu1 %v7142_v31  ;;  %v2711_v31 = vld [vmem:[#allocation14 + $0x7b0] sm:$0xff] }
 0x2cf   : > { %2808 = vmatmul.mubr.f32.vlgmr.msra.gmra.mrb[32].mxu0 %v7144_v37  ;;  %3130 = vmatmul.mubr.f32.vlgmr.msra.gmra.mrb[32].mxu1 %v7144_v37  ;;  %v7158_v57 = vmax.f32 %v5578_v38, 0.0  ;;  %v2714_v37 = vld [vmem:[#allocation14 + $0x7c8] sm:$0xff] }
 0x2d0   : > { %v7156_v51 = vmax.f32 %v5579_v46, 0.0  ;;  %v1674_v52 = vpop.f32.mrb[4].mxu0  ;;  %5323 = vmatpush1.bf16.msra.mxu0 %v5322_v33  ;;  %5451 = vmatpush1.bf16.msra.mxu1 %v5450_v34  ;;  %v2630_v34 = vld [vmem:[#allocation14 + $0x528] sm:$0xff] }
 0x2d1   : > { %8205 = vst [vmem:[#allocation34_spill] sm:$0xff] %v7158_v57  ;;  %v5580_v58 = vadd.f32 %v1674_v52, %v7130_v15  ;;  %v7161_v59 = vpop.f32.mrb[4].mxu1  ;;  %v1676_v60 = vpop.f32.mrb[5].mxu0  ;;  %5325 = vmatprep.subr.bf16.mxu0 %v5324_v41  ;;  %5453 = vmatprep.subr.bf16.mxu1 %v5452_v42  ;;  %v5334_v41 = vpack.c.bf16 %v2621_v19, %v2617_v18 }
 0x2d2   : > { %8204 = vst [vmem:[#allocation33_spill] sm:$0xff] %v7156_v51  ;;  %v5581_v2 = vadd.f32 %v1676_v60, %v7134_v16  ;;  %v7164_v3 = vpop.f32.mrb[5].mxu1  ;;  %2813 = vmatprep.mubr.f32.mxu0 %v7156_v51  ;;  %3135 = vmatprep.mubr.f32.mxu1 %v7156_v51  ;;  %v5462_v42 = vpack.c.bf16 %v2623_v29, %v2619_v28  ;;  %v2638_v60 = vld [vmem:[#allocation14 + $0x568] sm:$0xff] }
 0x2d3   : > { %2814 = vmatmul.mubr.f32.gmra.mrb[34].mxu0 %v7158_v57  ;;  %3136 = vmatmul.mubr.f32.gmra.mrb[34].mxu1 %v7158_v57  ;;  %v7172_v20 = vmax.f32 %v5580_v58, 0.0  ;;  %v5336_v50 = vpack.c.bf16 %v2630_v34, %v2626_v30  ;;  %v5464_v52 = vpack.c.bf16 %v2632_v36, %v2628_v35  ;;  %v5340_v18 = vpack.c.bf16 %v2638_v60, %v2634_v55  ;;  %v2646_v29 = vld [vmem:[#allocation14 + $0x5a8] sm:$0xff]  ;;  %v2644_v30 = vld [vmem:[#allocation14 + $0x598] sm:$0xff] }
 0x2d4   : > { %v7170_v7 = vmax.f32 %v5581_v2, 0.0  ;;  %v1680_v8 = vpop.f32.mrb[6].mxu0  ;;  %5327 = vmatpush1.bf16.msra.mxu0 %v5326_v53  ;;  %5455 = vmatpush1.bf16.msra.mxu1 %v5454_v54  ;;  %v2627_v53 = vld [vmem:[#allocation14 + $0x510] sm:$0xff]  ;;  %v5342_v36 = vpack.c.bf16 %v2637_v5, %v2633_v4  ;;  %v2650_v55 = vld [vmem:[#allocation14 + $0x5c8] sm:$0xff] }
 0x2d5   : > { %8207 = vst [vmem:[#allocation36_spill] sm:$0xff] %v7172_v20  ;;  %v5582_v22 = vadd.f32 %v1680_v8, %v7130_v15  ;;  %v7175_v23 = vpop.f32.mrb[6].mxu1  ;;  %v1682_v24 = vpop.f32.mrb[7].mxu0  ;;  %5329 = vmatprep.subr.bf16.mxu0 %v5328_v61  ;;  %5457 = vmatprep.subr.bf16.mxu1 %v5456_v62  ;;  %v2631_v54 = vld [vmem:[#allocation14 + $0x530] sm:$0xff]  ;;  %v2636_v61 = vld [vmem:[#allocation14 + $0x558] sm:$0xff] }
 0x2d6   : > { %8206 = vst [vmem:[#allocation35_spill] sm:$0xff] %v7170_v7  ;;  %v5583_v32 = vadd.f32 %v1682_v24, %v7134_v16  ;;  %v7178_v33 = vpop.f32.mrb[7].mxu1  ;;  %2819 = vmatprep.mubr.f32.mxu0 %v7170_v7  ;;  %3141 = vmatprep.mubr.f32.mxu1 %v7170_v7  ;;  %v2640_v62 = vld [vmem:[#allocation14 + $0x578] sm:$0xff]  ;;  %v5466_v2 = vpack.c.bf16 %v2631_v54, %v2627_v53  ;;  %v2639_v24 = vld [vmem:[#allocation14 + $0x570] sm:$0xff] }
 0x2d7   : > { %2820 = vmatmul.mubr.f32.gmra.mrb[36].mxu0 %v7172_v20  ;;  %3142 = vmatmul.mubr.f32.gmra.mrb[36].mxu1 %v7172_v20  ;;  %v7186_v45 = vmax.f32 %v5582_v22, 0.0  ;;  %v5468_v19 = vpack.c.bf16 %v2640_v62, %v2636_v61  ;;  %v2635_v22 = vld [vmem:[#allocation14 + $0x550] sm:$0xff]  ;;  %v2654_v61 = vld [vmem:[#allocation14 + $0x5e8] sm:$0xff]  ;;  %v2652_v62 = vld [vmem:[#allocation14 + $0x5d8] sm:$0xff] }
 0x2d8   : > { %v7184_v38 = vmax.f32 %v5583_v32, 0.0  ;;  %v1686_v40 = vpop.f32.mrb[8].mxu0  ;;  %5331 = vmatpush1.bf16.msra.mxu0 %v5330_v9  ;;  %5459 = vmatpush1.bf16.msra.mxu1 %v5458_v17  ;;  %v2648_v32 = vld [vmem:[#allocation14 + $0x5b8] sm:$0xff]  ;;  %v2643_v53 = vld [vmem:[#allocation14 + $0x590] sm:$0xff]  ;;  %v2706_v20 = vld [vmem:[#allocation14 + $0x788] sm:$0xff] }
 0x2d9   : > { %8209 = vst [vmem:[#allocation38_spill] sm:$0xff] %v7186_v45  ;;  %v5584_v46 = vadd.f32 %v1686_v40, %v7130_v15  ;;  %v7189_v48 = vpop.f32.mrb[8].mxu1  ;;  %v1688_v49 = vpop.f32.mrb[9].mxu0  ;;  %5333 = vmatprep.subr.bf16.mxu0 %v5332_v25  ;;  %5461 = vmatprep.subr.bf16.mxu1 %v5460_v26  ;;  %v2642_v25 = vld [vmem:[#allocation14 + $0x588] sm:$0xff]  ;;  %v5470_v40 = vpack.c.bf16 %v2639_v24, %v2635_v22  ;;  %v2647_v54 = vld [vmem:[#allocation14 + $0x5b0] sm:$0xff] }
 0x2da   : > { %8208 = vst [vmem:[#allocation37_spill] sm:$0xff] %v7184_v38  ;;  %v5585_v56 = vadd.f32 %v1688_v49, %v7134_v16  ;;  %v7192_v58 = vpop.f32.mrb[9].mxu1  ;;  %2825 = vmatprep.mubr.f32.mxu0 %v7184_v38  ;;  %3147 = vmatprep.mubr.f32.mxu1 %v7184_v38  ;;  %v5474_v5 = vpack.c.bf16 %v2647_v54, %v2643_v53  ;;  %v2657_v53 = vld [vmem:[#allocation14 + $0x600] sm:$0xff]  ;;  %v2695_v38 = vld [vmem:[#allocation14 + $0x730] sm:$0xff] }
 0x2db   : > { %2826 = vmatmul.mubr.f32.gmra.mrb[38].mxu0 %v7186_v45  ;;  %3148 = vmatmul.mubr.f32.gmra.mrb[38].mxu1 %v7186_v45  ;;  %v7200_v6 = vmax.f32 %v5584_v46, 0.0  ;;  %v2661_v54 = vld [vmem:[#allocation14 + $0x620] sm:$0xff]  ;;  %v2698_v45 = vld [vmem:[#allocation14 + $0x748] sm:$0xff]  ;;  %v2703_v7 = vld [vmem:[#allocation14 + $0x770] sm:$0xff] }
 0x2dc   : > { %v7198_v63 = vmax.f32 %v5585_v56, 0.0  ;;  %v1692_v0 = vpop.f32.mrb[10].mxu0  ;;  %5335 = vmatpush1.bf16.msra.mxu0 %v5334_v41  ;;  %5463 = vmatpush1.bf16.msra.mxu1 %v5462_v42  ;;  %v2641_v41 = vld [vmem:[#allocation14 + $0x580] sm:$0xff] }
 0x2dd   : > { %8211 = vst [vmem:[#allocation40_spill] sm:$0xff] %v7200_v6  ;;  %v5586_v8 = vadd.f32 %v1692_v0, %v7130_v15  ;;  %v7203_v9 = vpop.f32.mrb[10].mxu1  ;;  %v1694_v17 = vpop.f32.mrb[11].mxu0  ;;  %5337 = vmatprep.subr.bf16.mxu0 %v5336_v50  ;;  %5465 = vmatprep.subr.bf16.mxu1 %v5464_v52  ;;  %v2645_v42 = vld [vmem:[#allocation14 + $0x5a0] sm:$0xff]  ;;  %v5344_v50 = vpack.c.bf16 %v2646_v29, %v2642_v25  ;;  %v2656_v0 = vld [vmem:[#allocation14 + $0x5f8] sm:$0xff]  ;;  %v2651_v29 = vld [vmem:[#allocation14 + $0x5d0] sm:$0xff] }
 0x2de   : > { %8210 = vst [vmem:[#allocation39_spill] sm:$0xff] %v7198_v63  ;;  %v5587_v26 = vadd.f32 %v1694_v17, %v7134_v16  ;;  %v7206_v28 = vpop.f32.mrb[11].mxu1  ;;  %2831 = vmatprep.mubr.f32.mxu0 %v7198_v63  ;;  %3153 = vmatprep.mubr.f32.mxu1 %v7198_v63  ;;  %v5472_v52 = vpack.c.bf16 %v2648_v32, %v2644_v30  ;;  %v2653_v17 = vld [vmem:[#allocation14 + $0x5e0] sm:$0xff]  ;;  %v2655_v30 = vld [vmem:[#allocation14 + $0x5f0] sm:$0xff]  ;;  %v2658_v32 = vld [vmem:[#allocation14 + $0x608] sm:$0xff] }
 0x2df   : > { %2832 = vmatmul.mubr.f32.gmra.mrb[40].mxu0 %v7200_v6  ;;  %3154 = vmatmul.mubr.f32.gmra.mrb[40].mxu1 %v7200_v6  ;;  %v7214_v43 = vmax.f32 %v5586_v8, 0.0  ;;  %v5346_v4 = vpack.c.bf16 %v2645_v42, %v2641_v41  ;;  %v2649_v8 = vld [vmem:[#allocation14 + $0x5c0] sm:$0xff]  ;;  %v5348_v25 = vpack.c.bf16 %v2654_v61, %v2650_v55  ;;  %v2660_v41 = vld [vmem:[#allocation14 + $0x618] sm:$0xff]  ;;  %v2687_v63 = vld [vmem:[#allocation14 + $0x6f0] sm:$0xff] }
 0x2e0   : > { %v7212_v34 = vmax.f32 %v5587_v26, 0.0  ;;  %v1698_v35 = vpop.f32.mrb[12].mxu0  ;;  %5339 = vmatpush1.bf16.msra.mxu0 %v5338_v1  ;;  %5467 = vmatpush1.bf16.msra.mxu1 %v5466_v2  ;;  %v5476_v26 = vpack.c.bf16 %v2656_v0, %v2652_v62  ;;  %v2664_v42 = vld [vmem:[#allocation14 + $0x638] sm:$0xff]  ;;  %v2690_v6 = vld [vmem:[#allocation14 + $0x708] sm:$0xff] }
 0x2e1   : > { %8213 = vst [vmem:[#allocation42_spill] sm:$0xff] %v7214_v43  ;;  %v5588_v44 = vadd.f32 %v1698_v35, %v7130_v15  ;;  %v7217_v46 = vpop.f32.mrb[12].mxu1  ;;  %v1700_v49 = vpop.f32.mrb[13].mxu0  ;;  %5341 = vmatprep.subr.bf16.mxu0 %v5340_v18  ;;  %5469 = vmatprep.subr.bf16.mxu1 %v5468_v19 }
 0x2e2   : > { %8212 = vst [vmem:[#allocation41_spill] sm:$0xff] %v7212_v34  ;;  %v5589_v56 = vadd.f32 %v1700_v49, %v7134_v16  ;;  %v7220_v60 = vpop.f32.mrb[13].mxu1  ;;  %2837 = vmatprep.mubr.f32.mxu0 %v7212_v34  ;;  %3159 = vmatprep.mubr.f32.mxu1 %v7212_v34  ;;  %v2679_v34 = vld [vmem:[#allocation14 + $0x6b0] sm:$0xff] }
 0x2e3   : > { %2838 = vmatmul.mubr.f32.gmra.mrb[42].mxu0 %v7214_v43  ;;  %3160 = vmatmul.mubr.f32.gmra.mrb[42].mxu1 %v7214_v43  ;;  %v7228_v18 = vmax.f32 %v5588_v44, 0.0  ;;  %v2682_v43 = vld [vmem:[#allocation14 + $0x6c8] sm:$0xff] }
 0x2e4   : > { %v7226_v1 = vmax.f32 %v5589_v56, 0.0  ;;  %v1704_v2 = vpop.f32.mrb[14].mxu0  ;;  %5343 = vmatpush1.bf16.msra.mxu0 %v5342_v36  ;;  %5471 = vmatpush1.bf16.msra.mxu1 %v5470_v40  ;;  %v2662_v40 = vld [vmem:[#allocation14 + $0x628] sm:$0xff] }
 0x2e5   : > { %8215 = vst [vmem:[#allocation44_spill] sm:$0xff] %v7228_v18  ;;  %v5590_v19 = vadd.f32 %v1704_v2, %v7130_v15  ;;  %v7231_v22 = vpop.f32.mrb[14].mxu1  ;;  %v1706_v24 = vpop.f32.mrb[15].mxu0  ;;  %5345 = vmatprep.subr.bf16.mxu0 %v5344_v50  ;;  %5473 = vmatprep.subr.bf16.mxu1 %v5472_v52  ;;  %v5350_v50 = vpack.c.bf16 %v2653_v17, %v2649_v8  ;;  %v2670_v8 = vld [vmem:[#allocation14 + $0x668] sm:$0xff]  ;;  %v2668_v17 = vld [vmem:[#allocation14 + $0x658] sm:$0xff] }
 0x2e6   : > { %8214 = vst [vmem:[#allocation43_spill] sm:$0xff] %v7226_v1  ;;  %v5591_v35 = vadd.f32 %v1706_v24, %v7134_v16  ;;  %v7234_v36 = vpop.f32.mrb[15].mxu1  ;;  %2843 = vmatprep.mubr.f32.mxu0 %v7226_v1  ;;  %3165 = vmatprep.mubr.f32.mxu1 %v7226_v1  ;;  %v5478_v52 = vpack.c.bf16 %v2655_v30, %v2651_v29  ;;  %v2659_v24 = vld [vmem:[#allocation14 + $0x610] sm:$0xff] }
 0x2e7   : > { %2844 = vmatmul.mubr.f32.gmra.mrb[44].mxu0 %v7228_v18  ;;  %3166 = vmatmul.mubr.f32.gmra.mrb[44].mxu1 %v7228_v18  ;;  %v7242_v55 = vmax.f32 %v5590_v19, 0.0  ;;  %v5352_v0 = vpack.c.bf16 %v2662_v40, %v2658_v32  ;;  %v5480_v2 = vpack.c.bf16 %v2664_v42, %v2660_v41  ;;  %v2672_v19 = vld [vmem:[#allocation14 + $0x678] sm:$0xff]  ;;  %v5354_v29 = vpack.c.bf16 %v2661_v54, %v2657_v53  ;;  %v2665_v32 = vld [vmem:[#allocation14 + $0x640] sm:$0xff]  ;;  %v2671_v1 = vld [vmem:[#allocation14 + $0x670] sm:$0xff] }
 0x2e8   : > { %v7240_v44 = vmax.f32 %v5591_v35, 0.0  ;;  %v1710_v49 = vpop.f32.mrb[16].mxu0  ;;  %5347 = vmatpush1.bf16.msra.mxu0 %v5346_v4  ;;  %5475 = vmatpush1.bf16.msra.mxu1 %v5474_v5  ;;  %v2663_v35 = vld [vmem:[#allocation14 + $0x630] sm:$0xff]  ;;  %v2669_v40 = vld [vmem:[#allocation14 + $0x660] sm:$0xff]  ;;  %v2674_v18 = vld [vmem:[#allocation14 + $0x688] sm:$0xff] }
 0x2e9   : > { %8217 = vst [vmem:[#allocation46_spill] sm:$0xff] %v7242_v55  ;;  %v5592_v56 = vadd.f32 %v1710_v49, %v7130_v15  ;;  %v7245_v61 = vpop.f32.mrb[16].mxu1  ;;  %v1712_v62 = vpop.f32.mrb[17].mxu0  ;;  %5349 = vmatprep.subr.bf16.mxu0 %v5348_v25  ;;  %5477 = vmatprep.subr.bf16.mxu1 %v5476_v26  ;;  %v5482_v30 = vpack.c.bf16 %v2663_v35, %v2659_v24  ;;  %v2678_v53 = vld [vmem:[#allocation14 + $0x6a8] sm:$0xff]  ;;  %v2676_v54 = vld [vmem:[#allocation14 + $0x698] sm:$0xff]  ;;  %v2673_v35 = vld [vmem:[#allocation14 + $0x680] sm:$0xff] }
 0x2ea   : > { %8216 = vst [vmem:[#allocation45_spill] sm:$0xff] %v7240_v44  ;;  %v5593_v4 = vadd.f32 %v1712_v62, %v7134_v16  ;;  %v7248_v5 = vpop.f32.mrb[17].mxu1  ;;  %2849 = vmatprep.mubr.f32.mxu0 %v7240_v44  ;;  %3171 = vmatprep.mubr.f32.mxu1 %v7240_v44  ;;  %v5356_v44 = vpack.c.bf16 %v2670_v8, %v2666_v10  ;;  %v2677_v8 = vld [vmem:[#allocation14 + $0x6a0] sm:$0xff] }
 0x2eb   : > { %2850 = vmatmul.mubr.f32.gmra.mrb[46].mxu0 %v7242_v55  ;;  %3172 = vmatmul.mubr.f32.gmra.mrb[46].mxu1 %v7242_v55  ;;  %v7256_v41 = vmax.f32 %v5592_v56, 0.0  ;;  %v5484_v55 = vpack.c.bf16 %v2672_v19, %v2668_v17  ;;  %v2680_v56 = vld [vmem:[#allocation14 + $0x6b8] sm:$0xff] }
 0x2ec   : > { %v7254_v25 = vmax.f32 %v5593_v4, 0.0  ;;  %v1716_v26 = vpop.f32.mrb[18].mxu0  ;;  %5351 = vmatpush1.bf16.msra.mxu0 %v5350_v50  ;;  %5479 = vmatpush1.bf16.msra.mxu1 %v5478_v52  ;;  %v2667_v4 = vld [vmem:[#allocation14 + $0x650] sm:$0xff] }
 0x2ed   : > { %8219 = vst [vmem:[#allocation48_spill] sm:$0xff] %v7256_v41  ;;  %v5594_v42 = vadd.f32 %v1716_v26, %v7130_v15  ;;  %v7259_v49 = vpop.f32.mrb[18].mxu1  ;;  %v1718_v62 = vpop.f32.mrb[19].mxu0  ;;  %5353 = vmatprep.subr.bf16.mxu0 %v5352_v0  ;;  %5481 = vmatprep.subr.bf16.mxu1 %v5480_v2  ;;  %v5358_v2 = vpack.c.bf16 %v2669_v40, %v2665_v32  ;;  %v2684_v32 = vld [vmem:[#allocation14 + $0x6d8] sm:$0xff] }
 0x2ee   : > { %8218 = vst [vmem:[#allocation47_spill] sm:$0xff] %v7254_v25  ;;  %v5595_v50 = vadd.f32 %v1718_v62, %v7134_v16  ;;  %v7262_v52 = vpop.f32.mrb[19].mxu1  ;;  %2855 = vmatprep.mubr.f32.mxu0 %v7254_v25  ;;  %3177 = vmatprep.mubr.f32.mxu1 %v7254_v25  ;;  %v5486_v24 = vpack.c.bf16 %v2671_v1, %v2667_v4  ;;  %v2686_v1 = vld [vmem:[#allocation14 + $0x6e8] sm:$0xff]  ;;  %v2688_v40 = vld [vmem:[#allocation14 + $0x6f8] sm:$0xff]  ;;  %v2681_v4 = vld [vmem:[#allocation14 + $0x6c0] sm:$0xff] }
 0x2ef   : > { %2856 = vmatmul.mubr.f32.gmra.mrb[48].mxu0 %v7256_v41  ;;  %3178 = vmatmul.mubr.f32.gmra.mrb[48].mxu1 %v7256_v41  ;;  %v7270_v17 = vmax.f32 %v5594_v42, 0.0  ;;  %v5360_v25 = vpack.c.bf16 %v2678_v53, %v2674_v18  ;;  %v5488_v41 = vpack.c.bf16 %v2680_v56, %v2676_v54  ;;  %v2685_v53 = vld [vmem:[#allocation14 + $0x6e0] sm:$0xff] }
 0x2f0   : > { %v7268_v10 = vmax.f32 %v5595_v50, 0.0  ;;  %v1722_v0 = vpop.f32.mrb[20].mxu0  ;;  %5355 = vmatpush1.bf16.msra.mxu0 %v5354_v29  ;;  %5483 = vmatpush1.bf16.msra.mxu1 %v5482_v30  ;;  %v2675_v50 = vld [vmem:[#allocation14 + $0x690] sm:$0xff] }
 0x2f1   : > { %8221 = vst [vmem:[#allocation50_spill] sm:$0xff] %v7270_v17  ;;  %v5596_v19 = vadd.f32 %v1722_v0, %v7130_v15  ;;  %v7273_v26 = vpop.f32.mrb[20].mxu1  ;;  %v1724_v62 = vpop.f32.mrb[21].mxu0  ;;  %5357 = vmatprep.subr.bf16.mxu0 %v5356_v44  ;;  %5485 = vmatprep.subr.bf16.mxu1 %v5484_v55  ;;  %v5362_v55 = vpack.c.bf16 %v2677_v8, %v2673_v35  ;;  %v2692_v35 = vld [vmem:[#allocation14 + $0x718] sm:$0xff] }
 0x2f2   : > { %8220 = vst [vmem:[#allocation49_spill] sm:$0xff] %v7268_v10  ;;  %v5597_v29 = vadd.f32 %v1724_v62, %v7134_v16  ;;  %v7276_v30 = vpop.f32.mrb[21].mxu1  ;;  %2861 = vmatprep.mubr.f32.mxu0 %v7268_v10  ;;  %3183 = vmatprep.mubr.f32.mxu1 %v7268_v10  ;;  %v5490_v42 = vpack.c.bf16 %v2679_v34, %v2675_v50  ;;  %v2694_v34 = vld [vmem:[#allocation14 + $0x728] sm:$0xff]  ;;  %v2696_v8 = vld [vmem:[#allocation14 + $0x738] sm:$0xff]  ;;  %v2689_v50 = vld [vmem:[#allocation14 + $0x700] sm:$0xff] }
 0x2f3   : > { %2862 = vmatmul.mubr.f32.gmra.mrb[50].mxu0 %v7270_v17  ;;  %3184 = vmatmul.mubr.f32.gmra.mrb[50].mxu1 %v7270_v17  ;;  %v7284_v54 = vmax.f32 %v5596_v19, 0.0  ;;  %v5364_v10 = vpack.c.bf16 %v2686_v1, %v2682_v43  ;;  %v5492_v17 = vpack.c.bf16 %v2688_v40, %v2684_v32  ;;  %v2693_v1 = vld [vmem:[#allocation14 + $0x720] sm:$0xff] }
 0x2f4   : > { %v7282_v18 = vmax.f32 %v5597_v29, 0.0  ;;  %v1728_v44 = vpop.f32.mrb[22].mxu0  ;;  %5359 = vmatpush1.bf16.msra.mxu0 %v5358_v2  ;;  %5487 = vmatpush1.bf16.msra.mxu1 %v5486_v24  ;;  %v2683_v29 = vld [vmem:[#allocation14 + $0x6d0] sm:$0xff] }
 0x2f5   : > { %8223 = vst [vmem:[#allocation52_spill] sm:$0xff] %v7284_v54  ;;  %v5598_v56 = vadd.f32 %v1728_v44, %v7130_v15  ;;  %v7287_v0 = vpop.f32.mrb[22].mxu1  ;;  %v1730_v62 = vpop.f32.mrb[23].mxu0  ;;  %5361 = vmatprep.subr.bf16.mxu0 %v5360_v25  ;;  %5489 = vmatprep.subr.bf16.mxu1 %v5488_v41  ;;  %v5366_v41 = vpack.c.bf16 %v2685_v53, %v2681_v4  ;;  %v2700_v4 = vld [vmem:[#allocation14 + $0x758] sm:$0xff] }
 0x2f6   : > { %8222 = vst [vmem:[#allocation51_spill] sm:$0xff] %v7282_v18  ;;  %v5599_v2 = vadd.f32 %v1730_v62, %v7134_v16  ;;  %v7290_v24 = vpop.f32.mrb[23].mxu1  ;;  %2867 = vmatprep.mubr.f32.mxu0 %v7282_v18  ;;  %3189 = vmatprep.mubr.f32.mxu1 %v7282_v18  ;;  %v5494_v19 = vpack.c.bf16 %v2687_v63, %v2683_v29  ;;  %v2702_v63 = vld [vmem:[#allocation14 + $0x768] sm:$0xff]  ;;  %v2704_v53 = vld [vmem:[#allocation14 + $0x778] sm:$0xff]  ;;  %v2697_v29 = vld [vmem:[#allocation14 + $0x740] sm:$0xff] }
 0x2f7   : > { %2868 = vmatmul.mubr.f32.gmra.mrb[52].mxu0 %v7284_v54  ;;  %3190 = vmatmul.mubr.f32.gmra.mrb[52].mxu1 %v7284_v54  ;;  %v7298_v32 = vmax.f32 %v5598_v56, 0.0  ;;  %v5368_v18 = vpack.c.bf16 %v2694_v34, %v2690_v6  ;;  %v5496_v54 = vpack.c.bf16 %v2696_v8, %v2692_v35  ;;  %v2701_v34 = vld [vmem:[#allocation14 + $0x760] sm:$0xff] }
 0x2f8   : > { %v7296_v43 = vmax.f32 %v5599_v2, 0.0  ;;  %v1734_v25 = vpop.f32.mrb[24].mxu0  ;;  %5363 = vmatpush1.bf16.msra.mxu0 %v5362_v55  ;;  %5491 = vmatpush1.bf16.msra.mxu1 %v5490_v42  ;;  %v2691_v2 = vld [vmem:[#allocation14 + $0x710] sm:$0xff] }
 0x2f9   : > { %8225 = vst [vmem:[#allocation54_spill] sm:$0xff] %v7298_v32  ;;  %v5600_v40 = vadd.f32 %v1734_v25, %v7130_v15  ;;  %v7301_v44 = vpop.f32.mrb[24].mxu1  ;;  %v1736_v62 = vpop.f32.mrb[25].mxu0  ;;  %5365 = vmatprep.subr.bf16.mxu0 %v5364_v10  ;;  %5493 = vmatprep.subr.bf16.mxu1 %v5492_v17  ;;  %v5370_v17 = vpack.c.bf16 %v2693_v1, %v2689_v50  ;;  %v2710_v50 = vld [vmem:[#allocation14 + $0x7a8] sm:$0xff]  ;;  %v2708_v1 = vld [vmem:[#allocation14 + $0x798] sm:$0xff] }
 0x2fa   : > { %8224 = vst [vmem:[#allocation53_spill] sm:$0xff] %v7296_v43  ;;  %v5601_v55 = vadd.f32 %v1736_v62, %v7134_v16  ;;  %v7304_v42 = vpop.f32.mrb[25].mxu1  ;;  %2873 = vmatprep.mubr.f32.mxu0 %v7296_v43  ;;  %3195 = vmatprep.mubr.f32.mxu1 %v7296_v43  ;;  %v5498_v56 = vpack.c.bf16 %v2695_v38, %v2691_v2 }
 0x2fb   : > { %2874 = vmatmul.mubr.f32.gmra.mrb[54].mxu0 %v7298_v32  ;;  %3196 = vmatmul.mubr.f32.gmra.mrb[54].mxu1 %v7298_v32  ;;  %v7312_v35 = vmax.f32 %v5600_v40, 0.0  ;;  %v5372_v43 = vpack.c.bf16 %v2702_v63, %v2698_v45  ;;  %v5500_v32 = vpack.c.bf16 %v2704_v53, %v2700_v4  ;;  %v7328_v45 = vsub.s32 2, %v7118_v11  ;;  %v2705_v4 = vld [vmem:[#allocation14 + $0x780] sm:$0xff] }
 0x2fc   : > { %v7310_v6 = vmax.f32 %v5601_v55, 0.0  ;;  %v1740_v10 = vpop.f32.mrb[26].mxu0  ;;  %5367 = vmatpush1.bf16.msra.mxu0 %v5366_v41  ;;  %5495 = vmatpush1.bf16.msra.mxu1 %v5494_v19  ;;  %v2699_v55 = vld [vmem:[#allocation14 + $0x750] sm:$0xff]  ;;  %v7318_v41 = vsub.s32 3, %v7118_v11  ;;  %v5374_v2 = vpack.c.bf16 %v2701_v34, %v2697_v29  ;;  %v2709_v53 = vld [vmem:[#allocation14 + $0x7a0] sm:$0xff]  ;;  %v2718_v29 = vld [vmem:[#allocation14 + $0x7e8] sm:$0xff] }
 0x2fd   : > { %8227 = vst [vmem:[#allocation56_spill] sm:$0xff] %v7312_v35  ;;  %v5602_v8 = vadd.f32 %v1740_v10, %v7130_v15  ;;  %v7315_v25 = vpop.f32.mrb[26].mxu1  ;;  %v1742_v62 = vpop.f32.mrb[27].mxu0  ;;  %5369 = vmatprep.subr.bf16.mxu0 %v5368_v18  ;;  %5497 = vmatprep.subr.bf16.mxu1 %v5496_v54  ;;  %v2712_v18 = vld [vmem:[#allocation14 + $0x7b8] sm:$0xff]  ;;  %8229 = vst [vmem:[#allocation58_spill] sm:$0xff] %v7328_v45  ;;  %v5502_v63 = vpack.c.bf16 %v2703_v7, %v2699_v55  ;;  %v2717_v11 = vld [vmem:[#allocation14 + $0x7e0] sm:$0xff] }
 0x2fe   : > { %8226 = vst [vmem:[#allocation55_spill] sm:$0xff] %v7310_v6  ;;  %8228 = vst [vmem:[#allocation57_spill] sm:$0xff] %v7318_v41  ;;  %v5603_v38 = vadd.f32 %v1742_v62, %v7134_v16  ;;  %v7321_v19 = vpop.f32.mrb[27].mxu1  ;;  %2879 = vmatprep.mubr.f32.mxu0 %v7310_v6  ;;  %3201 = vmatprep.mubr.f32.mxu1 %v7310_v6  ;;  %v5504_v57 = vpack.c.bf16 %v2712_v18, %v2708_v1 }
 0x2ff   : > { %2880 = vmatmul.mubr.f32.gmra.mrb[56].mxu0 %v7312_v35  ;;  %3202 = vmatmul.mubr.f32.gmra.mrb[56].mxu1 %v7312_v35  ;;  %v7332_v10 = vmax.f32 %v5602_v8, 0.0  ;;  %v5376_v35 = vpack.c.bf16 %v2710_v50, %v2706_v20  ;;  %v7350_v20 = vrot.slane %v7123_v13, %v7328_v45  ;;  %v5378_v8 = vpack.c.bf16 %v2709_v53, %v2705_v4 }
 0x300   : > { %v7330_v54 = vmax.f32 %v5603_v38, 0.0  ;;  %v1746_v40 = vpop.f32.mrb[28].mxu0  ;;  %5371 = vmatpush1.bf16.msra.mxu0 %v5370_v17  ;;  %5499 = vmatpush1.bf16.msra.mxu1 %v5498_v56  ;;  %v2707_v38 = vld [vmem:[#allocation14 + $0x790] sm:$0xff]  ;;  %v7339_v17 = vrot.slane %v7123_v13, %v7318_v41  ;;  %v2713_v13 = vld [vmem:[#allocation14 + $0x7c0] sm:$0xff] }
 0x301   : > { %8231 = vst [vmem:[#allocation60_spill] sm:$0xff] %v7332_v10  ;;  %v5604_v62 = vadd.f32 %v1746_v40, %v7130_v15  ;;  %v7335_v6 = vpop.f32.mrb[28].mxu1  ;;  %v1748_v51 = vpop.f32.mrb[29].mxu0  ;;  %5373 = vmatprep.subr.bf16.mxu0 %v5372_v43  ;;  %5501 = vmatprep.subr.bf16.mxu1 %v5500_v32  ;;  %v2716_v43 = vld [vmem:[#allocation14 + $0x7d8] sm:$0xff]  ;;  %v5506_v55 = vpack.c.bf16 %v2711_v31, %v2707_v38  ;;  %v2719_v31 = vld [vmem:[#allocation14 + $0x7f0] sm:$0xff] }
 0x302   : > { %8230 = vst [vmem:[#allocation59_spill] sm:$0xff] %v7330_v54  ;;  %v5605_v7 = vadd.f32 %v1748_v51, %v7134_v16  ;;  %v7342_v56 = vpop.f32.mrb[29].mxu1  ;;  %2885 = vmatprep.mubr.f32.mxu0 %v7330_v54  ;;  %3207 = vmatprep.mubr.f32.mxu1 %v7330_v54  ;;  %v2720_v32 = vld [vmem:[#allocation14 + $0x7f8] sm:$0xff]  ;;  %v5380_v54 = vpack.c.bf16 %v2718_v29, %v2714_v37 }
 0x303   : > { %2886 = vmatmul.mubr.f32.gmra.mrb[58].mxu0 %v7332_v10  ;;  %3208 = vmatmul.mubr.f32.gmra.mrb[58].mxu1 %v7332_v10  ;;  %v7354_v50 = vmax.f32 %v5604_v62, 0.0  ;;  %v5508_v10 = vpack.c.bf16 %v2720_v32, %v2716_v43  ;;  %v5611_v53 = vadd.f32 %v7150_v47, %v7339_v17  ;;  %v5612_v62 = vadd.f32 %v7161_v59, %v7350_v20 }
 0x304   : > { %v7352_v34 = vmax.f32 %v5605_v7, 0.0  ;;  %v1752_v51 = vpop.f32.mrb[30].mxu0  ;;  %5375 = vmatpush1.bf16.msra.mxu0 %v5374_v2  ;;  %5503 = vmatpush1.bf16.msra.mxu1 %v5502_v63  ;;  %v5609_v7 = vadd.f32 %v7140_v27, %v7339_v17  ;;  %v5615_v38 = vadd.f32 %v7178_v33, %v7339_v17  ;;  %v5614_v29 = vadd.f32 %v7175_v23, %v7350_v20 }
 0x305   : > { %8233 = vst [vmem:[#allocation62_spill] sm:$0xff] %v7354_v50  ;;  %v5606_v1 = vadd.f32 %v1752_v51, %v7130_v15  ;;  %v7357_v18 = vpop.f32.mrb[30].mxu1  ;;  %v1754_v40 = vpop.f32.mrb[31].mxu0  ;;  %5377 = vmatprep.subr.bf16.mxu0 %v5376_v35  ;;  %5505 = vmatprep.subr.bf16.mxu1 %v5504_v57  ;;  %v2715_v15 = vld [vmem:[#allocation14 + $0x7d0] sm:$0xff]  ;;  %v5382_v57 = vpack.c.bf16 %v2717_v11, %v2713_v13  ;;  %v7388_v47 = vmax.f32 %v5611_v53, 0.0 }
 0x306   : > { %8232 = vst [vmem:[#allocation61_spill] sm:$0xff] %v7352_v34  ;;  %v5607_v2 = vadd.f32 %v1754_v40, %v7134_v16  ;;  %v7362_v63 = vpop.f32.mrb[31].mxu1  ;;  %2891 = vmatprep.mubr.f32.mxu0 %v7352_v34  ;;  %3213 = vmatprep.mubr.f32.mxu1 %v7352_v34  ;;  %v5608_v16 = vadd.f32 %v7137_v21, %v7350_v20  ;;  %v7374_v4 = vmax.f32 %v5609_v7, 0.0  ;;  %v7412_v59 = vmax.f32 %v5615_v38, 0.0 }
 0x307   : > { %2892 = vmatmul.mubr.f32.gmra.mrb[60].mxu0 %v7354_v50  ;;  %3214 = vmatmul.mubr.f32.gmra.mrb[60].mxu1 %v7354_v50  ;;  %v7372_v27 = vmax.f32 %v5606_v1, 0.0  ;;  %v5510_v35 = vpack.c.bf16 %v2719_v31, %v2715_v15  ;;  %v5610_v21 = vadd.f32 %v7147_v39, %v7350_v20  ;;  %v5617_v43 = vadd.f32 %v7192_v58, %v7339_v17 }
 0x308   : > { %v7368_v37 = vmax.f32 %v5607_v2, 0.0  ;;  %5379 = vmatpush1.bf16.msra.mxu0 %v5378_v8  ;;  %5507 = vmatpush1.bf16.msra.mxu1 %v5506_v55  ;;  %v7383_v11 = vmax.f32 %v5608_v16, 0.0  ;;  %v7419_v33 = vmax.f32 %v5614_v29, 0.0  ;;  %v5616_v32 = vadd.f32 %v7189_v48, %v7350_v20 }
 0x309   : > { %8235 = vst [vmem:[#allocation64_spill] sm:$0xff] %v7372_v27  ;;  %5381 = vmatprep.subr.bf16.mxu0 %v5380_v54  ;;  %5509 = vmatprep.subr.bf16.mxu1 %v5508_v10  ;;  %v5613_v54 = vadd.f32 %v7164_v3, %v7339_v17  ;;  %v7395_v10 = vmax.f32 %v5610_v21, 0.0  ;;  %v7407_v3 = vmax.f32 %v5612_v62, 0.0  ;;  %v7424_v23 = vmax.f32 %v5617_v43, 0.0 }
 0x30a   : > { %8234 = vst [vmem:[#allocation63_spill] sm:$0xff] %v7368_v37  ;;  %2897 = vmatprep.mubr.f32.mxu0 %v7368_v37  ;;  %3219 = vmatprep.mubr.f32.mxu1 %v7368_v37  ;;  %v5619_v51 = vadd.f32 %v7206_v28, %v7339_v17  ;;  %v7431_v58 = vmax.f32 %v5616_v32, 0.0  ;;  %v5618_v8 = vadd.f32 %v7203_v9, %v7350_v20 }
 0x30b   : > { %2898 = vmatmul.mubr.f32.gmra.mrb[62].mxu0 %v7372_v27  ;;  %3220 = vmatmul.mubr.f32.gmra.mrb[62].mxu1 %v7372_v27  ;;  %v7400_v39 = vmax.f32 %v5613_v54, 0.0  ;;  %v5621_v55 = vadd.f32 %v7220_v60, %v7339_v17  ;;  %v5620_v1 = vadd.f32 %v7217_v46, %v7350_v20  ;;  %v5623_v40 = vadd.f32 %v7234_v36, %v7339_v17 }
 0x30c   : > { %5383 = vmatpush1.bf16.msra.mxu0 %v5382_v57  ;;  %2968 = vmatprep.mubr.f32.mxu0 %v7374_v4  ;;  %v7436_v48 = vmax.f32 %v5619_v51, 0.0  ;;  %v7443_v28 = vmax.f32 %v5618_v8, 0.0  ;;  %v5622_v13 = vadd.f32 %v7231_v22, %v7350_v20  ;;  %v5625_v7 = vadd.f32 %v7248_v5, %v7339_v17 }
 0x30d   : > { %5511 = vmatpush1.bf16.msra.mxu1 %v5510_v35  ;;  %3290 = vmatprep.mubr.f32.mxu1 %v7374_v4  ;;  %v7448_v9 = vmax.f32 %v5621_v55, 0.0  ;;  %v7455_v60 = vmax.f32 %v5620_v1, 0.0  ;;  %v7460_v46 = vmax.f32 %v5623_v40, 0.0  ;;  %v5624_v2 = vadd.f32 %v7245_v61, %v7350_v20 }
 0x30e   : > { %v7467_v36 = vmax.f32 %v5622_v13, 0.0  ;;  %v7472_v22 = vmax.f32 %v5625_v7, 0.0  ;;  %v5627_v15 = vadd.f32 %v7262_v52, %v7339_v17  ;;  %v5626_v31 = vadd.f32 %v7259_v49, %v7350_v20 }
 0x30f   : > { %2969 = vmatmul.mubr.f32.vlgmr.msra.gmra.mrb[32].mxu0 %v7383_v11  ;;  %8236 = vst [vmem:[#allocation65_spill] sm:$0xff] %v7460_v46  ;;  %v7479_v5 = vmax.f32 %v5624_v2, 0.0  ;;  %v5629_v57 = vadd.f32 %v7276_v30, %v7339_v17  ;;  %v5628_v16 = vadd.f32 %v7273_v26, %v7350_v20  ;;  %v5631_v35 = vadd.f32 %v7290_v24, %v7339_v17 }
 0x310   : > { %3291 = vmatmul.mubr.f32.vlgmr.msra.gmra.mrb[32].mxu1 %v7383_v11  ;;  %2974 = vmatprep.mubr.f32.mxu0 %v7388_v47  ;;  %8237 = vst [vmem:[#allocation66_spill] sm:$0xff] %v7467_v36  ;;  %8238 = vst [vmem:[#allocation67_spill] sm:$0xff] %v7472_v22  ;;  %v7484_v61 = vmax.f32 %v5627_v15, 0.0  ;;  %v7491_v52 = vmax.f32 %v5626_v31, 0.0  ;;  %v5630_v53 = vadd.f32 %v7287_v0, %v7350_v20 }
 0x311   : > { %3296 = vmatprep.mubr.f32.mxu1 %v7388_v47  ;;  %8239 = vst [vmem:[#allocation68_spill] sm:$0xff] %v7479_v5  ;;  %v7496_v49 = vmax.f32 %v5629_v57, 0.0  ;;  %v7503_v30 = vmax.f32 %v5628_v16, 0.0  ;;  %v7508_v26 = vmax.f32 %v5631_v35, 0.0  ;;  %v5633_v21 = vadd.f32 %v7304_v42, %v7339_v17 }
 0x312   : > { %8240 = vst [vmem:[#allocation69_spill] sm:$0xff] %v7484_v61  ;;  %8241 = vst [vmem:[#allocation70_spill] sm:$0xff] %v7491_v52  ;;  %v7515_v24 = vmax.f32 %v5630_v53, 0.0  ;;  %v5632_v54 = vadd.f32 %v7301_v44, %v7350_v20  ;;  %v5635_v62 = vadd.f32 %v7321_v19, %v7339_v17  ;;  %v5634_v38 = vadd.f32 %v7315_v25, %v7350_v20 }
 0x313   : > { %2975 = vmatmul.mubr.f32.gmra.mrb[34].mxu0 %v7395_v10  ;;  %8242 = vst [vmem:[#allocation71_spill] sm:$0xff] %v7496_v49  ;;  %8243 = vst [vmem:[#allocation72_spill] sm:$0xff] %v7503_v30  ;;  %v7520_v0 = vmax.f32 %v5633_v21, 0.0  ;;  %v5637_v29 = vadd.f32 %v7342_v56, %v7339_v17  ;;  %v5636_v43 = vadd.f32 %v7335_v6, %v7350_v20 }
 0x314   : > { %3297 = vmatmul.mubr.f32.gmra.mrb[34].mxu1 %v7395_v10  ;;  %2980 = vmatprep.mubr.f32.mxu0 %v7400_v39  ;;  %8244 = vst [vmem:[#allocation73_spill] sm:$0xff] %v7508_v26  ;;  %8245 = vst [vmem:[#allocation74_spill] sm:$0xff] %v7515_v24  ;;  %v7527_v42 = vmax.f32 %v5632_v54, 0.0  ;;  %v7532_v44 = vmax.f32 %v5635_v62, 0.0  ;;  %v7539_v19 = vmax.f32 %v5634_v38, 0.0  ;;  %v5639_v32 = vadd.f32 %v7362_v63, %v7339_v17 }
 0x315   : > { %3302 = vmatprep.mubr.f32.mxu1 %v7400_v39  ;;  %8246 = vst [vmem:[#allocation75_spill] sm:$0xff] %v7520_v0  ;;  %v7544_v25 = vmax.f32 %v5637_v29, 0.0  ;;  %v7551_v56 = vmax.f32 %v5636_v43, 0.0  ;;  %v5638_v51 = vadd.f32 %v7357_v18, %v7350_v20  ;;  %v2721_v63 = vld [vmem:[#allocation16] sm:$0xf] }
 0x316   : > { %8247 = vst [vmem:[#allocation76_spill] sm:$0xff] %v7527_v42  ;;  %8248 = vst [vmem:[#allocation77_spill] sm:$0xff] %v7532_v44  ;;  %v7556_v6 = vmax.f32 %v5639_v32, 0.0  ;;  %v7567_v20 = vrot.slane %v2721_v63, %v7328_v45  ;;  %v7570_v18 = vrot.slane %v2721_v63, %v7318_v41  ;;  %v7573_v55 = vrot.slane %v2721_v63, %v7121_v12 }
 0x317   : > { %2981 = vmatmul.mubr.f32.gmra.mrb[36].mxu0 %v7407_v3  ;;  %8249 = vst [vmem:[#allocation78_spill] sm:$0xff] %v7539_v19  ;;  %8250 = vst [vmem:[#allocation79_spill] sm:$0xff] %v7544_v25  ;;  %v7561_v17 = vmax.f32 %v5638_v51, 0.0  ;;  %v7578_v31 = vrot.slane %v2721_v63, %v7126_v14 }
 0x318   : > { %3303 = vmatmul.mubr.f32.gmra.mrb[36].mxu1 %v7407_v3  ;;  %2986 = vmatprep.mubr.f32.mxu0 %v7412_v59  ;;  %8251 = vst [vmem:[#allocation80_spill] sm:$0xff] %v7551_v56  ;;  %8252 = vst [vmem:[#allocation81_spill] sm:$0xff] %v7556_v6 }
 0x319   : > { %3308 = vmatprep.mubr.f32.mxu1 %v7412_v59  ;;  %8253 = vst [vmem:[#allocation82_spill] sm:$0xff] %v7561_v17 }
 0x31b   : > { %2987 = vmatmul.mubr.f32.gmra.mrb[38].mxu0 %v7419_v33 }
 0x31c   : > { %3309 = vmatmul.mubr.f32.gmra.mrb[38].mxu1 %v7419_v33  ;;  %2992 = vmatprep.mubr.f32.mxu0 %v7424_v23 }
 0x31d   : > { %3314 = vmatprep.mubr.f32.mxu1 %v7424_v23 }
 0x31f   : > { %2993 = vmatmul.mubr.f32.gmra.mrb[40].mxu0 %v7431_v58 }
 0x320   : > { %3315 = vmatmul.mubr.f32.gmra.mrb[40].mxu1 %v7431_v58  ;;  %2998 = vmatprep.mubr.f32.mxu0 %v7436_v48 }
 0x321   : > { %3320 = vmatprep.mubr.f32.mxu1 %v7436_v48 }
 0x323   : > { %2999 = vmatmul.mubr.f32.gmra.mrb[42].mxu0 %v7443_v28 }
 0x324   : > { %3321 = vmatmul.mubr.f32.gmra.mrb[42].mxu1 %v7443_v28  ;;  %3004 = vmatprep.mubr.f32.mxu0 %v7448_v9 }
 0x325   : > { %3326 = vmatprep.mubr.f32.mxu1 %v7448_v9 }
 0x327   : > { %3005 = vmatmul.mubr.f32.gmra.mrb[44].mxu0 %v7455_v60 }
 0x328   : > { %3327 = vmatmul.mubr.f32.gmra.mrb[44].mxu1 %v7455_v60  ;;  %3010 = vmatprep.mubr.f32.mxu0 %v7460_v46 }
 0x329   : > { %3332 = vmatprep.mubr.f32.mxu1 %v7460_v46 }
 0x32b   : > { %3011 = vmatmul.mubr.f32.gmra.mrb[46].mxu0 %v7467_v36 }
 0x32c   : > { %3333 = vmatmul.mubr.f32.gmra.mrb[46].mxu1 %v7467_v36  ;;  %3016 = vmatprep.mubr.f32.mxu0 %v7472_v22 }
 0x32d   : > { %3338 = vmatprep.mubr.f32.mxu1 %v7472_v22 }
 0x32f   : > { %3017 = vmatmul.mubr.f32.gmra.mrb[48].mxu0 %v7479_v5 }
 0x330   : > { %3339 = vmatmul.mubr.f32.gmra.mrb[48].mxu1 %v7479_v5  ;;  %3022 = vmatprep.mubr.f32.mxu0 %v7484_v61 }
 0x331   : > { %3344 = vmatprep.mubr.f32.mxu1 %v7484_v61 }
 0x333   : > { %3023 = vmatmul.mubr.f32.gmra.mrb[50].mxu0 %v7491_v52 }
 0x334   : > { %3345 = vmatmul.mubr.f32.gmra.mrb[50].mxu1 %v7491_v52  ;;  %3028 = vmatprep.mubr.f32.mxu0 %v7496_v49 }
 0x335   : > { %3350 = vmatprep.mubr.f32.mxu1 %v7496_v49 }
 0x337   : > { %3029 = vmatmul.mubr.f32.gmra.mrb[52].mxu0 %v7503_v30 }
 0x338   : > { %3351 = vmatmul.mubr.f32.gmra.mrb[52].mxu1 %v7503_v30  ;;  %3034 = vmatprep.mubr.f32.mxu0 %v7508_v26 }
 0x339   : > { %3356 = vmatprep.mubr.f32.mxu1 %v7508_v26 }
 0x33b   : > { %3035 = vmatmul.mubr.f32.gmra.mrb[54].mxu0 %v7515_v24 }
 0x33c   : > { %3357 = vmatmul.mubr.f32.gmra.mrb[54].mxu1 %v7515_v24  ;;  %3040 = vmatprep.mubr.f32.mxu0 %v7520_v0 }
 0x33d   : > { %3362 = vmatprep.mubr.f32.mxu1 %v7520_v0 }
 0x33f   : > { %3041 = vmatmul.mubr.f32.gmra.mrb[56].mxu0 %v7527_v42 }
 0x340   : > { %3363 = vmatmul.mubr.f32.gmra.mrb[56].mxu1 %v7527_v42  ;;  %3046 = vmatprep.mubr.f32.mxu0 %v7532_v44 }
 0x341   : > { %3368 = vmatprep.mubr.f32.mxu1 %v7532_v44 }
 0x343   : > { %3047 = vmatmul.mubr.f32.gmra.mrb[58].mxu0 %v7539_v19 }
 0x344   : > { %3369 = vmatmul.mubr.f32.gmra.mrb[58].mxu1 %v7539_v19  ;;  %3052 = vmatprep.mubr.f32.mxu0 %v7544_v25 }
 0x345   : > { %3374 = vmatprep.mubr.f32.mxu1 %v7544_v25 }
 0x347   : > { %3053 = vmatmul.mubr.f32.gmra.mrb[60].mxu0 %v7551_v56 }
 0x348   : > { %3375 = vmatmul.mubr.f32.gmra.mrb[60].mxu1 %v7551_v56  ;;  %3058 = vmatprep.mubr.f32.mxu0 %v7556_v6 }
 0x349   : > { %3380 = vmatprep.mubr.f32.mxu1 %v7556_v6 }
 0x34b   : > { %3059 = vmatmul.mubr.f32.gmra.mrb[62].mxu0 %v7561_v17 }
 0x34c   : > { %3381 = vmatmul.mubr.f32.gmra.mrb[62].mxu1 %v7561_v17 }
 0x3e2   : > { %v2970_v8 = vpop.f32.mrb[32].mxu0 }
 0x3e3   : > { %v3292_v1 = vpop.f32.mrb[32].mxu1  ;;  %v2972_v40 = vpop.f32.mrb[33].mxu0  ;;  %v5640_v16 = vadd.f32 %v2970_v8, %v7573_v55 }
 0x3e4   : > { %v5672_v13 = vadd.f32 %v3292_v1, %v7567_v20  ;;  %v3294_v7 = vpop.f32.mrb[33].mxu1  ;;  %v5641_v29 = vadd.f32 %v2972_v40, %v7578_v31 }
 0x3e5   : > { %v5673_v2 = vadd.f32 %v3294_v7, %v7570_v18 }
 0x3e6   : > { %v4633_v15 = vmul.f32 -1.442695, %v5672_v13  ;;  %v2976_v57 = vpop.f32.mrb[34].mxu0 }
 0x3e7   : > { %v4634_v35 = vmul.f32 -1.442695, %v5673_v2  ;;  %v3298_v53 = vpop.f32.mrb[34].mxu1  ;;  %v2978_v21 = vpop.f32.mrb[35].mxu0  ;;  %v5642_v51 = vadd.f32 %v2976_v57, %v7573_v55 }
 0x3e8   : > { %6090 = vpow2.f32 %v4633_v15  ;;  %v5674_v54 = vadd.f32 %v3298_v53, %v7567_v20  ;;  %v3300_v62 = vpop.f32.mrb[35].mxu1  ;;  %v5643_v15 = vadd.f32 %v2978_v21, %v7578_v31 }
 0x3e9   : > { %6092 = vpow2.f32 %v4634_v35  ;;  %v5675_v38 = vadd.f32 %v3300_v62, %v7570_v18 }
 0x3ea   : > { %v4635_v43 = vmul.f32 -1.442695, %v5674_v54  ;;  %v2982_v32 = vpop.f32.mrb[36].mxu0  ;;  %6094 = vtanh.f32 %v5640_v16 }
 0x3eb   : > { %v4636_v63 = vmul.f32 -1.442695, %v5675_v38  ;;  %v3304_v1 = vpop.f32.mrb[36].mxu1  ;;  %v2984_v8 = vpop.f32.mrb[37].mxu0  ;;  %v5644_v16 = vadd.f32 %v2982_v32, %v7573_v55 }
 0x3ec   : > { %6096 = vpow2.f32 %v4635_v43  ;;  %v5676_v13 = vadd.f32 %v3304_v1, %v7567_v20  ;;  %v3306_v7 = vpop.f32.mrb[37].mxu1 }
 0x3ed   : > { %6098 = vpow2.f32 %v4636_v63  ;;  %v5677_v2 = vadd.f32 %v3306_v7, %v7570_v18 }
 0x3ee   : > { %6100 = vtanh.f32 %v5641_v29  ;;  %v4637_v35 = vmul.f32 -1.442695, %v5676_v13  ;;  %v2988_v40 = vpop.f32.mrb[38].mxu0 }
 0x3ef   : > { %6102 = vtanh.f32 %v5642_v51  ;;  %v4638_v53 = vmul.f32 -1.442695, %v5677_v2  ;;  %v3310_v57 = vpop.f32.mrb[38].mxu1  ;;  %v2990_v54 = vpop.f32.mrb[39].mxu0 }
 0x3f0   : > { %6104 = vpow2.f32 %v4637_v35  ;;  %v5678_v62 = vadd.f32 %v3310_v57, %v7567_v20  ;;  %v3312_v38 = vpop.f32.mrb[39].mxu1  ;;  %v5645_v35 = vadd.f32 %v2984_v8, %v7578_v31 }
 0x3f1   : > { %6106 = vpow2.f32 %v4638_v53  ;;  %v5679_v43 = vadd.f32 %v3312_v38, %v7570_v18 }
 0x3f2   : > { %v6091_v63 = vpop.eup %6090  ;;  %6108 = vtanh.f32 %v5643_v15  ;;  %v4639_v29 = vmul.f32 -1.442695, %v5678_v62  ;;  %v2994_v1 = vpop.f32.mrb[40].mxu0 }
 0x3f3   : > { %v6093_v21 = vpop.eup %6092  ;;  %v3515_v13 = vadd.f32 1.0, %v6091_v63  ;;  %6110 = vtanh.f32 %v5644_v16  ;;  %v4640_v51 = vmul.f32 -1.442695, %v5679_v43  ;;  %v3316_v7 = vpop.f32.mrb[40].mxu1 }
 0x3f4   : > { %v7591_v32 = vpop.f32.mrb[41].mxu0  ;;  %v3516_v2 = vadd.f32 1.0, %v6093_v21  ;;  %6112 = vpow2.f32 %v4639_v29  ;;  %v5680_v57 = vadd.f32 %v3316_v7, %v7567_v20  ;;  %v3318_v53 = vpop.f32.mrb[41].mxu1  ;;  %v5646_v7 = vadd.f32 %v2988_v40, %v7573_v55 }
 0x3f5   : > { %v6095_v45 = vpop.eup %6094  ;;  %6114 = vrcp.f32 %v3515_v13  ;;  %v5681_v43 = vadd.f32 %v3318_v53, %v7570_v18  ;;  %v5647_v40 = vadd.f32 %v2990_v54, %v7578_v31  ;;  %v5648_v54 = vadd.f32 %v2994_v1, %v7573_v55 }
 0x3f6   : > { %v6097_v38 = vpop.eup %6096  ;;  %6116 = vrcp.f32 %v3516_v2  ;;  %v7595_v15 = vpop.f32.mrb[42].mxu0  ;;  %v4641_v16 = vmul.f32 -1.442695, %v5680_v57 }
 0x3f7   : > { %v6099_v62 = vpop.eup %6098  ;;  %v3517_v63 = vadd.f32 1.0, %v6097_v38  ;;  %6118 = vpow2.f32 %v4640_v51  ;;  %v3322_v41 = vpop.f32.mrb[42].mxu1  ;;  %v3643_v51 = vld [vmem:[#allocation17] sm:$0x3]  ;;  %v4642_v37 = vmul.f32 -1.442695, %v5681_v43 }
 0x3f8   : > { %v7598_v21 = vpop.f32.mrb[43].mxu0  ;;  %v6101_v8 = vpop.eup %6100  ;;  %v3518_v29 = vadd.f32 1.0, %v6099_v62  ;;  %6120 = vtanh.f32 %v5645_v35  ;;  %v5682_v17 = vadd.f32 %v3322_v41, %v7567_v20  ;;  %v7616_v43 = vrot.slane %v3643_v51, %v7126_v14 }
 0x3f9   : > { %v3324_v6 = vpop.f32.mrb[43].mxu1  ;;  %v6103_v13 = vpop.eup %6102  ;;  %6122 = vrcp.f32 %v3517_v63 }
 0x3fa   : > { %v6105_v2 = vpop.eup %6104  ;;  %6124 = vrcp.f32 %v3518_v29  ;;  %v7602_v38 = vpop.f32.mrb[44].mxu0  ;;  %v5683_v41 = vadd.f32 %v3324_v6, %v7570_v18  ;;  %v4643_v34 = vmul.f32 -1.442695, %v5682_v17 }
 0x3fb   : > { %v6107_v57 = vpop.eup %6106  ;;  %v3519_v53 = vadd.f32 1.0, %v6105_v2  ;;  %6126 = vpow2.f32 %v4641_v16  ;;  %v3328_v27 = vpop.f32.mrb[44].mxu1  ;;  %v7613_v16 = vrot.slane %v3643_v51, %v7121_v12  ;;  %v5649_v51 = vadd.f32 %v7591_v32, %v7578_v31 }
 0x3fc   : > { %v7604_v25 = vpop.f32.mrb[45].mxu0  ;;  %v6109_v35 = vpop.eup %6108  ;;  %v3520_v62 = vadd.f32 1.0, %v6107_v57  ;;  %6128 = vtanh.f32 %v5646_v7  ;;  %v4644_v14 = vmul.f32 -1.442695, %v5683_v41 }
 0x3fd   : > { %v3330_v63 = vpop.f32.mrb[45].mxu1  ;;  %v7607_v56 = vpop.eup %6110  ;;  %6130 = vrcp.f32 %v3519_v53  ;;  %v5684_v53 = vadd.f32 %v3328_v27, %v7567_v20 }
 0x3fe   : > { %v6113_v29 = vpop.eup %6112  ;;  %6132 = vrcp.f32 %v3520_v62  ;;  %v7610_v2 = vpop.f32.mrb[46].mxu0 }
 0x3ff   : > { %v6115_v7 = vpop.eup %6114  ;;  %v3521_v57 = vadd.f32 1.0, %v6113_v29  ;;  %6134 = vpow2.f32 %v4642_v37  ;;  %v3334_v50 = vpop.f32.mrb[46].mxu1  ;;  %v5685_v37 = vadd.f32 %v3330_v63, %v7570_v18 }
 0x400   : > { %v7620_v6 = vpop.f32.mrb[47].mxu0  ;;  %v6117_v62 = vpop.eup %6116  ;;  %6136 = vtanh.f32 %v5647_v40  ;;  %v3611_v44 = vmul.f32 %v6115_v7, %v6095_v45  ;;  %v4645_v40 = vmul.f32 -1.442695, %v5684_v53  ;;  %v5686_v41 = vadd.f32 %v3334_v50, %v7567_v20 }
 0x401   : > { %v3336_v17 = vpop.f32.mrb[47].mxu1  ;;  %v6119_v19 = vpop.eup %6118  ;;  %6138 = vrcp.f32 %v3521_v57  ;;  %v3612_v0 = vmul.f32 %v6117_v62, %v6101_v8  ;;  %v4646_v24 = vmul.f32 -1.442695, %v5685_v37 }
 0x402   : > { %v6121_v29 = vpop.eup %6120  ;;  %v3522_v42 = vadd.f32 1.0, %v6119_v19  ;;  %6140 = vpow2.f32 %v4643_v34  ;;  %v7625_v27 = vpop.f32.mrb[48].mxu0  ;;  %v3655_v1 = vmul.f32 %v7613_v16, %v3611_v44  ;;  %v5650_v19 = vadd.f32 %v7595_v15, %v7573_v55 }
 0x403   : > { %v6123_v26 = vpop.eup %6122  ;;  %6142 = vtanh.f32 %v5648_v54  ;;  %v3340_v45 = vpop.f32.mrb[48].mxu1  ;;  %v3656_v57 = vmul.f32 %v7616_v43, %v3612_v0  ;;  %v5651_v15 = vadd.f32 %v7598_v21, %v7578_v31  ;;  %v4647_v21 = vmul.f32 -1.442695, %v5686_v41 }
 0x404   : > { %v7628_v7 = vpop.f32.mrb[49].mxu0  ;;  %v6125_v32 = vpop.eup %6124  ;;  %6144 = vrcp.f32 %v3522_v42  ;;  %v3613_v8 = vmul.f32 %v6123_v26, %v6103_v13 }
 0x405   : > { %v3342_v34 = vpop.f32.mrb[49].mxu1  ;;  %v6127_v63 = vpop.eup %6126  ;;  %6146 = vpow2.f32 %v4644_v14  ;;  %v3687_v44 = vadd.f32 %v3656_v57, %v3655_v1  ;;  %v3614_v62 = vmul.f32 %v6125_v32, %v6109_v35  ;;  %v5652_v35 = vadd.f32 %v7602_v38, %v7573_v55 }
 0x406   : > { %v6129_v54 = vpop.eup %6128  ;;  %v3523_v53 = vadd.f32 1.0, %v6127_v63  ;;  %6148 = vtanh.f32 %v5649_v51  ;;  %v7634_v49 = vpop.f32.mrb[50].mxu0  ;;  %v3657_v0 = vmul.f32 %v7613_v16, %v3613_v8  ;;  %v5687_v51 = vadd.f32 %v3336_v17, %v7570_v18 }
 0x407   : > { %v6131_v42 = vpop.eup %6130  ;;  %6150 = vpow2.f32 %v4645_v40  ;;  %v3346_v26 = vpop.f32.mrb[50].mxu1  ;;  %3688 = vadd.xlane.f32.xlu0 %v3687_v44  ;;  %v3658_v50 = vmul.f32 %v7616_v43, %v3614_v62  ;;  %v5688_v44 = vadd.f32 %v3340_v45, %v7567_v20 }
 0x408   : > { %v7639_v14 = vpop.f32.mrb[51].mxu0  ;;  %v6133_v13 = vpop.eup %6132  ;;  %6152 = vrcp.f32 %v3523_v53  ;;  %v3615_v1 = vmul.f32 %v6131_v42, %v7607_v56 }
 0x409   : > { %v3348_v37 = vpop.f32.mrb[51].mxu1  ;;  %v6135_v57 = vpop.eup %6134  ;;  %6154 = vtanh.f32 %v5650_v19  ;;  %v3690_v40 = vadd.f32 %v3658_v50, %v3657_v0  ;;  %v3616_v32 = vmul.f32 %v6133_v13, %v6121_v29  ;;  %v4648_v29 = vmul.f32 -1.442695, %v5687_v51 }
 0x40a   : > { %v6137_v8 = vpop.eup %6136  ;;  %v3524_v63 = vadd.f32 1.0, %v6135_v57  ;;  %6156 = vpow2.f32 %v4646_v24  ;;  %v7647_v62 = vpop.f32.mrb[52].mxu0  ;;  %v3659_v53 = vmul.f32 %v7613_v16, %v3615_v1  ;;  %v5653_v50 = vadd.f32 %v7604_v25, %v7578_v31 }
 0x40b   : > { %v6139_v38 = vpop.eup %6138  ;;  %6158 = vtanh.f32 %v5651_v15  ;;  %v7650_v17 = vpop.f32.mrb[52].mxu1  ;;  %3691 = vadd.xlane.f32.xlu0 %v3690_v40  ;;  %v3660_v19 = vmul.f32 %v7616_v43, %v3616_v32  ;;  %v5654_v1 = vadd.f32 %v7610_v2, %v7573_v55  ;;  %v4649_v57 = vmul.f32 -1.442695, %v5688_v44 }
 0x40c   : > { %v7652_v56 = vpop.f32.mrb[53].mxu0  ;;  %v6141_v41 = vpop.eup %6140  ;;  %6160 = vrcp.f32 %v3524_v63  ;;  %v3617_v24 = vmul.f32 %v6139_v38, %v6129_v54  ;;  %v5689_v40 = vadd.f32 %v3342_v34, %v7570_v18 }
 0x40d   : > { %v7655_v0 = vpop.f32.mrb[53].mxu1  ;;  %v6143_v45 = vpop.eup %6142  ;;  %v3525_v42 = vadd.f32 1.0, %v6141_v41  ;;  %6162 = vpow2.f32 %v4647_v21  ;;  %v3693_v15 = vadd.f32 %v3660_v19, %v3659_v53  ;;  %v5690_v41 = vadd.f32 %v3346_v26, %v7567_v20 }
 0x40e   : > { %v6145_v13 = vpop.eup %6144  ;;  %6164 = vtanh.f32 %v5652_v35  ;;  %v3036_v32 = vpop.f32.mrb[54].mxu0  ;;  %v3661_v21 = vmul.f32 %v7613_v16, %v3617_v24 }
 0x40f   : > { %v6147_v51 = vpop.eup %6146  ;;  %6166 = vrcp.f32 %v3525_v42  ;;  %v7663_v54 = vadd.f32 %v3036_v32, %v7573_v55  ;;  %v3358_v63 = vpop.f32.mrb[54].mxu1  ;;  %3694 = vadd.xlane.f32.xlu1 %v3693_v15  ;;  %v3618_v25 = vmul.f32 %v6145_v13, %v6137_v8 }
 0x410   : > { %v3038_v38 = vpop.f32.mrb[55].mxu0  ;;  %v6149_v53 = vpop.eup %6148  ;;  %v3526_v35 = vadd.f32 1.0, %v6147_v51  ;;  %6168 = vpow2.f32 %v4648_v29  ;;  %v7667_v2 = vadd.f32 %v3358_v63, %v7567_v20  ;;  %v4650_v29 = vmul.f32 -1.442695, %v5689_v40 }
 0x411   : > { %v7670_v34 = vadd.f32 %v3038_v38, %v7578_v31  ;;  %v3360_v44 = vpop.f32.mrb[55].mxu1  ;;  %v6151_v19 = vpop.eup %6150  ;;  %6170 = vtanh.f32 %v5653_v50  ;;  %v3662_v8 = vmul.f32 %v7616_v43, %v3618_v25  ;;  %v5691_v51 = vadd.f32 %v3348_v37, %v7570_v18 }
 0x412   : > { %v7674_v42 = vadd.f32 %v3360_v44, %v7570_v18  ;;  %v6153_v24 = vpop.eup %6152  ;;  %6172 = vrcp.f32 %v3526_v35  ;;  %v3527_v15 = vadd.f32 1.0, %v6151_v19  ;;  %v3042_v13 = vpop.f32.mrb[56].mxu0  ;;  %v4651_v37 = vmul.f32 -1.442695, %v5690_v41 }
 0x413   : > { %v6155_v32 = vpop.eup %6154  ;;  %6174 = vpow2.f32 %v4649_v57  ;;  %v7679_v63 = vadd.f32 %v3042_v13, %v7573_v55  ;;  %v3364_v50 = vpop.f32.mrb[56].mxu1  ;;  %v3696_v38 = vadd.f32 %v3662_v8, %v3661_v21  ;;  %v3619_v35 = vmul.f32 %v6153_v24, %v6143_v45 }
 0x414   : > { %v3044_v26 = vpop.f32.mrb[57].mxu0  ;;  %v6157_v30 = vpop.eup %6156  ;;  %6176 = vrcp.f32 %v3527_v15  ;;  %v7682_v44 = vadd.f32 %v3364_v50, %v7567_v20  ;;  %v5655_v8 = vadd.f32 %v7620_v6, %v7578_v31  ;;  %v5692_v15 = vadd.f32 %v7650_v17, %v7567_v20 }
 0x415   : > { %v7685_v25 = vadd.f32 %v3044_v26, %v7578_v31  ;;  %v3366_v40 = vpop.f32.mrb[57].mxu1  ;;  %v6159_v19 = vpop.eup %6158  ;;  %v3528_v57 = vadd.f32 1.0, %v6157_v30  ;;  %6178 = vtanh.f32 %v5654_v1  ;;  %3697 = vadd.xlane.f32.xlu1 %v3696_v38  ;;  %v3663_v41 = vmul.f32 %v7613_v16, %v3619_v35 }
 0x416   : > { %v7688_v13 = vadd.f32 %v3366_v40, %v7570_v18  ;;  %v6161_v21 = vpop.eup %6160  ;;  %6180 = vpow2.f32 %v4650_v29  ;;  %v3048_v50 = vpop.f32.mrb[58].mxu0  ;;  %v4652_v61 = vmul.f32 -1.442695, %v5691_v51  ;;  %v5657_v51 = vadd.f32 %v7628_v7, %v7578_v31 }
 0x417   : > { %v6163_v26 = vpop.eup %6162  ;;  %6182 = vrcp.f32 %v3528_v57  ;;  %v7695_v45 = vadd.f32 %v3048_v50, %v7573_v55  ;;  %v3370_v30 = vpop.f32.mrb[58].mxu1  ;;  %v3620_v1 = vmul.f32 %v6161_v21, %v6149_v53  ;;  %v5656_v57 = vadd.f32 %v7625_v27, %v7573_v55 }
 0x418   : > { %v3050_v24 = vpop.f32.mrb[59].mxu0  ;;  %v6165_v38 = vpop.eup %6164  ;;  %v3529_v40 = vadd.f32 1.0, %v6163_v26  ;;  %v7699_v6 = vadd.f32 %v3370_v30, %v7567_v20  ;;  %6184 = vpow2.f32 %v4651_v37  ;;  %v5693_v50 = vadd.f32 %v7655_v0, %v7570_v18 }
 0x419   : > { %v7702_v29 = vadd.f32 %v3050_v24, %v7578_v31  ;;  %v3372_v17 = vpop.f32.mrb[59].mxu1  ;;  %v6167_v52 = vpop.eup %6166  ;;  %v3664_v53 = vmul.f32 %v7616_v43, %v3620_v1  ;;  %v4653_v27 = vmul.f32 -1.442695, %v5692_v15 }
 0x41a   : > { %v7708_v35 = vadd.f32 %v3372_v17, %v7570_v18  ;;  %v6169_v21 = vpop.eup %6168  ;;  %6186 = vrcp.f32 %v3529_v40  ;;  %v3054_v26 = vpop.f32.mrb[60].mxu0  ;;  %v3621_v30 = vmul.f32 %v6167_v52, %v6155_v32 }
 0x41b   : > { %v6171_v24 = vpop.eup %6170  ;;  %6188 = vtanh.f32 %v5655_v8  ;;  %v3530_v22 = vadd.f32 1.0, %v6169_v21  ;;  %v3699_v37 = vadd.f32 %v3664_v53, %v3663_v41  ;;  %v3376_v5 = vpop.f32.mrb[60].mxu1  ;;  %v7715_v17 = vadd.f32 %v3054_v26, %v7573_v55 }
 0x41c   : > { %v3056_v1 = vpop.f32.mrb[61].mxu0  ;;  %v6173_v46 = vpop.eup %6172  ;;  %6190 = vpow2.f32 %v4652_v61  ;;  %v7718_v40 = vadd.f32 %v3376_v5, %v7567_v20  ;;  %v3665_v7 = vmul.f32 %v7613_v16, %v3621_v30  ;;  %v5658_v5 = vadd.f32 %v7634_v49, %v7573_v55 }
 0x41d   : > { %v3378_v0 = vpop.f32.mrb[61].mxu1  ;;  %v6175_v36 = vpop.eup %6174  ;;  %6192 = vrcp.f32 %v3530_v22  ;;  %3700 = vadd.xlane.f32.xlu0 %v3699_v37  ;;  %v3622_v52 = vmul.f32 %v6173_v46, %v6159_v19  ;;  %v7722_v32 = vadd.f32 %v3056_v1, %v7578_v31  ;;  %v4654_v41 = vmul.f32 -1.442695, %v5693_v50 }
 0x41e   : > { %v7725_v8 = vadd.f32 %v3378_v0, %v7570_v18  ;;  %v6177_v61 = vpop.eup %6176  ;;  %6194 = vtanh.f32 %v5656_v57  ;;  %v3531_v15 = vadd.f32 1.0, %v6175_v36  ;;  %v3060_v53 = vpop.f32.mrb[62].mxu0  ;;  %v4655_v22 = vmul.f32 -1.442695, %v7667_v2 }
 0x41f   : > { %v6179_v21 = vpop.eup %6178  ;;  %6196 = vpow2.f32 %v4653_v27  ;;  %v3666_v46 = vmul.f32 %v7616_v43, %v3622_v52  ;;  %v7732_v19 = vadd.f32 %v3060_v53, %v7573_v55  ;;  %v3382_v26 = vpop.f32.mrb[62].mxu1  ;;  %v3623_v57 = vmul.f32 %v6177_v61, %v6165_v38 }
 0x420   : > { %v3062_v30 = vpop.f32.mrb[63].mxu0  ;;  %v6181_v37 = vpop.eup %6180  ;;  %6198 = vrcp.f32 %v3531_v15  ;;  %v7735_v36 = vadd.f32 %v3382_v26, %v7567_v20  ;;  %v5659_v20 = vadd.f32 %v7639_v14, %v7578_v31 }
 0x421   : > { %v7738_v49 = vadd.f32 %v3062_v30, %v7578_v31  ;;  %v3384_v50 = vpop.f32.mrb[63].mxu1  ;;  %v6183_v27 = vpop.eup %6182  ;;  %6200 = vtanh.f32 %v5657_v51  ;;  %v3532_v2 = vadd.f32 1.0, %v6181_v37  ;;  %v3702_v1 = vadd.f32 %v3666_v46, %v3665_v7 }
 0x422   : > { %v7741_v0 = vadd.f32 %v3384_v50, %v7570_v18  ;;  %6202 = vpow2.f32 %v4654_v41  ;;  %v3624_v52 = vmul.f32 %v6183_v27, %v6171_v24  ;;  %v3667_v53 = vmul.f32 %v7613_v16, %v3623_v57  ;;  %v6185_v15 = vpop.eup %6184 }
 0x423   : > { %6204 = vrcp.f32 %v3532_v2  ;;  %3703 = vadd.xlane.f32.xlu1 %v3702_v1  ;;  %v3533_v61 = vadd.f32 1.0, %v6185_v15  ;;  %v4656_v51 = vmul.f32 -1.442695, %v7674_v42  ;;  %v5660_v24 = vadd.f32 %v7647_v62, %v7573_v55 }
 0x424   : > { %v6187_v38 = vpop.eup %6186  ;;  %6206 = vtanh.f32 %v5658_v5  ;;  %v3668_v7 = vmul.f32 %v7616_v43, %v3624_v52  ;;  %v4657_v37 = vmul.f32 -1.442695, %v7682_v44  ;;  %v4658_v62 = vmul.f32 -1.442695, %v7688_v13 }
 0x425   : > { %v6189_v46 = vpop.eup %6188  ;;  %6208 = vpow2.f32 %v4655_v22  ;;  %v3625_v18 = vmul.f32 %v6187_v38, %v6179_v21  ;;  %v5661_v21 = vadd.f32 %v7652_v56, %v7578_v31 }
 0x426   : > { %v6191_v41 = vpop.eup %6190  ;;  %6210 = vrcp.f32 %v3533_v61  ;;  %v3705_v26 = vadd.f32 %v3668_v7, %v3667_v53  ;;  %v4660_v7 = vmul.f32 -1.442695, %v7708_v35 }
 0x427   : > { %v6193_v30 = vpop.eup %6192  ;;  %6212 = vtanh.f32 %v5659_v20  ;;  %v3534_v14 = vadd.f32 1.0, %v6191_v41  ;;  %v3669_v57 = vmul.f32 %v7613_v16, %v3625_v18  ;;  %v4659_v20 = vmul.f32 -1.442695, %v7699_v6 }
 0x428   : > { %v6195_v5 = vpop.eup %6194  ;;  %6214 = vpow2.f32 %v4656_v51  ;;  %3706 = vadd.xlane.f32.xlu0 %v3705_v26  ;;  %v3626_v42 = vmul.f32 %v6193_v30, %v6189_v46 }
 0x429   : > { %v6197_v50 = vpop.eup %6196  ;;  %6216 = vrcp.f32 %v3534_v14  ;;  %v4661_v14 = vmul.f32 -1.442695, %v7718_v40 }
 0x42a   : > { %v6199_v22 = vpop.eup %6198  ;;  %6218 = vtanh.f32 %v5660_v24  ;;  %v3535_v55 = vadd.f32 1.0, %v6197_v50  ;;  %v3670_v27 = vmul.f32 %v7616_v43, %v3626_v42  ;;  %v4662_v50 = vmul.f32 -1.442695, %v7725_v8 }
 0x42b   : > { %v6201_v2 = vpop.eup %6200  ;;  %6220 = vpow2.f32 %v4657_v37  ;;  %v3627_v44 = vmul.f32 %v6199_v22, %v6195_v5 }
 0x42c   : > { %v6203_v1 = vpop.eup %6202  ;;  %6222 = vrcp.f32 %v3535_v55  ;;  %v3708_v52 = vadd.f32 %v3670_v27, %v3669_v57 }
 0x42d   : > { %v6205_v53 = vpop.eup %6204  ;;  %6224 = vtanh.f32 %v5661_v21  ;;  %v3536_v15 = vadd.f32 1.0, %v6203_v1  ;;  %v3671_v56 = vmul.f32 %v7613_v16, %v3627_v44 }
 0x42e   : > { %v6207_v38 = vpop.eup %6206  ;;  %6226 = vpow2.f32 %v4658_v62  ;;  %3709 = vadd.xlane.f32.xlu1 %v3708_v52  ;;  %v3628_v31 = vmul.f32 %v6205_v53, %v6201_v2  ;;  %v4663_v2 = vmul.f32 -1.442695, %v7735_v36 }
 0x42f   : > { %v6209_v13 = vpop.eup %6208  ;;  %6228 = vrcp.f32 %v3536_v15  ;;  %v4664_v15 = vmul.f32 -1.442695, %v7741_v0 }
 0x430   : > { %v6211_v61 = vpop.eup %6210  ;;  %6230 = vtanh.f32 %v7663_v54  ;;  %v3537_v51 = vadd.f32 1.0, %v6209_v13  ;;  %v3672_v46 = vmul.f32 %v7616_v43, %v3628_v31 }
 0x431   : > { %v6213_v18 = vpop.eup %6212  ;;  %6232 = vpow2.f32 %v4659_v20  ;;  %v3629_v41 = vmul.f32 %v6211_v61, %v6207_v38 }
 0x432   : > { %v6215_v6 = vpop.eup %6214  ;;  %6234 = vrcp.f32 %v3537_v51  ;;  %v3711_v24 = vadd.f32 %v3672_v46, %v3671_v56 }
 0x433   : > { %v6217_v26 = vpop.eup %6216  ;;  %6236 = vtanh.f32 %v7670_v34  ;;  %v3538_v30 = vadd.f32 1.0, %v6215_v6  ;;  %v3673_v35 = vmul.f32 %v7613_v16, %v3629_v41 }
 0x434   : > { %v6219_v37 = vpop.eup %6218  ;;  %6238 = vpow2.f32 %v4660_v7  ;;  %3712 = vadd.xlane.f32.xlu0 %v3711_v24  ;;  %v3630_v54 = vmul.f32 %v6217_v26, %v6213_v18 }
 0x435   : > { %v6221_v5 = vpop.eup %6220  ;;  %6240 = vrcp.f32 %v3538_v30 }
 0x436   : > { %v6223_v42 = vpop.eup %6222  ;;  %6242 = vtanh.f32 %v7679_v63  ;;  %v3539_v57 = vadd.f32 1.0, %v6221_v5  ;;  %v3674_v21 = vmul.f32 %v7616_v43, %v3630_v54 }
 0x437   : > { %v6225_v34 = vpop.eup %6224  ;;  %6244 = vpow2.f32 %v4661_v14  ;;  %v3631_v22 = vmul.f32 %v6223_v42, %v6219_v37 }
 0x438   : > { %v6227_v40 = vpop.eup %6226  ;;  %6246 = vrcp.f32 %v3539_v57  ;;  %v3714_v55 = vadd.f32 %v3674_v21, %v3673_v35 }
 0x439   : > { %v6229_v62 = vpop.eup %6228  ;;  %6248 = vtanh.f32 %v7685_v25  ;;  %v3540_v27 = vadd.f32 1.0, %v6227_v40  ;;  %v3675_v8 = vmul.f32 %v7613_v16, %v3631_v22 }
 0x43a   : > { %v6231_v44 = vpop.eup %6230  ;;  %6250 = vpow2.f32 %v4662_v50  ;;  %3715 = vadd.xlane.f32.xlu1 %v3714_v55  ;;  %v3632_v63 = vmul.f32 %v6229_v62, %v6225_v34 }
 0x43b   : > { %v6233_v1 = vpop.eup %6232  ;;  %6252 = vrcp.f32 %v3540_v27 }
 0x43c   : > { %v6235_v52 = vpop.eup %6234  ;;  %6254 = vtanh.f32 %v7695_v45  ;;  %v3541_v53 = vadd.f32 1.0, %v6233_v1  ;;  %v3676_v20 = vmul.f32 %v7616_v43, %v3632_v63 }
 0x43d   : > { %v6237_v25 = vpop.eup %6236  ;;  %6256 = vpow2.f32 %v4663_v2  ;;  %v3633_v38 = vmul.f32 %v6235_v52, %v6231_v44 }
 0x43e   : > { %v6239_v36 = vpop.eup %6238  ;;  %6258 = vrcp.f32 %v3541_v53  ;;  %v3717_v31 = vadd.f32 %v3676_v20, %v3675_v8 }
 0x43f   : > { %v6241_v56 = vpop.eup %6240  ;;  %6260 = vtanh.f32 %v7702_v29  ;;  %v3542_v13 = vadd.f32 1.0, %v6239_v36  ;;  %v3677_v45 = vmul.f32 %v7613_v16, %v3633_v38 }
 0x440   : > { %v6243_v61 = vpop.eup %6242  ;;  %6262 = vpow2.f32 %v4664_v15  ;;  %3718 = vadd.xlane.f32.xlu0 %v3717_v31  ;;  %v3634_v51 = vmul.f32 %v6241_v56, %v6237_v25 }
 0x441   : > { %v6245_v7 = vpop.eup %6244  ;;  %6264 = vrcp.f32 %v3542_v13 }
 0x442   : > { %v6247_v0 = vpop.eup %6246  ;;  %v3543_v46 = vadd.f32 1.0, %v6245_v7  ;;  %v3678_v18 = vmul.f32 %v7616_v43, %v3634_v51  ;;  %6266 = vtanh.f32 %v7715_v17  ;;  %v6643_v51 = vmov 0  }
 0x443   : > { %v6249_v41 = vpop.eup %6248  ;;  %v3635_v6 = vmul.f32 %v6247_v0, %v6243_v61  ;;  %6089 = vset.pattern.permute.xlu1 %v6643_v51  ;;  %6088 = vset.pattern.permute.xlu0 %v6643_v51 }
 0x444   : > { %v6251_v24 = vpop.eup %6250  ;;  %6268 = vrcp.f32 %v3543_v46  ;;  %v3720_v29 = vadd.f32 %v3678_v18, %v3677_v45 }
 0x445   : > { %v6253_v26 = vpop.eup %6252  ;;  %v3544_v30 = vadd.f32 1.0, %v6251_v24  ;;  %6270 = vtanh.f32 %v7722_v32  ;;  %v3679_v54 = vmul.f32 %v7613_v16, %v3635_v6  ;;  %v3776_v6 = vstv %s4666_s7  ;;  %v8254_v24 = vld [vmem:[#allocation29_spill] sm:$0xff] }
 0x446   : > { %v6255_v14 = vpop.eup %6254  ;;  %3721 = vadd.xlane.f32.xlu1 %v3720_v29  ;;  %v3636_v37 = vmul.f32 %v6253_v26, %v6249_v41  ;;  %v3761_v29 = vadd.s32 8, %v8254_v24  ;;  %v3764_v26 = vadd.s32 32, %v8254_v24 }
 0x447   : > { %v6257_v35 = vpop.eup %6256  ;;  %6272 = vrcp.f32 %v3544_v30  ;;  %v3765_v30 = vadd.s32 40, %v8254_v24 }
 0x448   : > { %v6259_v5 = vpop.eup %6258  ;;  %v3545_v42 = vadd.f32 1.0, %v6257_v35  ;;  %v3680_v57 = vmul.f32 %v7616_v43, %v3636_v37  ;;  %6274 = vtanh.f32 %v7732_v19  ;;  %v3777_v35 = vadd.s32 %v3776_v6, %v8254_v24 }
 0x449   : > { %v6261_v17 = vpop.eup %6260  ;;  %v3637_v50 = vmul.f32 %v6259_v5, %v6255_v14  ;;  %v3766_v14 = vadd.s32 48, %v8254_v24  ;;  %v3767_v5 = vadd.s32 56, %v8254_v24 }
 0x44a   : > { %v6263_v21 = vpop.eup %6262  ;;  %6276 = vrcp.f32 %v3545_v42  ;;  %v3723_v34 = vadd.f32 %v3680_v57, %v3679_v54  ;;  %v3768_v42 = vadd.s32 64, %v8254_v24  ;;  %v7800_v57 = vstv %s3793_s22 }
 0x44b   : > { %v6265_v22 = vpop.eup %6264  ;;  %v3546_v40 = vadd.f32 1.0, %v6263_v21  ;;  %6278 = vtanh.f32 %v7738_v49  ;;  %v3681_v55 = vmul.f32 %v7613_v16, %v3637_v50  ;;  %v3769_v21 = vadd.s32 72, %v8254_v24 }
 0x44c   : > { %3724 = vadd.xlane.f32.xlu0 %v3723_v34  ;;  %v3638_v32 = vmul.f32 %v6265_v22, %v6261_v17  ;;  %v6267_v62 = vpop.eup %6266  ;;  %v3778_v17 = vadd.s32 %v3776_v6, %v3761_v29  ;;  %v3770_v22 = vadd.s32 80, %v8254_v24  ;;  %vm3795_vm2 = vcmp.lt.s32.totalorder %v3777_v35, %v7800_v57 }
 0x44d   : > { %6280 = vrcp.f32 %v3546_v40  ;;  %v3771_v40 = vadd.s32 88, %v8254_v24 }
 0x44e   : > { %v6269_v27 = vpop.eup %6268  ;;  %v3682_v2 = vmul.f32 %v7616_v43, %v3638_v32  ;;  %v3772_v32 = vadd.s32 96, %v8254_v24  ;;  %vm3796_vm4 = vcmp.lt.s32.totalorder %v3778_v17, %v7800_v57 }
 0x44f   : > { %v3639_v44 = vmul.f32 %v6269_v27, %v6267_v62  ;;  %v6271_v63 = vpop.eup %6270  ;;  %v3782_v62 = vadd.s32 %v3776_v6, %v3765_v30  ;;  %v3783_v27 = vadd.s32 %v3776_v6, %v3766_v14 }
 0x450   : > { %v3726_v19 = vadd.f32 %v3682_v2, %v3681_v55  ;;  %v3781_v55 = vadd.s32 %v3776_v6, %v3764_v26 }
 0x451   : > { %v6273_v8 = vpop.eup %6272  ;;  %v3683_v52 = vmul.f32 %v7613_v16, %v3639_v44  ;;  %vm3800_vm8 = vcmp.lt.s32.totalorder %v3782_v62, %v7800_v57  ;;  %vm3801_vm9 = vcmp.lt.s32.totalorder %v3783_v27, %v7800_v57 }
 0x452   : > { %3727 = vadd.xlane.f32.xlu1 %v3726_v19  ;;  %v3640_v1 = vmul.f32 %v6273_v8, %v6271_v63  ;;  %v6275_v53 = vpop.eup %6274  ;;  %v3773_v63 = vadd.s32 104, %v8254_v24  ;;  %v3784_v19 = vadd.s32 %v3776_v6, %v3767_v5  ;;  %v3785_v8 = vadd.s32 %v3776_v6, %v3768_v42 }
 0x453   : > { %vm3799_vm7 = vcmp.lt.s32.totalorder %v3781_v55, %v7800_v57 }
 0x454   : > { %v6277_v15 = vpop.eup %6276  ;;  %v3684_v49 = vmul.f32 %v7616_v43, %v3640_v1  ;;  %v3774_v1 = vadd.s32 112, %v8254_v24  ;;  %vm3802_vm10 = vcmp.lt.s32.totalorder %v3784_v19, %v7800_v57  ;;  %vm3803_vm11 = vcmp.lt.s32.totalorder %v3785_v8, %v7800_v57 }
 0x455   : > { %v3641_v20 = vmul.f32 %v6277_v15, %v6275_v53  ;;  %v6279_v25 = vpop.eup %6278  ;;  %v3786_v53 = vadd.s32 %v3776_v6, %v3769_v21  ;;  %v3775_v15 = vadd.s32 120, %v8254_v24 }
 0x456   : > { %v3729_v38 = vadd.f32 %v3684_v49, %v3683_v52  ;;  %v7809_v52 = vld [vmem:[#allocation7] ss:$0 sm:$0xff]  ;;  %v3787_v49 = vadd.s32 %v3776_v6, %v3770_v22 }
 0x457   : > { %v6281_v36 = vpop.eup %6280  ;;  %v3685_v56 = vmul.f32 %v7613_v16, %v3641_v20  ;;  %v3762_v16 = vadd.s32 16, %v8254_v24  ;;  %v3788_v20 = vadd.s32 %v3776_v6, %v3771_v40  ;;  %vm3804_vm12 = vcmp.lt.s32.totalorder %v3786_v53, %v7800_v57 }
 0x458   : > { %3730 = vadd.xlane.f32.xlu0 %v3729_v38  ;;  %v3642_v31 = vmul.f32 %v6281_v36, %v6279_v25  ;;  %v3789_v25 = vadd.s32 %v3776_v6, %v3772_v32  ;;  %v7824_v29 = vadd.s32 %v3776_v6, %v3775_v15  ;;  %vm3805_vm13 = vcmp.lt.s32.totalorder %v3787_v49, %v7800_v57 }
 0x459   : > { %v3779_v50 = vadd.s32 %v3776_v6, %v3762_v16  ;;  %vm3806_vm14 = vcmp.lt.s32.totalorder %v3788_v20, %v7800_v57 }
 0x45a   : > { %v3686_v13 = vmul.f32 %v7616_v43, %v3642_v31  ;;  %v3763_v43 = vadd.s32 24, %v8254_v24  ;;  %v3790_v31 = vadd.s32 %v3776_v6, %v3773_v63  ;;  %vm3807_vm15 = vcmp.lt.s32.totalorder %v3789_v25, %v7800_v57 }
 0x45b   : > { %vm3797_vm5 = vcmp.lt.s32.totalorder %v3779_v50, %v7800_v57 }
 0x45c   : > { %v3732_v61 = vadd.f32 %v3686_v13, %v3685_v56  ;;  %v3780_v34 = vadd.s32 %v3776_v6, %v3763_v43  ;;  %v3791_v13 = vadd.s32 %v3776_v6, %v3774_v1  ;;  %vm3808_vm0 = vcmp.lt.s32.totalorder %v3790_v31, %v7800_v57 }
 0x45e   : > { %3733 = vadd.xlane.f32.xlu1 %v3732_v61  ;;  %vm3798_vm6 = vcmp.lt.s32.totalorder %v3780_v34, %v7800_v57  ;;  %vm3809_vm1 = vcmp.lt.s32.totalorder %v3791_v13, %v7800_v57 }
 0x494   : > { %v3689_v45 = vpop.xlane.xlu0 %3688 }
 0x495   : > { %v3742_v56 = vadd.f32 %v7809_v52, %v3689_v45 }
 0x498   : > { %v3692_v0 = vpop.xlane.xlu0 %3691 }
 0x499   : > { %v3743_v61 = vadd.f32 %v7809_v52, %v3692_v0 }
 0x49c   : > { %v3695_v7 = vpop.xlane.xlu1 %3694 }
 0x49d   : > { %v3744_v51 = vadd.f32 %v7809_v52, %v3695_v7 }
 0x4a2   : > { %v7788_v46 = vpop.xlane.xlu1 %3697 }
 0x4a3   : > { %v3745_v45 = vadd.f32 %v7809_v52, %v7788_v46  ;;  %v7844_v46 = vsel %vm3796_vm4, %v3743_v61, -inf  ;;  %vm3964_vm4 = vcmask 0  }
 0x4a4   : > { %v3830_v55 = vsel %vm3828_vm3, %v7844_v46, -inf }
 0x4a5   : > { %v7864_v17 = vsel %vm3798_vm6, %v3745_v45, -inf }
 0x4a6   : > { %v3832_v8 = vsel %vm3828_vm3, %v7864_v17, -inf }
 0x4aa   : > { %v3701_v18 = vpop.xlane.xlu0 %3700 }
 0x4ab   : > { %v3746_v43 = vadd.f32 %v7809_v52, %v3701_v18  ;;  %v7848_v18 = vsel %vm3797_vm5, %v3744_v51, -inf }
 0x4ac   : > { %v3831_v27 = vsel %vm3828_vm3, %v7848_v18, -inf }
 0x4ad   : > { %v7868_v50 = vsel %vm3799_vm7, %v3746_v43, -inf }
 0x4ae   : > { %v3833_v63 = vsel %vm3828_vm3, %v7868_v50, -inf }
 0x4b0   : > { %v3704_v41 = vpop.xlane.xlu1 %3703 }
 0x4b1   : > { %v3747_v16 = vadd.f32 %v7809_v52, %v3704_v41  ;;  %v7837_v41 = vsel %vm3795_vm2, %v3742_v56, -inf  ;;  %vm3810_vm2 = vcmp.lt.s32.totalorder %v7824_v29, %v7800_v57 }
 0x4b2   : > { %v3829_v42 = vsel %vm3828_vm3, %v7837_v41, -inf }
 0x4b3   : > { %v3834_v61 = vmax.f32 %v3829_v42, %v3833_v63 }
 0x4b5   : > { %v3707_v37 = vpop.xlane.xlu0 %3706 }
 0x4b6   : > { %v3748_v0 = vadd.f32 %v7809_v52, %v3707_v37  ;;  %v7855_v37 = vsel %vm3800_vm8, %v3747_v16, -inf }
 0x4b8   : > { %v7872_v21 = vsel %vm3801_vm9, %v3748_v0, -inf }
 0x4b9   : > { %v3837_v15 = vsel %vm3828_vm3, %v7872_v21, -inf }
 0x4ba   : > { %v3838_v0 = vmax.f32 %v3831_v27, %v3837_v15 }
 0x4bb   : > { %v3710_v54 = vpop.xlane.xlu1 %3709 }
 0x4bc   : > { %v3749_v26 = vadd.f32 %v7809_v52, %v3710_v54 }
 0x4be   : > { %v7876_v40 = vsel %vm3802_vm10, %v3749_v26, -inf }
 0x4c1   : > { %v3713_v2 = vpop.xlane.xlu0 %3712 }
 0x4c2   : > { %v3750_v14 = vadd.f32 %v7809_v52, %v3713_v2  ;;  %v3835_v2 = vsel %vm3828_vm3, %v7855_v37, -inf }
 0x4c7   : > { %v3716_v44 = vpop.xlane.xlu1 %3715 }
 0x4c8   : > { %v3751_v30 = vadd.f32 %v7809_v52, %v3716_v44  ;;  %v7892_v44 = vsel %vm3803_vm11, %v3750_v14, -inf }
 0x4c9   : > { %v3841_v20 = vsel %vm3828_vm3, %v7892_v44, -inf }
 0x4ca   : > { %v7880_v32 = vsel %vm3804_vm12, %v3751_v30, -inf  ;;  %v3842_v26 = vmax.f32 %v3834_v61, %v3841_v20 }
 0x4cb   : > { %v3843_v49 = vsel %vm3828_vm3, %v7880_v32, -inf }
 0x4cd   : > { %v3719_v38 = vpop.xlane.xlu0 %3718 }
 0x4ce   : > { %v3752_v54 = vadd.f32 %v7809_v52, %v3719_v38  ;;  %v3839_v38 = vsel %vm3828_vm3, %v7876_v40, -inf }
 0x4d0   : > { %v7898_v19 = vsel %vm3805_vm13, %v3752_v54, -inf }
 0x4d1   : > { %v3845_v51 = vsel %vm3828_vm3, %v7898_v19, -inf }
 0x4d2   : > { %v3846_v14 = vmax.f32 %v3838_v0, %v3845_v51 }
 0x4d3   : > { %v3722_v36 = vpop.xlane.xlu1 %3721 }
 0x4d4   : > { %v3753_v35 = vadd.f32 %v7809_v52, %v3722_v36  ;;  %v3836_v36 = vmax.f32 %v3830_v55, %v3835_v2 }
 0x4d6   : > { %v7902_v1 = vsel %vm3806_vm14, %v3753_v35, -inf  ;;  %v3844_v25 = vmax.f32 %v3836_v36, %v3843_v49  ;;  %v7944_v49 = vld [vmem:[#allocation2] sm:$0x1] }
 0x4d7   : > { %v3847_v16 = vsel %vm3828_vm3, %v7902_v1, -inf }
 0x4d9   : > { %v3725_v7 = vpop.xlane.xlu0 %3724 }
 0x4da   : > { %v3754_v34 = vadd.f32 %v7809_v52, %v3725_v7  ;;  %v3840_v7 = vmax.f32 %v3832_v8, %v3839_v38 }
 0x4dc   : > { %v7920_v31 = vsel %vm3807_vm15, %v3754_v34, -inf  ;;  %v3848_v54 = vmax.f32 %v3840_v7, %v3847_v16 }
 0x4dd   : > { %v3849_v13 = vsel %vm3828_vm3, %v7920_v31, -inf }
 0x4df   : > { %v3728_v6 = vpop.xlane.xlu1 %3727 }
 0x4e0   : > { %v3755_v5 = vadd.f32 %v7809_v52, %v3728_v6 }
 0x4e2   : > { %v7906_v53 = vsel %vm3808_vm0, %v3755_v5, -inf }
 0x4e3   : > { %v3851_v45 = vsel %vm3828_vm3, %v7906_v53, -inf }
 0x4e4   : > { %v3852_v35 = vmax.f32 %v3844_v25, %v3851_v45 }
 0x4e5   : > { %v3731_v22 = vpop.xlane.xlu0 %3730 }
 0x4e6   : > { %v3756_v62 = vadd.f32 %v7809_v52, %v3731_v22  ;;  %v3850_v22 = vmax.f32 %v3842_v26, %v3849_v13 }
 0x4e8   : > { %v7924_v56 = vsel %vm3809_vm1, %v3756_v62, -inf  ;;  %v3857_v62 = vmax.f32 %v3850_v22, %v3852_v35 }
 0x4e9   : > { %v3853_v30 = vsel %vm3828_vm3, %v7924_v56, -inf }
 0x4eb   : > { %v3734_v43 = vpop.xlane.xlu1 %3733 }
 0x4ec   : > { %v3757_v6 = vadd.f32 %v7809_v52, %v3734_v43  ;;  %v3854_v52 = vmax.f32 %v3846_v14, %v3853_v30 }
 0x4ee   : > { %v7940_v5 = vsel %vm3810_vm2, %v3757_v6, -inf }
 0x4ef   : > { %v3855_v42 = vsel %vm3828_vm3, %v7940_v5, -inf }
 0x4f0   : > { %v3856_v34 = vmax.f32 %v3848_v54, %v3855_v42 }
 0x4f2   : > { %v3858_v55 = vmax.f32 %v3854_v52, %v3856_v34 }
 0x4f4   : > { %v3859_v27 = vmax.f32 %v3857_v62, %v3858_v55 }
 0x4f6   : > { %v3860_v2 = vrot.slane %v3859_v27, 4 }
 0x4f8   : > { %v3861_v63 = vmax.f32 %v3859_v27, %v3860_v2 }
 0x4fa   : > { %v3862_v8 = vrot.slane %v3861_v63, 2 }
 0x4fc   : > { %v3863_v15 = vmax.f32 %v3861_v63, %v3862_v8 }
 0x4fe   : > { %v3864_v38 = vrot.slane %v3863_v15, 1 }
 0x500   : > { %v3865_v36 = vmax.f32 %v3863_v15, %v3864_v38 }
 0x502   : > { %v7947_v57 = vmax.f32 %v7944_v49, %v3865_v36 }
 0x504   : > { %v7951_v29 = vrot.slane %v7947_v57, %v7121_v12  ;;  %4240 = vst.msk [vmem:[#allocation2] sm:$0x1] %vm3964_vm4, %v7947_v57 }
 0x506   : > { %v3876_v20 = vsub.f32 %v7837_v41, %v7951_v29  ;;  %v3877_v61 = vsub.f32 %v7844_v46, %v7951_v29  ;;  %v3878_v51 = vsub.f32 %v7848_v18, %v7951_v29  ;;  %v3879_v16 = vsub.f32 %v7864_v17, %v7951_v29 }
 0x507   : > { %v3880_v45 = vsub.f32 %v7868_v50, %v7951_v29  ;;  %v3881_v7 = vsub.f32 %v7855_v37, %v7951_v29  ;;  %v3882_v41 = vsub.f32 %v7872_v21, %v7951_v29  ;;  %v3885_v46 = vsub.f32 %v7880_v32, %v7951_v29 }
 0x508   : > { %v3892_v43 = vmul.f32 1.442695, %v3876_v20  ;;  %v3894_v0 = vmul.f32 1.442695, %v3877_v61  ;;  %v3896_v25 = vmul.f32 1.442695, %v3878_v51  ;;  %v3883_v17 = vsub.f32 %v7876_v40, %v7951_v29 }
 0x509   : > { %v3898_v6 = vmul.f32 1.442695, %v3879_v16  ;;  %v3900_v18 = vmul.f32 1.442695, %v3880_v45  ;;  %v3902_v50 = vmul.f32 1.442695, %v3881_v7  ;;  %v3884_v37 = vsub.f32 %v7892_v44, %v7951_v29 }
 0x50a   : > { %6282 = vpow2.f32 %v3892_v43  ;;  %v3904_v26 = vmul.f32 1.442695, %v3882_v41  ;;  %v3887_v13 = vsub.f32 %v7902_v1, %v7951_v29  ;;  %v3910_v21 = vmul.f32 1.442695, %v3885_v46 }
 0x50b   : > { %6284 = vpow2.f32 %v3894_v0  ;;  %v3906_v30 = vmul.f32 1.442695, %v3883_v17  ;;  %v3886_v32 = vsub.f32 %v7898_v19, %v7951_v29  ;;  %v3908_v14 = vmul.f32 1.442695, %v3884_v37 }
 0x50c   : > { %6286 = vpow2.f32 %v3896_v25  ;;  %v3889_v40 = vsub.f32 %v7906_v53, %v7951_v29  ;;  %v3914_v54 = vmul.f32 1.442695, %v3887_v13  ;;  %v3888_v22 = vsub.f32 %v7920_v31, %v7951_v29 }
 0x50d   : > { %6288 = vpow2.f32 %v3898_v6  ;;  %v3912_v52 = vmul.f32 1.442695, %v3886_v32  ;;  %v3891_v53 = vsub.f32 %v7940_v5, %v7951_v29  ;;  %v3890_v38 = vsub.f32 %v7924_v56, %v7951_v29 }
 0x50e   : > { %6290 = vpow2.f32 %v3900_v18  ;;  %v3918_v62 = vmul.f32 1.442695, %v3889_v40  ;;  %v3916_v8 = vmul.f32 1.442695, %v3888_v22  ;;  %v3867_v40 = vsub.f32 %v7944_v49, %v7947_v57 }
 0x50f   : > { %6292 = vpow2.f32 %v3902_v50  ;;  %v3922_v36 = vmul.f32 1.442695, %v3891_v53  ;;  %v3920_v0 = vmul.f32 1.442695, %v3890_v38 }
 0x510   : > { %6294 = vpow2.f32 %v3904_v26  ;;  %v3868_v22 = vmul.f32 1.442695, %v3867_v40  ;;  %v8261_v40 = vld [vmem:[#allocation38_spill] sm:$0xff] }
 0x511   : > { %6296 = vpow2.f32 %v3910_v21 }
 0x512   : > { %6298 = vpow2.f32 %v3906_v30 }
 0x513   : > { %6300 = vpow2.f32 %v3908_v14 }
 0x514   : > { %v6283_v35 = vpop.eup %6282  ;;  %6302 = vpow2.f32 %v3914_v54 }
 0x515   : > { %v6285_v44 = vpop.eup %6284  ;;  %v3926_v42 = vsel %vm3828_vm3, %v6283_v35, 0.0  ;;  %3979 = vperm.xlu0 %6088, %v6283_v35   ;;  %6304 = vpow2.f32 %v3912_v52 }
 0x516   : > { %v6287_v1 = vpop.eup %6286  ;;  %v3927_v19 = vsel %vm3828_vm3, %v6285_v44, 0.0  ;;  %3984 = vperm.xlu1 %6089, %v6285_v44   ;;  %6306 = vpow2.f32 %v3918_v62 }
 0x517   : > { %v6289_v34 = vpop.eup %6288  ;;  %v3928_v55 = vadd.f32 %v3927_v19, %v3926_v42  ;;  %v3929_v27 = vsel %vm3828_vm3, %v6287_v1, 0.0  ;;  %6308 = vpow2.f32 %v3916_v8  ;;  %v3924_v8 = vld [vmem:[#allocation3] sm:$0x1] }
 0x518   : > { %v6291_v2 = vpop.eup %6290  ;;  %v3931_v31 = vsel %vm3828_vm3, %v6289_v34, 0.0  ;;  %6310 = vpow2.f32 %v3922_v36 }
 0x519   : > { %v3930_v63 = vadd.f32 %v3929_v27, %v3928_v55  ;;  %v6293_v15 = vpop.eup %6292  ;;  %v3933_v61 = vsel %vm3828_vm3, %v6291_v2, 0.0  ;;  %6312 = vpow2.f32 %v3920_v0 }
 0x51a   : > { %3989 = vperm.xlu1 %6089, %v6287_v1   ;;  %v6295_v5 = vpop.eup %6294  ;;  %v3935_v45 = vsel %vm3828_vm3, %v6293_v15, 0.0  ;;  %6314 = vpow2.f32 %v3868_v22 }
 0x51b   : > { %v3932_v20 = vadd.f32 %v3931_v31, %v3930_v63  ;;  %v6297_v51 = vpop.eup %6296  ;;  %v3937_v56 = vsel %vm3828_vm3, %v6295_v5, 0.0 }
 0x51c   : > { %4024 = vperm.xlu0 %6088, %v6297_v51   ;;  %v6299_v43 = vpop.eup %6298  ;;  %v3943_v26 = vsel %vm3828_vm3, %v6297_v51, 0.0 }
 0x51d   : > { %v3934_v16 = vadd.f32 %v3933_v61, %v3932_v20  ;;  %v6301_v25 = vpop.eup %6300  ;;  %v3939_v41 = vsel %vm3828_vm3, %v6299_v43, 0.0 }
 0x51e   : > { %3994 = vperm.xlu1 %6089, %v6289_v34   ;;  %v6303_v29 = vpop.eup %6302  ;;  %v3941_v17 = vsel %vm3828_vm3, %v6301_v25, 0.0 }
 0x51f   : > { %v3936_v7 = vadd.f32 %v3935_v45, %v3934_v16  ;;  %v6305_v18 = vpop.eup %6304  ;;  %v3947_v54 = vsel %vm3828_vm3, %v6303_v29, 0.0  ;;  %v8255_v16 = vld [vmem:[#allocation32_spill] sm:$0xff] }
 0x520   : > { %4034 = vperm.xlu0 %6088, %v6303_v29   ;;  %v6307_v50 = vpop.eup %6306  ;;  %v3945_v30 = vsel %vm3828_vm3, %v6305_v18, 0.0 }
 0x521   : > { %v3938_v6 = vadd.f32 %v3937_v56, %v3936_v7  ;;  %v6309_v21 = vpop.eup %6308  ;;  %v3951_v52 = vsel %vm3828_vm3, %v6307_v50, 0.0  ;;  %v8257_v56 = vld [vmem:[#allocation34_spill] sm:$0xff] }
 0x522   : > { %3999 = vperm.xlu1 %6089, %v6291_v2   ;;  %v6311_v32 = vpop.eup %6310  ;;  %v3949_v44 = vsel %vm3828_vm3, %v6309_v21, 0.0 }
 0x523   : > { %v3940_v46 = vadd.f32 %v3939_v41, %v3938_v6  ;;  %v6313_v42 = vpop.eup %6312  ;;  %v3955_v49 = vsel %vm3828_vm3, %v6311_v32, 0.0  ;;  %v8258_v6 = vld [vmem:[#allocation33_spill] sm:$0xff] }
 0x524   : > { %4044 = vperm.xlu0 %6088, %v6307_v50   ;;  %v3953_v34 = vsel %vm3828_vm3, %v6313_v42, 0.0  ;;  %v6315_v63 = vpop.eup %6314 }
 0x525   : > { %v3942_v37 = vadd.f32 %v3941_v17, %v3940_v46  ;;  %v8259_v17 = vld [vmem:[#allocation36_spill] sm:$0xff] }
 0x526   : > { %4004 = vperm.xlu1 %6089, %v6293_v15   ;;  %v3925_v15 = vmul.f32 %v6315_v63, %v3924_v8 }
 0x527   : > { %v3944_v13 = vadd.f32 %v3943_v26, %v3942_v37  ;;  %v8260_v37 = vld [vmem:[#allocation35_spill] sm:$0xff] }
 0x528   : > { %4054 = vperm.xlu0 %6088, %v6311_v32  }
 0x529   : > { %v3946_v14 = vadd.f32 %v3945_v30, %v3944_v13 }
 0x52a   : > { %4009 = vperm.xlu1 %6089, %v6295_v5  }
 0x52b   : > { %v3948_v35 = vadd.f32 %v3947_v54, %v3946_v14 }
 0x52d   : > { %v3950_v1 = vadd.f32 %v3949_v44, %v3948_v35  ;;  %v8262_v35 = vld [vmem:[#allocation37_spill] sm:$0xff] }
 0x52e   : > { %4014 = vperm.xlu1 %6089, %v6299_v43   ;;  %v8256_v43 = vld [vmem:[#allocation31_spill] sm:$0xff] }
 0x52f   : > { %v3952_v19 = vadd.f32 %v3951_v52, %v3950_v1 }
 0x531   : > { %v3954_v53 = vadd.f32 %v3953_v34, %v3952_v19  ;;  %v8263_v19 = vld [vmem:[#allocation40_spill] sm:$0xff]  ;;  %v8264_v34 = vld [vmem:[#allocation39_spill] sm:$0xff] }
 0x532   : > { %4019 = vperm.xlu1 %6089, %v6301_v25  }
 0x533   : > { %v3956_v57 = vadd.f32 %v3955_v49, %v3954_v53 }
 0x535   : > { %v3957_v62 = vrot.slane %v3956_v57, 4 }
 0x536   : > { %4029 = vperm.xlu1 %6089, %v6305_v18  }
 0x537   : > { %v3958_v55 = vadd.f32 %v3957_v62, %v3956_v57 }
 0x539   : > { %v3959_v27 = vrot.slane %v3958_v55, 2 }
 0x53a   : > { %4039 = vperm.xlu1 %6089, %v6309_v21  }
 0x53b   : > { %v3960_v2 = vadd.f32 %v3959_v27, %v3958_v55 }
 0x53d   : > { %v3961_v31 = vrot.slane %v3960_v2, 1 }
 0x53e   : > { %4049 = vperm.xlu1 %6089, %v6313_v42  }
 0x53f   : > { %v3962_v38 = vadd.f32 %v3961_v31, %v3960_v2 }
 0x541   : > { %v3963_v36 = vadd.f32 %v3962_v38, %v3925_v15 }
 0x542   : > { %3969 = vperm.xlu1 %6089, %v6315_v63  }
 0x543   : > { %3965 = vst.msk [vmem:[#allocation3] sm:$0x1] %vm3964_vm4, %v3963_v36 }
 0x594   : > { %v3980_v61 = vpop.permute.xlu0 %3979 }
 0x595   : > { %v3985_v20 = vpop.permute.xlu1 %3984  ;;  %v4057_v45 = vmul.f32 %v3980_v61, %v8255_v16  ;;  %v4058_v0 = vmul.f32 %v3980_v61, %v8256_v43  ;;  %v4059_v7 = vmul.f32 %v3980_v61, %v7383_v11  ;;  %v4060_v25 = vmul.f32 %v3980_v61, %v7374_v4  ;;  %v8268_v16 = vld [vmem:[#allocation43_spill] sm:$0xff] }
 0x596   : > { %v4061_v29 = vmul.f32 %v3985_v20, %v8257_v56  ;;  %v4062_v41 = vmul.f32 %v3985_v20, %v8258_v6  ;;  %v4063_v46 = vmul.f32 %v3985_v20, %v7395_v10  ;;  %v4064_v18 = vmul.f32 %v3985_v20, %v7388_v47 }
 0x598   : > { %v4121_v11 = vadd.f32 %v4061_v29, %v4057_v45  ;;  %v4142_v32 = vadd.f32 %v4062_v41, %v4058_v0  ;;  %v4163_v4 = vadd.f32 %v4063_v46, %v4059_v7  ;;  %v4184_v14 = vadd.f32 %v4064_v18, %v4060_v25  ;;  %v8270_v41 = vld [vmem:[#allocation45_spill] sm:$0xff]  ;;  %v8271_v18 = vld [vmem:[#allocation66_spill] sm:$0xff] }
 0x599   : > { %v3990_v5 = vpop.permute.xlu1 %3989 }
 0x59a   : > { %v4065_v50 = vmul.f32 %v3990_v5, %v8259_v17  ;;  %v4066_v26 = vmul.f32 %v3990_v5, %v8260_v37  ;;  %v4067_v13 = vmul.f32 %v3990_v5, %v7407_v3  ;;  %v4068_v21 = vmul.f32 %v3990_v5, %v7400_v39 }
 0x59c   : > { %v4122_v42 = vadd.f32 %v4121_v11, %v4065_v50  ;;  %v4143_v1 = vadd.f32 %v4142_v32, %v4066_v26  ;;  %v4164_v22 = vadd.f32 %v4163_v4, %v4067_v13  ;;  %v4185_v52 = vadd.f32 %v4184_v14, %v4068_v21  ;;  %v8272_v50 = vld [vmem:[#allocation65_spill] sm:$0xff] }
 0x59d   : > { %v3995_v51 = vpop.permute.xlu1 %3994 }
 0x59e   : > { %v4069_v54 = vmul.f32 %v3995_v51, %v8261_v40  ;;  %v4070_v44 = vmul.f32 %v3995_v51, %v8262_v35  ;;  %v4071_v10 = vmul.f32 %v3995_v51, %v7419_v33  ;;  %v4072_v47 = vmul.f32 %v3995_v51, %v7412_v59  ;;  %v8265_v33 = vld [vmem:[#allocation42_spill] sm:$0xff]  ;;  %v8266_v59 = vld [vmem:[#allocation41_spill] sm:$0xff]  ;;  %v8267_v51 = vld [vmem:[#allocation44_spill] sm:$0xff] }
 0x59f   : > { %v8273_v40 = vld [vmem:[#allocation48_spill] sm:$0xff]  ;;  %v8274_v35 = vld [vmem:[#allocation47_spill] sm:$0xff] }
 0x5a0   : > { %v4123_v62 = vadd.f32 %v4122_v42, %v4069_v54  ;;  %v4144_v55 = vadd.f32 %v4143_v1, %v4070_v44  ;;  %v4165_v27 = vadd.f32 %v4164_v22, %v4071_v10  ;;  %v4186_v2 = vadd.f32 %v4185_v52, %v4072_v47  ;;  %v8275_v10 = vld [vmem:[#allocation68_spill] sm:$0xff]  ;;  %v8276_v42 = vld [vmem:[#allocation67_spill] sm:$0xff] }
 0x5a1   : > { %v4000_v30 = vpop.permute.xlu1 %3999 }
 0x5a2   : > { %v4073_v39 = vmul.f32 %v4000_v30, %v8263_v19  ;;  %v4074_v53 = vmul.f32 %v4000_v30, %v8264_v34  ;;  %v4075_v49 = vmul.f32 %v4000_v30, %v7431_v58  ;;  %v4076_v57 = vmul.f32 %v4000_v30, %v7424_v23  ;;  %v4025_v58 = vpop.permute.xlu0 %4024 }
 0x5a4   : > { %v4124_v36 = vadd.f32 %v4123_v62, %v4073_v39  ;;  %v4145_v20 = vadd.f32 %v4144_v55, %v4074_v53  ;;  %v4166_v5 = vadd.f32 %v4165_v27, %v4075_v49  ;;  %v4187_v61 = vadd.f32 %v4186_v2, %v4076_v57  ;;  %v8277_v39 = vld [vmem:[#allocation50_spill] sm:$0xff]  ;;  %v8278_v53 = vld [vmem:[#allocation49_spill] sm:$0xff] }
 0x5a5   : > { %v4005_v3 = vpop.permute.xlu1 %4004  ;;  %v4093_v34 = vmul.f32 %v4025_v58, %v8277_v39  ;;  %v4094_v49 = vmul.f32 %v4025_v58, %v8278_v53  ;;  %v8279_v57 = vld [vmem:[#allocation70_spill] sm:$0xff]  ;;  %v8280_v55 = vld [vmem:[#allocation69_spill] sm:$0xff] }
 0x5a6   : > { %v4077_v63 = vmul.f32 %v4005_v3, %v8265_v33  ;;  %v4078_v8 = vmul.f32 %v4005_v3, %v8266_v59  ;;  %v4079_v31 = vmul.f32 %v4005_v3, %v7443_v28  ;;  %v4080_v15 = vmul.f32 %v4005_v3, %v7436_v48  ;;  %v8269_v48 = vld [vmem:[#allocation46_spill] sm:$0xff]  ;;  %v8281_v33 = vld [vmem:[#allocation52_spill] sm:$0xff]  ;;  %v8282_v59 = vld [vmem:[#allocation51_spill] sm:$0xff] }
 0x5a7   : > { %v4095_v62 = vmul.f32 %v4025_v58, %v8279_v57  ;;  %v4096_v27 = vmul.f32 %v4025_v58, %v8280_v55 }
 0x5a8   : > { %v4125_v7 = vadd.f32 %v4124_v36, %v4077_v63  ;;  %v4146_v25 = vadd.f32 %v4145_v20, %v4078_v8  ;;  %v4167_v56 = vadd.f32 %v4166_v5, %v4079_v31  ;;  %v4188_v28 = vadd.f32 %v4187_v61, %v4080_v15  ;;  %v8283_v31 = vld [vmem:[#allocation72_spill] sm:$0xff] }
 0x5a9   : > { %v4010_v38 = vpop.permute.xlu1 %4009 }
 0x5aa   : > { %v4081_v23 = vmul.f32 %v4010_v38, %v8267_v51  ;;  %v4082_v45 = vmul.f32 %v4010_v38, %v8268_v16  ;;  %v4083_v43 = vmul.f32 %v4010_v38, %v7455_v60  ;;  %v4084_v0 = vmul.f32 %v4010_v38, %v7448_v9  ;;  %v4035_v60 = vpop.permute.xlu0 %4034  ;;  %v8284_v38 = vld [vmem:[#allocation71_spill] sm:$0xff]  ;;  %v8285_v16 = vld [vmem:[#allocation54_spill] sm:$0xff] }
 0x5ac   : > { %v4126_v26 = vadd.f32 %v4125_v7, %v4081_v23  ;;  %v4147_v13 = vadd.f32 %v4146_v25, %v4082_v45  ;;  %v4168_v21 = vadd.f32 %v4167_v56, %v4083_v43  ;;  %v4189_v30 = vadd.f32 %v4188_v28, %v4084_v0  ;;  %v8286_v43 = vld [vmem:[#allocation53_spill] sm:$0xff]  ;;  %v8287_v7 = vld [vmem:[#allocation74_spill] sm:$0xff] }
 0x5ad   : > { %v4015_v29 = vpop.permute.xlu1 %4014  ;;  %v4101_v45 = vmul.f32 %v4035_v60, %v8285_v16  ;;  %v4102_v0 = vmul.f32 %v4035_v60, %v8286_v43  ;;  %v4103_v58 = vmul.f32 %v4035_v60, %v8287_v7  ;;  %v8288_v25 = vld [vmem:[#allocation73_spill] sm:$0xff] }
 0x5ae   : > { %v4085_v6 = vmul.f32 %v4015_v29, %v8269_v48  ;;  %v4086_v46 = vmul.f32 %v4015_v29, %v8270_v41  ;;  %v4087_v17 = vmul.f32 %v4015_v29, %v8271_v18  ;;  %v4088_v37 = vmul.f32 %v4015_v29, %v8272_v50  ;;  %v4045_v20 = vpop.permute.xlu0 %4044 }
 0x5af   : > { %v4104_v56 = vmul.f32 %v4035_v60, %v8288_v25  ;;  %v8294_v60 = vld [vmem:[#allocation59_spill] sm:$0xff] }
 0x5b0   : > { %v4127_v11 = vadd.f32 %v4126_v26, %v4085_v6  ;;  %v4148_v9 = vadd.f32 %v4147_v13, %v4086_v46  ;;  %v4169_v32 = vadd.f32 %v4168_v21, %v4087_v17  ;;  %v4190_v4 = vadd.f32 %v4189_v30, %v4088_v37  ;;  %v8289_v46 = vld [vmem:[#allocation56_spill] sm:$0xff]  ;;  %v8290_v17 = vld [vmem:[#allocation55_spill] sm:$0xff] }
 0x5b1   : > { %v4020_v14 = vpop.permute.xlu1 %4019  ;;  %v8291_v37 = vld [vmem:[#allocation76_spill] sm:$0xff]  ;;  %v8292_v13 = vld [vmem:[#allocation75_spill] sm:$0xff] }
 0x5b2   : > { %v4089_v54 = vmul.f32 %v4020_v14, %v8273_v40  ;;  %v4090_v44 = vmul.f32 %v4020_v14, %v8274_v35  ;;  %v4091_v47 = vmul.f32 %v4020_v14, %v8275_v10  ;;  %v4092_v1 = vmul.f32 %v4020_v14, %v8276_v42 }
 0x5b3   : > { %v4110_v40 = vmul.f32 %v4045_v20, %v8294_v60 }
 0x5b4   : > { %v4128_v22 = vadd.f32 %v4127_v11, %v4089_v54  ;;  %v4149_v52 = vadd.f32 %v4148_v9, %v4090_v44  ;;  %v4170_v3 = vadd.f32 %v4169_v32, %v4091_v47  ;;  %v4191_v19 = vadd.f32 %v4190_v4, %v4092_v1  ;;  %v8293_v4 = vld [vmem:[#allocation60_spill] sm:$0xff]  ;;  %v8295_v54 = vld [vmem:[#allocation78_spill] sm:$0xff]  ;;  %v8296_v44 = vld [vmem:[#allocation77_spill] sm:$0xff]  ;;  %v4055_v47 = vpop.permute.xlu0 %4054 }
 0x5b5   : > { %v4030_v2 = vpop.permute.xlu1 %4029  ;;  %v4109_v14 = vmul.f32 %v4045_v20, %v8293_v4  ;;  %v4111_v35 = vmul.f32 %v4045_v20, %v8295_v54  ;;  %v4112_v10 = vmul.f32 %v4045_v20, %v8296_v44  ;;  %v8304_v20 = vld [vmem:[#allocation81_spill] sm:$0xff] }
 0x5b6   : > { %v4097_v63 = vmul.f32 %v4030_v2, %v8281_v33  ;;  %v4098_v8 = vmul.f32 %v4030_v2, %v8282_v59  ;;  %v4099_v15 = vmul.f32 %v4030_v2, %v8283_v31  ;;  %v4100_v36 = vmul.f32 %v4030_v2, %v8284_v38  ;;  %v8301_v59 = vld [vmem:[#allocation64_spill] sm:$0xff]  ;;  %v8302_v31 = vld [vmem:[#allocation63_spill] sm:$0xff]  ;;  %v8303_v38 = vld [vmem:[#allocation82_spill] sm:$0xff] }
 0x5b7   : > { %v4129_v5 = vadd.f32 %v4128_v22, %v4093_v34  ;;  %v4150_v61 = vadd.f32 %v4149_v52, %v4094_v49  ;;  %v4171_v51 = vadd.f32 %v4170_v3, %v4095_v62  ;;  %v4192_v23 = vadd.f32 %v4191_v19, %v4096_v27  ;;  %v8297_v19 = vld [vmem:[#allocation62_spill] sm:$0xff]  ;;  %v8298_v34 = vld [vmem:[#allocation61_spill] sm:$0xff]  ;;  %v8299_v49 = vld [vmem:[#allocation80_spill] sm:$0xff] }
 0x5b8   : > { %v8300_v62 = vld [vmem:[#allocation79_spill] sm:$0xff] }
 0x5b9   : > { %v4130_v28 = vadd.f32 %v4129_v5, %v4097_v63  ;;  %v4151_v29 = vadd.f32 %v4150_v61, %v4098_v8  ;;  %v4172_v48 = vadd.f32 %v4171_v51, %v4099_v15  ;;  %v4193_v6 = vadd.f32 %v4192_v23, %v4100_v36  ;;  %v4040_v41 = vpop.permute.xlu1 %4039 }
 0x5ba   : > { %v4105_v18 = vmul.f32 %v4040_v41, %v8289_v46  ;;  %v4106_v50 = vmul.f32 %v4040_v41, %v8290_v17  ;;  %v4107_v26 = vmul.f32 %v4040_v41, %v8291_v37  ;;  %v4108_v21 = vmul.f32 %v4040_v41, %v8292_v13 }
 0x5bb   : > { %v4131_v30 = vadd.f32 %v4130_v28, %v4101_v45  ;;  %v4152_v11 = vadd.f32 %v4151_v29, %v4102_v0  ;;  %v4173_v9 = vadd.f32 %v4172_v48, %v4103_v58  ;;  %v4194_v32 = vadd.f32 %v4193_v6, %v4104_v56 }
 0x5bc   : > { %v4117_v8 = vmul.f32 %v4055_v47, %v8301_v59  ;;  %v4118_v15 = vmul.f32 %v4055_v47, %v8302_v31  ;;  %v4119_v36 = vmul.f32 %v4055_v47, %v8303_v38  ;;  %v4120_v5 = vmul.f32 %v4055_v47, %v8304_v20  ;;  %v4258_v59 = vld [vmem:[#allocation19] sm:$0xff] (!%p4667_p10)  ;;  %v4259_v31 = vld [vmem:[#allocation19 + $0x8] sm:$0xff] (!%p4667_p10) }
 0x5bd   : > { %v4132_v42 = vadd.f32 %v4131_v30, %v4105_v18  ;;  %v4153_v1 = vadd.f32 %v4152_v11, %v4106_v50  ;;  %v4174_v22 = vadd.f32 %v4173_v9, %v4107_v26  ;;  %v4195_v52 = vadd.f32 %v4194_v32, %v4108_v21  ;;  %v4050_v3 = vpop.permute.xlu1 %4049  ;;  %v4291_v38 = vld [vmem:[#allocation19 + $0x108] sm:$0xff] (!%p4667_p10) }
 0x5be   : > { %v4113_v39 = vmul.f32 %v4050_v3, %v8297_v19  ;;  %v4114_v53 = vmul.f32 %v4050_v3, %v8298_v34  ;;  %v4115_v57 = vmul.f32 %v4050_v3, %v8299_v49  ;;  %v4116_v55 = vmul.f32 %v4050_v3, %v8300_v62  ;;  %v3966_v19 = vld [vmem:[#allocation4] sm:$0xf]  ;;  %v4274_v62 = vld [vmem:[#allocation19 + $0x80] sm:$0xff] (!%p4667_p10) }
 0x5bf   : > { %v4133_v27 = vadd.f32 %v4132_v42, %v4109_v14  ;;  %v4154_v2 = vadd.f32 %v4153_v1, %v4110_v40  ;;  %v4175_v33 = vadd.f32 %v4174_v22, %v4111_v35  ;;  %v4196_v63 = vadd.f32 %v4195_v52, %v4112_v10 }
 0x5c0   : > { %v6644_v29 = vmov 1966171168   ;;  %v8305_v49 = vlaneseq }
 0x5c1   : > { %v4134_v61 = vadd.f32 %v4133_v27, %v4113_v39  ;;  %v4155_v51 = vadd.f32 %v4154_v2, %v4114_v53  ;;  %v4176_v23 = vadd.f32 %v4175_v33, %v4115_v57  ;;  %v4197_v16 = vadd.f32 %v4196_v63, %v4116_v55  ;;  %v3970_v47 = vpop.permute.xlu1 %3969  ;;  %v4275_v55 = vld [vmem:[#allocation19 + $0x88] sm:$0xff] (!%p4667_p10)  ;;  %v4306_v33 = vld [vmem:[#allocation19 + $0x180] sm:$0xff] (!%p4667_p10) }
 0x5c2   : > { %v4212_v48 = vunpack.c.l.s4 %v6644_v29  ;;  %v3975_v3 = vrot.slane %v3970_v47, %v7121_v12  ;;  %vm4237_vm3 = vcmp.lt.s32.totalorder %v8305_v49, 512  ;;  %v6645_v27 = vmov (!%p4667_p10), 0   ;;  %v4307_v63 = vld [vmem:[#allocation19 + $0x188] sm:$0xff] (!%p4667_p10)  ;;  %v4285_v49 = vld [vmem:[#allocation19 + $0xd8] sm:$0xff] (!%p4667_p10) }
 0x5c3   : > { %v4135_v45 = vadd.f32 %v4134_v61, %v4117_v8  ;;  %v4156_v43 = vadd.f32 %v4155_v51, %v4118_v15  ;;  %v4177_v0 = vadd.f32 %v4176_v23, %v4119_v36  ;;  %v4198_v7 = vadd.f32 %v4197_v16, %v4120_v5  ;;  %6316 = vset.pattern.permute.xlu0 (!%p4667_p10), %v6645_v27  ;;  %v4290_v15 = vld [vmem:[#allocation19 + $0x100] sm:$0xff] (!%p4667_p10)  ;;  %v4276_v5 = vld [vmem:[#allocation19 + $0x90] sm:$0xff] (!%p4667_p10)  ;;  %v4277_v61 = vld [vmem:[#allocation19 + $0x98] sm:$0xff] (!%p4667_p10) }
 0x5c4   : > { %v4213_v13 = vunpack.c.0.s8 %v4212_v48  ;;  %v3976_v53 = vmul.f32 %v3975_v3, %v3966_v19  ;;  %v5512_v2 = vpack.c.bf16 (!%p4667_p10), %v4275_v55, %v4274_v62  ;;  %v5544_v8 = vpack.c.bf16 (!%p4667_p10), %v4307_v63, %v4306_v33  ;;  %v4308_v51 = vld [vmem:[#allocation19 + $0x190] sm:$0xff] (!%p4667_p10)  ;;  %v4309_v16 = vld [vmem:[#allocation19 + $0x198] sm:$0xff] (!%p4667_p10)  ;;  %v4279_v29 = vld [vmem:[#allocation19 + $0xa8] sm:$0xff] (!%p4667_p10) }
 0x5c5   : > { %v4136_v58 = vrot.slane %v4135_v45, 4  ;;  %v4157_v25 = vrot.slane %v4156_v43, 4  ;;  %v4178_v56 = vrot.slane %v4177_v0, 4  ;;  %v4199_v28 = vrot.slane %v4198_v7, 4  ;;  %v4310_v48 = vld [vmem:[#allocation19 + $0x1a0] sm:$0xff] (!%p4667_p10)  ;;  %v4315_v47 = vld [vmem:[#allocation19 + $0x1c8] sm:$0xff] (!%p4667_p10) }
 0x5c6   : > { %v4216_v40 = vsub.s32 %v4213_v13, %v8254_v24  ;;  %v4246_v24 = vld [vmem:[#allocation3] sm:$0x1] (!%p4667_p10)  ;;  %5513 = vmatprep.subr.bf16.mxu0 (!%p4667_p10), %v5512_v2  ;;  %v5514_v36 = vpack.c.bf16 (!%p4667_p10), %v4259_v31, %v4258_v59  ;;  %v5546_v20 = vpack.c.bf16 (!%p4667_p10), %v4291_v38, %v4290_v15  ;;  %5545 = vmatprep.subr.bf16.mxu1 (!%p4667_p10), %v5544_v8  ;;  %v4281_v13 = vld [vmem:[#allocation19 + $0xb8] sm:$0xff] (!%p4667_p10)  ;;  %v4286_v31 = vld [vmem:[#allocation19 + $0xe0] sm:$0xff] (!%p4667_p10) }
 0x5c7   : > { %v4137_v6 = vadd.f32 %v4136_v58, %v4135_v45  ;;  %v4158_v41 = vadd.f32 %v4157_v25, %v4156_v43  ;;  %v4179_v46 = vadd.f32 %v4178_v56, %v4177_v0  ;;  %v4200_v18 = vadd.f32 %v4199_v28, %v4198_v7  ;;  %4249 = vperm.xlu0 (!%p4667_p10), %6316, %v4246_v24   ;;  %v4260_v45 = vld [vmem:[#allocation19 + $0x10] sm:$0xff] (!%p4667_p10)  ;;  %v4261_v43 = vld [vmem:[#allocation19 + $0x18] sm:$0xff] (!%p4667_p10)  ;;  %v4278_v56 = vld [vmem:[#allocation19 + $0xa0] sm:$0xff] (!%p4667_p10) }
 0x5c8   : > { %v5516_v23 = vpack.c.bf16 (!%p4667_p10), %v4277_v61, %v4276_v5  ;;  %5515 = vmatpush3.bf16.msra.mxu0 (!%p4667_p10), %v5514_v36  ;;  %5547 = vmatpush3.bf16.msra.mxu1 (!%p4667_p10), %v5546_v20  ;;  %v5548_v0 = vpack.c.bf16 (!%p4667_p10), %v4309_v16, %v4308_v51  ;;  %v5518_v7 = vpack.c.bf16 (!%p4667_p10), %v4261_v43, %v4260_v45  ;;  %v4292_v58 = vld [vmem:[#allocation19 + $0x110] sm:$0xff] (!%p4667_p10)  ;;  %v4293_v25 = vld [vmem:[#allocation19 + $0x118] sm:$0xff] (!%p4667_p10)  ;;  %v4287_v15 = vld [vmem:[#allocation19 + $0xe8] sm:$0xff] (!%p4667_p10) }
 0x5c9   : > { %v4138_v17 = vrot.slane %v4137_v6, 2  ;;  %v4159_v50 = vrot.slane %v4158_v41, 2  ;;  %v4180_v37 = vrot.slane %v4179_v46, 2  ;;  %v4201_v26 = vrot.slane %v4200_v18, 2  ;;  %v4317_v24 = vld [vmem:[#allocation19 + $0x1d8] sm:$0xff] (!%p4667_p10)  ;;  %v4268_v27 = vld [vmem:[#allocation19 + $0x50] sm:$0xff] (!%p4667_p10) }
 0x5ca   : > { %5517 = vmatprep.subr.bf16.mxu0 (!%p4667_p10), %v5516_v23  ;;  %v5550_v28 = vpack.c.bf16 (!%p4667_p10), %v4293_v25, %v4292_v58  ;;  %5549 = vmatprep.subr.bf16.mxu1 (!%p4667_p10), %v5548_v0  ;;  %v4269_v2 = vld [vmem:[#allocation19 + $0x58] sm:$0xff] (!%p4667_p10)  ;;  %v4300_v59 = vld [vmem:[#allocation19 + $0x150] sm:$0xff] (!%p4667_p10)  ;;  %v4318_v38 = vld [vmem:[#allocation19 + $0x1e0] sm:$0xff] (!%p4667_p10)  ;;  %v5536_v23 = vpack.c.bf16 (!%p4667_p10), %v4287_v15, %v4286_v31 }
 0x5cb   : > { %v4139_v21 = vadd.f32 %v4138_v17, %v4137_v6  ;;  %v4160_v30 = vadd.f32 %v4159_v50, %v4158_v41  ;;  %v4181_v11 = vadd.f32 %v4180_v37, %v4179_v46  ;;  %v4202_v9 = vadd.f32 %v4201_v26, %v4200_v18  ;;  %v4311_v6 = vld [vmem:[#allocation19 + $0x1a8] sm:$0xff] (!%p4667_p10)  ;;  %v4262_v18 = vld [vmem:[#allocation19 + $0x20] sm:$0xff] (!%p4667_p10)  ;;  %v4280_v26 = vld [vmem:[#allocation19 + $0xb0] sm:$0xff] (!%p4667_p10) }
 0x5cc   : > { %v5520_v41 = vpack.c.bf16 (!%p4667_p10), %v4279_v29, %v4278_v56  ;;  %v5552_v46 = vpack.c.bf16 (!%p4667_p10), %v4311_v6, %v4310_v48  ;;  %v4263_v17 = vld [vmem:[#allocation19 + $0x28] sm:$0xff] (!%p4667_p10)  ;;  %v4294_v50 = vld [vmem:[#allocation19 + $0x120] sm:$0xff] (!%p4667_p10)  ;;  %5519 = vmatpush3.bf16.msra.mxu0 (!%p4667_p10), %v5518_v7  ;;  %5551 = vmatpush3.bf16.msra.mxu1 (!%p4667_p10), %v5550_v28  ;;  %v4301_v8 = vld [vmem:[#allocation19 + $0x158] sm:$0xff] (!%p4667_p10)  ;;  %v5534_v20 = vpack.c.bf16 (!%p4667_p10), %v4269_v2, %v4268_v27 }
 0x5cd   : > { %v4140_v32 = vrot.slane %v4139_v21, 1  ;;  %v4161_v4 = vrot.slane %v4160_v30, 1  ;;  %v4182_v14 = vrot.slane %v4181_v11, 1  ;;  %v4203_v60 = vrot.slane %v4202_v9, 1  ;;  %v4295_v37 = vld [vmem:[#allocation19 + $0x128] sm:$0xff] (!%p4667_p10)  ;;  %v4270_v61 = vld [vmem:[#allocation19 + $0x60] sm:$0xff] (!%p4667_p10) }
 0x5ce   : > { %5521 = vmatprep.subr.bf16.mxu0 (!%p4667_p10), %v5520_v41  ;;  %5553 = vmatprep.subr.bf16.mxu1 (!%p4667_p10), %v5552_v46  ;;  %v4319_v36 = vld [vmem:[#allocation19 + $0x1e8] sm:$0xff] (!%p4667_p10)  ;;  %v5566_v5 = vpack.c.bf16 (!%p4667_p10), %v4301_v8, %v4300_v59  ;;  %v4302_v45 = vld [vmem:[#allocation19 + $0x160] sm:$0xff] (!%p4667_p10)  ;;  %v4288_v0 = vld [vmem:[#allocation19 + $0xf0] sm:$0xff] (!%p4667_p10) }
 0x5cf   : > { %v4141_v54 = vadd.f32 %v4140_v32, %v4139_v21  ;;  %v4162_v35 = vadd.f32 %v4161_v4, %v4160_v30  ;;  %v4183_v44 = vadd.f32 %v4182_v14, %v4181_v11  ;;  %v4204_v10 = vadd.f32 %v4203_v60, %v4202_v9  ;;  %v4312_v11 = vld [vmem:[#allocation19 + $0x1b0] sm:$0xff] (!%p4667_p10)  ;;  %v4313_v9 = vld [vmem:[#allocation19 + $0x1b8] sm:$0xff] (!%p4667_p10)  ;;  %v4271_v51 = vld [vmem:[#allocation19 + $0x68] sm:$0xff] (!%p4667_p10) }
 0x5d0   : > { %v5522_v21 = vpack.c.bf16 (!%p4667_p10), %v4263_v17, %v4262_v18  ;;  %v5554_v30 = vpack.c.bf16 (!%p4667_p10), %v4295_v37, %v4294_v50  ;;  %v4264_v32 = vld [vmem:[#allocation19 + $0x30] sm:$0xff] (!%p4667_p10)  ;;  %v5524_v4 = vpack.c.bf16 (!%p4667_p10), %v4281_v13, %v4280_v26  ;;  %v5556_v14 = vpack.c.bf16 (!%p4667_p10), %v4313_v9, %v4312_v11  ;;  %v4265_v60 = vld [vmem:[#allocation19 + $0x38] sm:$0xff] (!%p4667_p10)  ;;  %v4303_v43 = vld [vmem:[#allocation19 + $0x168] sm:$0xff] (!%p4667_p10) }
 0x5d1   : > { %v4209_v42 = vcombine.low %v4141_v54, %v4162_v35  ;;  %v4210_v1 = vcombine.low %v4183_v44, %v4204_v10  ;;  %v4297_v54 = vld [vmem:[#allocation19 + $0x138] sm:$0xff] (!%p4667_p10)  ;;  %v4282_v35 = vld [vmem:[#allocation19 + $0xc0] sm:$0xff] (!%p4667_p10)  ;;  %v4283_v44 = vld [vmem:[#allocation19 + $0xc8] sm:$0xff] (!%p4667_p10)  ;;  %v5568_v16 = vpack.c.bf16 (!%p4667_p10), %v4319_v36, %v4318_v38  ;;  %v5538_v56 = vpack.c.bf16 (!%p4667_p10), %v4271_v51, %v4270_v61 }
 0x5d2   : > { %v4314_v10 = vld [vmem:[#allocation19 + $0x1c0] sm:$0xff] (!%p4667_p10)  ;;  %5523 = vmatpush3.bf16.msra.mxu0 (!%p4667_p10), %v5522_v21  ;;  %5555 = vmatpush3.bf16.msra.mxu1 (!%p4667_p10), %v5554_v30  ;;  %v5528_v3 = vpack.c.bf16 (!%p4667_p10), %v4283_v44, %v4282_v35  ;;  %v4289_v7 = vld [vmem:[#allocation19 + $0xf8] sm:$0xff] (!%p4667_p10)  ;;  %v4320_v58 = vld [vmem:[#allocation19 + $0x1f0] sm:$0xff] (!%p4667_p10)  ;;  %v5570_v28 = vpack.c.bf16 (!%p4667_p10), %v4303_v43, %v4302_v45 }
 0x5d3   : > { %v4217_v22 = vrot.slane %v4209_v42, %v4216_v40  ;;  %v4224_v52 = vrot.slane %v4210_v1, %v4216_v40  ;;  %v5526_v42 = vpack.c.bf16 (!%p4667_p10), %v4265_v60, %v4264_v32  ;;  %5525 = vmatprep.subr.bf16.mxu0 (!%p4667_p10), %v5524_v4  ;;  %5557 = vmatprep.subr.bf16.mxu1 (!%p4667_p10), %v5556_v14  ;;  %v4321_v25 = vld [vmem:[#allocation19 + $0x1f8] sm:$0xff] (!%p4667_p10)  ;;  %v4272_v29 = vld [vmem:[#allocation19 + $0x70] sm:$0xff] (!%p4667_p10)  ;;  %v8307_v32 = vld [vmem:[#allocation57_spill] sm:$0xff] (!%p4667_p10) }
 0x5d4   : > { %v5560_v19 = vpack.c.bf16 (!%p4667_p10), %v4315_v47, %v4314_v10  ;;  %v5540_v48 = vpack.c.bf16 (!%p4667_p10), %v4289_v7, %v4288_v0  ;;  %v5572_v6 = vpack.c.bf16 (!%p4667_p10), %v4321_v25, %v4320_v58  ;;  %v4273_v41 = vld [vmem:[#allocation19 + $0x78] sm:$0xff] (!%p4667_p10)  ;;  %v4304_v46 = vld [vmem:[#allocation19 + $0x170] sm:$0xff] (!%p4667_p10)  ;;  %v4322_v44 = vld [vmem:[#allocation20] sm:$0x1] (!%p4667_p10) }
 0x5d5   : > { %v4225_v39 = vcombine.low %v4217_v22, %v4224_v52  ;;  %4244 = sbr.rel (%p4667_p10) target bundleno = 1845 (0x735), region = 96  ;;  %v4266_v22 = vld [vmem:[#allocation19 + $0x40] sm:$0xff] (!%p4667_p10)  ;;  %v4267_v52 = vld [vmem:[#allocation19 + $0x48] sm:$0xff] (!%p4667_p10)  ;;  %v4305_v18 = vld [vmem:[#allocation19 + $0x178] sm:$0xff] (!%p4667_p10)  ;;  %v5542_v17 = vpack.c.bf16 (!%p4667_p10), %v4273_v41, %v4272_v29 }
 0x5d6   : > { %5527 = vmatpush3.bf16.msra.mxu0 (!%p4667_p10), %v5526_v42  ;;  %v5530_v62 = vpack.c.bf16 (!%p4667_p10), %v4267_v52, %v4266_v22  ;;  %v5574_v50 = vpack.c.bf16 (!%p4667_p10), %v4305_v18, %v4304_v46  ;;  %v8306_v11 = vld [vmem:[#allocation30_spill] sm:$0xff] (!%p4667_p10) }
 0x5d7   : > { %v4232_v34 = vrot.slane %v4225_v39, %v4216_v40  ;;  %v4296_v40 = vld [vmem:[#allocation19 + $0x130] sm:$0xff] (!%p4667_p10)  ;;  %v4298_v39 = vld [vmem:[#allocation19 + $0x140] sm:$0xff] (!%p4667_p10)  ;;  %5529 = vmatprep.subr.bf16.mxu0 (!%p4667_p10), %v5528_v3 }
 0x5d8   : > { %v5558_v1 = vpack.c.bf16 (!%p4667_p10), %v4297_v54, %v4296_v40  ;;  %v8308_v60 = vld [vmem:[#allocation58_spill] sm:$0xff] (!%p4667_p10) }
 0x5d9   : > { %v4234_v57 = vadd.f32 %v4232_v34, %v3976_v53  ;;  %v4299_v34 = vld [vmem:[#allocation19 + $0x148] sm:$0xff] (!%p4667_p10)  ;;  %v4284_v53 = vld [vmem:[#allocation19 + $0xd0] sm:$0xff] (!%p4667_p10) }
 0x5da   : > { %5559 = vmatpush3.bf16.msra.mxu1 (!%p4667_p10), %v5558_v1  ;;  %v5562_v55 = vpack.c.bf16 (!%p4667_p10), %v4299_v34, %v4298_v39  ;;  %v5532_v33 = vpack.c.bf16 (!%p4667_p10), %v4285_v49, %v4284_v53  ;;  %5531 = vmatpush3.bf16.msra.mxu0 (!%p4667_p10), %v5530_v62 }
 0x5db   : > { %4239 = vst.msk [vmem:[#allocation4] sm:$0xf] %vm4237_vm3, %v4234_v57  ;;  %v4316_v57 = vld [vmem:[#allocation19 + $0x1d0] sm:$0xff] (!%p4667_p10)  ;;  %5561 = vmatprep.subr.bf16.mxu1 (!%p4667_p10), %v5560_v19 }
 0x5dc   : > { %v5564_v63 = vpack.c.bf16 %v4317_v24, %v4316_v57  ;;  %5533 = vmatprep.subr.bf16.mxu0 %v5532_v33 }
 0x5de   : > { %5563 = vmatpush3.bf16.msra.mxu1 %v5562_v55  ;;  %5535 = vmatpush3.bf16.msra.mxu0 %v5534_v20 }
 0x5df   : > { %5565 = vmatprep.subr.bf16.mxu1 %v5564_v63  ;;  %5537 = vmatprep.subr.bf16.mxu0 %v5536_v23 }
 0x5e2   : > { %5567 = vmatpush3.bf16.msra.mxu1 %v5566_v5  ;;  %5539 = vmatpush3.bf16.msra.mxu0 %v5538_v56  ;;  %v4245_v13 = vld [vmem:[#allocation4] sm:$0xf] }
 0x5e3   : > { %5569 = vmatprep.subr.bf16.mxu1 %v5568_v16  ;;  %5541 = vmatprep.subr.bf16.mxu0 %v5540_v48 }
 0x5e6   : > { %5571 = vmatpush3.bf16.msra.mxu1 %v5570_v28  ;;  %5543 = vmatpush3.bf16.msra.mxu0 %v5542_v17 }
 0x5e7   : > { %5573 = vmatprep.subr.bf16.mxu1 %v5572_v6 }
 0x5ea   : > { %5575 = vmatpush3.bf16.msra.mxu1 %v5574_v50 }
 0x646   : > { %v4250_v37 = vpop.permute.xlu0 %4249 }
 0x647   : > { %v4255_v26 = vrot.slane %v4250_v37, %v7121_v12 }
 0x649   : > { %6317 = vrcp.f32 %v4255_v26 }
 0x653   : > { %v6318_v21 = vpop.eup %6317 }
 0x654   : > { %v4257_v30 = vmul.f32 %v6318_v21, %v4245_v13 }
 0x656   : > { %v4331_v9 = vrot.slane %v4257_v30, %v8306_v11  ;;  %v4339_v4 = vrot.slane %v4257_v30, %v8307_v32  ;;  %v4327_v14 = vrot.slane %v4257_v30, %v7121_v12  ;;  %v4335_v40 = vrot.slane %v4257_v30, %v8308_v60 }
 0x658   : > { %4408 = vmatprep.mubr.f32.mxu0 %v4331_v9  ;;  %4478 = vmatprep.mubr.f32.mxu1 %v4339_v4 }
 0x659   : > { %4409 = vmatmul.mubr.f32.vlgmr.msra.gmra.mrb[0].mxu0 %v4327_v14  ;;  %4479 = vmatmul.mubr.f32.vlgmr.msra.gmra.mrb[0].mxu1 %v4335_v40 }
 0x72c   : > { %v4706_v54 = vpop.f32.mrb[0].mxu0  ;;  %v4741_v35 = vpop.f32.mrb[0].mxu1 }
 0x72d   : > { %v4707_v10 = vpop.f32.mrb[1].mxu0  ;;  %v4742_v47 = vpop.f32.mrb[1].mxu1 }
 0x72e   : > { %v4708_v42 = vadd.f32 %v4707_v10, %v4706_v54  ;;  %v4743_v1 = vadd.f32 %v4742_v47, %v4741_v35 }
 0x730   : > { %v4411_v22 = vadd.f32 %v4708_v42, %v4322_v44 }
 0x732   : > { %v4481_v52 = vadd.f32 %v4743_v1, %v4411_v22 }
 0x734   : > { %4484 = vst [vmem:[#allocation22] sm:$0x1] %v4481_v52 }
 0x735 PF: > { %p6035_p12 = scmp.eq.s32.totalorder %s6729_s21, 1  ;;  %s6646_s14 = smov [#allocation22]  }
 0x736   : > { %s4492_s29 = sshll.u32 %s6646_s14, 4  ;;  %s4493_s29 = int_to_ptr.vmem [resolvable:$true] %s4492_s29 }
 0x737   : > { %s6545_s0 = scalar_lea.vmem %s4493_s29, 16  ;;  %s6551_s20 = scalar_lea.vmem %s4493_s29, 32 }
 0x738   : > { %p6546_p8 = scmp.ne.s32.totalorder %s4493_s29, %s6545_s0  ;;  %p6552_p11 = scmp.lt.s32.totalorder %s4493_s29, %s4493_s29 }
 0x739   : > { %p6553_p6 = scmp.lt.s32.totalorder %s6551_s20, %s6545_s0 }
 0x73a   : > { %p6547_p13 = pnand %p6546_p8, %p6035_p12 }
 0x73b   : > { %p6554_p0 = por %p6553_p6, %p6552_p11 }
 0x73c   : > { %p6548_p3 = pneg %p6547_p13 }
 0x73e   : > { %p6555_p1 = pnand %p6554_p0, %p6548_p3 }
 0x740   : > { %6558 = shalt.err (!%p6555_p1)
}
 0x741   : > { %s6559_s30 = scalar_lea.hbm %s8125_s10, 16 }
 0x742   : > { %p6560_p4 = scmp.ne.s32.totalorder %s8125_s10, %s6559_s30  ;;  %p6565_p7 = scmp.lt.u32.totalorder %s6559_s30, %s8125_s10 }
 0x744   : > { %p6561_p2 = pnand %p6560_p4, %p6035_p12 }
 0x746   : > { %p6562_p5 = pneg %p6561_p2 }
 0x748   : > { %p6567_p9 = pnand %p6565_p7, %p6562_p5 }
 0x74a   : > { %6570 = shalt.err (!%p6567_p9)
}
 0x74b   : > { %5991 = dma.vmem_to_hbm [thread:$0]  (%p6035_p12), %s4493_s29, 16, %s8125_s10, [#allocation10]  }
 0x74c   : > { %6608 = dma.done.wait (%p6035_p12), [#allocation10], 16  }
 0x74d   : > { %6610 = vsyncadd (%p6035_p12), [#allocation10], 4294967280 }
 0x74e PF: > { %p28_p10 = scmp.ge.s32.totalorder %s6901_s13, 4   ;;  %s8309_s17 = smov %s6617_s18 }
 0x74f   : > { %s8310_s18 = smov %s6621_s19  ;;  %s8311_s19 = smov %s6912_s27 }
 0x750   : > { %s8312_s20 = smov %s6901_s13  ;;  %30 = sbr.rel (!%p28_p10) target bundleno = 11 (0xb), region = 129 }
 0x757   :  { %4505 = vsyncpa [#allocation9], 1 }
 0x758   :  { %4507 = vsyncpa [#allocation9 + $0x1], 1 }
 0x759   :  { %4508 = vsyncpa [#allocation12], 1 }
 0x75a   :  { %4509 = vsyncpa [#allocation15], 1 }
 0x75b   :  { %4510 = vsyncpa [#allocation18], 1 }
 0x75c   :  { %4511 = vsyncpa [#allocation21], 1 }
 0x75d   :  { %4512 = vsyncpa [#allocation10], 1 }
 0x75e   :  { %4514 = vsyncpa [#allocation10 + $0x1], 1 }

</bundles_post_ra>
